<compile_context>
chip_gen: v6e
topology: v6e:2x2x1
jax: 0.10.0
libtpu: 0.0.40
codegen_flags: <defaults>
</compile_context>

<pallas_src>
import jax
import jax.numpy as jnp
from jax.experimental import pallas as pl
from jax.experimental.pallas import tpu as pltpu


def _round_up(x, m):
    return ((x + m - 1) // m) * m


# ----------------------------- Pallas kernel ------------------------------- #

def _fused_forward_kernel(x_ref, m1_ref, b1_ref, m2_ref, b2_ref,
                          m3_ref, b3_ref, o_ref):
    # conv1 (dense-lowered, NCHW row order baked into m1) + bias + ReLU
    h1 = jnp.dot(x_ref[...], m1_ref[...], preferred_element_type=jnp.float32)
    h1 = jnp.maximum(h1 + b1_ref[...], 0.0)
    # conv2 (dense-lowered) + bias + ReLU
    h2 = jnp.dot(h1.astype(jnp.bfloat16), m2_ref[...],
                 preferred_element_type=jnp.float32)
    h2 = jnp.maximum(h2 + b2_ref[...], 0.0)
    # GAP + [cls | reg | zero-pad] folded into one lane-dense (N=128) matmul
    o_ref[...] = jnp.dot(h2.astype(jnp.bfloat16), m3_ref[...],
                         preferred_element_type=jnp.float32) + b3_ref[...]


def fused_forward(x_flat, m1, b1f, m2, b2f, m3, b3f, *, tb=128):
    """x_flat: (B, K) bf16, NCHW-flattened input. Returns (B, head_pad) f32."""
    B, K = x_flat.shape
    N1 = m1.shape[1]
    N2 = m2.shape[1]
    N3 = m3.shape[1]

    # Batch tile: multiple of 16 (bf16 sublane packing), capped at `tb`.
    tb = min(tb, _round_up(B, 16))
    B_pad = _round_up(B, tb)
    if B_pad != B:
        x_flat = jnp.pad(x_flat, ((0, B_pad - B), (0, 0)))
    grid = (B_pad // tb,)

    const = lambda i: (0, 0)   # weights/biases: same block every step -> resident
    cost = pl.CostEstimate(
        flops=2 * B_pad * (K * N1 + N1 * N2 + N2 * N3),
        transcendentals=0,
        bytes_accessed=((m1.size + m2.size + m3.size) * 2
                        + (b1f.size + b2f.size + b3f.size) * 4
                        + B_pad * (K * 2 + N3 * 4)))

    out = pl.pallas_call(
        _fused_forward_kernel,
        out_shape=jax.ShapeDtypeStruct((B_pad, N3), jnp.float32),
        grid=grid,
        in_specs=[
            pl.BlockSpec((tb, K), lambda i: (i, 0)),   # pipelined input tiles
            pl.BlockSpec((K, N1), const),
            pl.BlockSpec((1, N1), const),
            pl.BlockSpec((N1, N2), const),
            pl.BlockSpec((1, N2), const),
            pl.BlockSpec((N2, N3), const),
            pl.BlockSpec((1, N3), const),
        ],
        out_specs=pl.BlockSpec((tb, N3), lambda i: (i, 0)),
        compiler_params=pltpu.CompilerParams(
            dimension_semantics=("parallel",),          # megacore on v7x
            vmem_limit_bytes=32 * 1024 * 1024),
        cost_estimate=cost,
    )(x_flat, m1, b1f, m2, b2f, m3, b3f)
    return out[:B]


# -------------------- init-time conv -> dense-matrix lowering --------------- #

_MAX_DENSE_BYTES = 8 << 20  # dense conv lowering is only valid for tiny stems


def _conv3x3_s2_as_dense(w, H, W, pad=1, stride=2):
    """Lower a 3x3 / stride-2 / pad-1 conv to a dense matrix.

    w: (3, 3, Cin, Cout).  Returns (M, Ho, Wo) such that for x flattened NHWC
    ((h*W+w)*Cin+ci row order), conv(x) flattened as (oh*Wo+ow)*Cout+co equals
    x_flat @ M (zero-padding outside the image).
    """
    kH, kW, Cin, Cout = w.shape
    Ho = (H + 2 * pad - kH) // stride + 1
    Wo = (W + 2 * pad - kW) // stride + 1
    nbytes = (H * W * Cin) * (Ho * Wo * Cout) * 4
    if nbytes > _MAX_DENSE_BYTES:
        raise ValueError(
            f"dense conv lowering would be {nbytes/2**20:.1f} MiB; "
            "this path only scales to tiny stems -- use a tiled conv kernel.")
    h_idx = jnp.arange(H)[:, None]
    w_idx = jnp.arange(W)[:, None]
    oh_idx = jnp.arange(Ho)[None, :]
    ow_idx = jnp.arange(Wo)[None, :]
    M = jnp.zeros((H * W * Cin, Ho * Wo * Cout), jnp.float32)
    for kh in range(kH):
        Sh = (h_idx == stride * oh_idx + kh - pad).astype(jnp.float32)      # (H, Ho)
        for kw in range(kW):
            Sw = (w_idx == stride * ow_idx + kw - pad).astype(jnp.float32)  # (W, Wo)
            term = jnp.einsum('ho,wp,ic->hwiopc', Sh, Sw, w[kh, kw])
            M = M + term.reshape(H * W * Cin, Ho * Wo * Cout)
    return M, Ho, Wo


# ------------------------------- Model -------------------------------------- #

class RSNAModelPallas:
    def __init__(self, key, in_chans=3, c1=16, in_features=32,
                 n_cls=75, n_reg=10, H=16, W=16, head_pad=128):
        ks = jax.random.split(key, 8)
        s = 0.05
        w1 = s * jax.random.normal(ks[0], (3, 3, in_chans, c1), jnp.float32)
        b1 = s * jax.random.normal(ks[1], (c1,), jnp.float32)
        w2 = s * jax.random.normal(ks[2], (3, 3, c1, in_features), jnp.float32)
        b2 = s * jax.random.normal(ks[3], (in_features,), jnp.float32)
        wc = s * jax.random.normal(ks[4], (in_features, n_cls), jnp.float32)
        bc = s * jax.random.normal(ks[5], (n_cls,), jnp.float32)
        wr = s * jax.random.normal(ks[6], (in_features, n_reg), jnp.float32)
        br = s * jax.random.normal(ks[7], (n_reg,), jnp.float32)
        self.f32_params = (w1, b1, w2, b2, wc, bc, wr, br)

        self.in_chans, self.H, self.W = in_chans, H, W
        self.n_cls, self.n_reg = n_cls, n_reg

        # conv1 / conv2 pre-lowered to dense matmuls; bf16 MXU operands.
        m1, H1, W1 = _conv3x3_s2_as_dense(w1, H, W)      # (H*W*Cin, H1*W1*c1)
        m2, H2, W2 = _conv3x3_s2_as_dense(w2, H1, W1)    # (H1*W1*c1, H2*W2*Cf)

        # Bake the NCHW->NHWC permutation into m1's rows so the kernel consumes
        # NCHW-flattened input directly (no wrapper transpose / extra HBM pass).
        hw = jnp.arange(H * W)
        ci = jnp.arange(in_chans)
        perm = (hw[None, :] * in_chans + ci[:, None]).reshape(-1)  # new->old row
        m1 = m1[perm]

        self.m1 = m1.astype(jnp.bfloat16)                # (768, 1024)
        self.m2 = m2.astype(jnp.bfloat16)                # (1024, 512)
        # per-channel conv biases broadcast over the flattened spatial axis
        self.b1f = jnp.tile(b1, H1 * W1).reshape(1, -1)  # (1, 1024) f32
        self.b2f = jnp.tile(b2, H2 * W2).reshape(1, -1)  # (1, 512)  f32

        # GAP + [cls | reg | zero-pad-to-128] folded into a single matrix.
        # (N=128 fills half a v6e/v7x MXU pass; widening only matters if the
        #  head matmul ever shows up on the MXU slot -- it is DMA-shadowed now.)
        n_heads = n_cls + n_reg
        assert head_pad >= n_heads
        gap = jnp.tile(jnp.eye(in_features, dtype=jnp.float32),
                       (H2 * W2, 1)) / float(H2 * W2)    # (H2*W2*Cf, Cf)
        w_heads = jnp.concatenate(
            [wc, wr, jnp.zeros((in_features, head_pad - n_heads), jnp.float32)],
            axis=1)                                      # (Cf, 128)
        self.m3 = (gap @ w_heads).astype(jnp.bfloat16)   # (512, 128)
        self.b3f = jnp.concatenate(
            [bc, br, jnp.zeros((head_pad - n_heads,), jnp.float32)]
        ).reshape(1, -1)                                 # (1, 128) f32

    def __call__(self, x_nchw):
        B = x_nchw.shape[0]
        # NCHW flattened directly (permutation lives in m1); bf16 halves the
        # only activation HBM read.
        x_flat = x_nchw.reshape(B, self.in_chans * self.H * self.W)
        x_flat = x_flat.astype(jnp.bfloat16)
        out = fused_forward(x_flat, self.m1, self.b1f, self.m2, self.b2f,
                            self.m3, self.b3f)                       # (B, 128)
        cls = out[:, :self.n_cls]
        reg = out[:, self.n_cls:self.n_cls + self.n_reg]
        return cls, reg

    # Pure-JAX f32 reference of the same (stand-in) forward, for validation.
    def reference(self, x_nchw):
        w1, b1, w2, b2, wc, bc, wr, br = self.f32_params
        x = jnp.transpose(x_nchw, (0, 2, 3, 1)).astype(jnp.float32)  # NHWC
        dn = ('NHWC', 'HWIO', 'NHWC')
        h1 = jax.lax.conv_general_dilated(
            x, w1, (2, 2), ((1, 1), (1, 1)), dimension_numbers=dn)
        h1 = jnp.maximum(h1 + b1, 0.0)
        h2 = jax.lax.conv_general_dilated(
            h1, w2, (2, 2), ((1, 1), (1, 1)), dimension_numbers=dn)
        h2 = jnp.maximum(h2 + b2, 0.0)
        feat = h2.mean(axis=(1, 2))                                  # GAP
        return feat @ wc + bc, feat @ wr + br


if __name__ == "__main__":
    key = jax.random.PRNGKey(0)
    k_param, k_x = jax.random.split(key)
    model = RSNAModelPallas(k_param)

    # PyTorch-style NCHW input, small shapes
    x = jax.random.normal(k_x, (2, 3, 16, 16), jnp.float32)

    cls, reg = model(x)
    jax.block_until_ready((cls, reg))
    assert cls.shape == (2, 75) and cls.dtype == jnp.float32
    assert reg.shape == (2, 10) and reg.dtype == jnp.float32

    # Validate against the f32 reference (bf16 MXU weights -> loose tolerance).
    cls_ref, reg_ref = model.reference(x)
    assert jnp.max(jnp.abs(cls - cls_ref)) < 1e-2, "cls mismatch vs reference"
    assert jnp.max(jnp.abs(reg - reg_ref)) < 1e-2, "reg mismatch vs reference"

    print("KERNEL_OK")
</pallas_src>

<mosaic_0001>
module attributes {stable_mosaic.version = 11 : i64} {
  func.func @_fused_forward_kernel(%arg0: i32, %arg1: memref<16x768xbf16, #tpu.memory_space<vmem>>, %arg2: memref<768x1024xbf16, #tpu.memory_space<vmem>>, %arg3: memref<1x1024xf32, #tpu.memory_space<vmem>>, %arg4: memref<1024x512xbf16, #tpu.memory_space<vmem>>, %arg5: memref<1x512xf32, #tpu.memory_space<vmem>>, %arg6: memref<512x128xbf16, #tpu.memory_space<vmem>>, %arg7: memref<1x128xf32, #tpu.memory_space<vmem>>, %arg8: memref<16x128xf32, #tpu.memory_space<vmem>>) attributes {dimension_semantics = [#tpu.dimension_semantics<parallel>], iteration_bounds = array<i64: 1>, scalar_prefetch = 0 : i64, scratch_operands = 0 : i64, tpu.core_type = #tpu.core_type<tc>, window_params = [{transform_indices = @transform_0, window_bounds = array<i64: 16, 768>}, {pipeline_mode = #tpu.pipeline_mode<synchronous>, transform_indices = @transform_1, window_bounds = array<i64: 768, 1024>}, {pipeline_mode = #tpu.pipeline_mode<synchronous>, transform_indices = @transform_2, window_bounds = array<i64: 1, 1024>}, {pipeline_mode = #tpu.pipeline_mode<synchronous>, transform_indices = @transform_3, window_bounds = array<i64: 1024, 512>}, {pipeline_mode = #tpu.pipeline_mode<synchronous>, transform_indices = @transform_4, window_bounds = array<i64: 1, 512>}, {pipeline_mode = #tpu.pipeline_mode<synchronous>, transform_indices = @transform_5, window_bounds = array<i64: 512, 128>}, {pipeline_mode = #tpu.pipeline_mode<synchronous>, transform_indices = @transform_6, window_bounds = array<i64: 1, 128>}, {transform_indices = @transform_7, window_bounds = array<i64: 16, 128>}]} {
    %c0 = arith.constant 0 : index
    %c0_0 = arith.constant 0 : index
    %0 = vector.load %arg1[%c0, %c0_0] : memref<16x768xbf16, #tpu.memory_space<vmem>>, vector<16x768xbf16>
    %c0_1 = arith.constant 0 : index
    %c0_2 = arith.constant 0 : index
    %1 = vector.load %arg2[%c0_1, %c0_2] : memref<768x1024xbf16, #tpu.memory_space<vmem>>, vector<768x1024xbf16>
    %cst = arith.constant dense<0.000000e+00> : vector<16x1024xf32>
    %2 = tpu.matmul %0, %1, %cst {dimension_numbers = #tpu.dot_dimension_numbers<[1], [0], [0], [1], [0, 0, 1, 1], [], []>} : vector<16x768xbf16>, vector<768x1024xbf16>, vector<16x1024xf32> -> vector<16x1024xf32>
    %c0_3 = arith.constant 0 : index
    %c0_4 = arith.constant 0 : index
    %3 = vector.load %arg3[%c0_3, %c0_4] : memref<1x1024xf32, #tpu.memory_space<vmem>>, vector<1x1024xf32>
    %4 = vector.broadcast %3 : vector<1x1024xf32> to vector<16x1024xf32>
    %5 = arith.addf %2, %4 : vector<16x1024xf32>
    %cst_5 = arith.constant 0.000000e+00 : f32
    %6 = vector.broadcast %cst_5 : f32 to vector<16x1024xf32>
    %7 = arith.maximumf %5, %6 : vector<16x1024xf32>
    %8 = arith.truncf %7 : vector<16x1024xf32> to vector<16x1024xbf16>
    %c0_6 = arith.constant 0 : index
    %c0_7 = arith.constant 0 : index
    %9 = vector.load %arg4[%c0_6, %c0_7] : memref<1024x512xbf16, #tpu.memory_space<vmem>>, vector<1024x512xbf16>
    %cst_8 = arith.constant dense<0.000000e+00> : vector<16x512xf32>
    %10 = tpu.matmul %8, %9, %cst_8 {dimension_numbers = #tpu.dot_dimension_numbers<[1], [0], [0], [1], [0, 0, 1, 1], [], []>} : vector<16x1024xbf16>, vector<1024x512xbf16>, vector<16x512xf32> -> vector<16x512xf32>
    %c0_9 = arith.constant 0 : index
    %c0_10 = arith.constant 0 : index
    %11 = vector.load %arg5[%c0_9, %c0_10] : memref<1x512xf32, #tpu.memory_space<vmem>>, vector<1x512xf32>
    %12 = vector.broadcast %11 : vector<1x512xf32> to vector<16x512xf32>
    %13 = arith.addf %10, %12 : vector<16x512xf32>
    %cst_11 = arith.constant 0.000000e+00 : f32
    %14 = vector.broadcast %cst_11 : f32 to vector<16x512xf32>
    %15 = arith.maximumf %13, %14 : vector<16x512xf32>
    %16 = arith.truncf %15 : vector<16x512xf32> to vector<16x512xbf16>
    %c0_12 = arith.constant 0 : index
    %c0_13 = arith.constant 0 : index
    %17 = vector.load %arg6[%c0_12, %c0_13] : memref<512x128xbf16, #tpu.memory_space<vmem>>, vector<512x128xbf16>
    %cst_14 = arith.constant dense<0.000000e+00> : vector<16x128xf32>
    %18 = tpu.matmul %16, %17, %cst_14 {dimension_numbers = #tpu.dot_dimension_numbers<[1], [0], [0], [1], [0, 0, 1, 1], [], []>} : vector<16x512xbf16>, vector<512x128xbf16>, vector<16x128xf32> -> vector<16x128xf32>
    %c0_15 = arith.constant 0 : index
    %c0_16 = arith.constant 0 : index
    %19 = vector.load %arg7[%c0_15, %c0_16] : memref<1x128xf32, #tpu.memory_space<vmem>>, vector<1x128xf32>
    %20 = vector.broadcast %19 : vector<1x128xf32> to vector<16x128xf32>
    %21 = arith.addf %18, %20 : vector<16x128xf32>
    %c0_17 = arith.constant 0 : index
    %c0_18 = arith.constant 0 : index
    %22 = vector.load %arg8[%c0_17, %c0_18] : memref<16x128xf32, #tpu.memory_space<vmem>>, vector<16x128xf32>
    tpu.vector_store %arg8[%c0_17, %c0_18], %21 {strides = array<i32>} : memref<16x128xf32, #tpu.memory_space<vmem>>, vector<16x128xf32>,
    return
  }
  func.func @transform_0(%arg0: i32) -> (i32, i32) {
    %c0_i32 = arith.constant 0 : i32
    %c0_i32_0 = arith.constant 0 : i32
    return %arg0, %c0_i32 : i32, i32
  }
  func.func @transform_1(%arg0: i32) -> (i32, i32) {
    %c0_i32 = arith.constant 0 : i32
    %c0_i32_0 = arith.constant 0 : i32
    %c0_i32_1 = arith.constant 0 : i32
    return %c0_i32, %c0_i32_0 : i32, i32
  }
  func.func @transform_2(%arg0: i32) -> (i32, i32) {
    %c0_i32 = arith.constant 0 : i32
    %c0_i32_0 = arith.constant 0 : i32
    %c0_i32_1 = arith.constant 0 : i32
    return %c0_i32, %c0_i32_0 : i32, i32
  }
  func.func @transform_3(%arg0: i32) -> (i32, i32) {
    %c0_i32 = arith.constant 0 : i32
    %c0_i32_0 = arith.constant 0 : i32
    %c0_i32_1 = arith.constant 0 : i32
    return %c0_i32, %c0_i32_0 : i32, i32
  }
  func.func @transform_4(%arg0: i32) -> (i32, i32) {
    %c0_i32 = arith.constant 0 : i32
    %c0_i32_0 = arith.constant 0 : i32
    %c0_i32_1 = arith.constant 0 : i32
    return %c0_i32, %c0_i32_0 : i32, i32
  }
  func.func @transform_5(%arg0: i32) -> (i32, i32) {
    %c0_i32 = arith.constant 0 : i32
    %c0_i32_0 = arith.constant 0 : i32
    %c0_i32_1 = arith.constant 0 : i32
    return %c0_i32, %c0_i32_0 : i32, i32
  }
  func.func @transform_6(%arg0: i32) -> (i32, i32) {
    %c0_i32 = arith.constant 0 : i32
    %c0_i32_0 = arith.constant 0 : i32
    %c0_i32_1 = arith.constant 0 : i32
    return %c0_i32, %c0_i32_0 : i32, i32
  }
  func.func @transform_7(%arg0: i32) -> (i32, i32) {
    %c0_i32 = arith.constant 0 : i32
    %c0_i32_0 = arith.constant 0 : i32
    return %arg0, %c0_i32 : i32, i32
  }
}

</mosaic_0001>

<bundles_post_ra>
// kernel: tpu_custom_call.1
= control target key start
LH: loop header
LB: loop body
LE: loop exit
PB: predicated region body
PF: predicated region fallthrough
CT: control target
= control target key end

     0   :  { %12 = vsyncpa [#allocation3], 0  ;;  %s6896_s0 = inlined_call_operand.hbm [shape: bf16[16,768], index: 0, kind: input, shape index: {}]   ;;  %s6897_s1 = inlined_call_operand.hbm [shape: bf16[768,1024], index: 1, kind: input, shape index: {}]   ;;  %s6898_s2 = inlined_call_operand.hbm [shape: f32[1,1024], index: 2, kind: input, shape index: {}]   ;;  %s6899_s3 = inlined_call_operand.hbm [shape: bf16[1024,512], index: 3, kind: input, shape index: {}]   ;;  %s6900_s4 = inlined_call_operand.hbm [shape: f32[1,512], index: 4, kind: input, shape index: {}]   ;;  %s6901_s5 = inlined_call_operand.hbm [shape: bf16[512,128], index: 5, kind: input, shape index: {}]   ;;  %s6902_s6 = inlined_call_operand.hbm [shape: f32[1,128], index: 6, kind: input, shape index: {}]   ;;  %s6903_s7 = inlined_call_operand.hbm [shape: f32[16,128], index: 7, kind: output, shape index: {}]  }
   0x1   :  { %13 = vsyncpa [#allocation6], 0 }
   0x2   :  { %14 = vsyncpa [#allocation9], 0 }
   0x3   :  { %15 = vsyncpa [#allocation12], 0 }
   0x4   :  { %16 = vsyncpa [#allocation4], 0  ;;  %s6664_s24 = smov [#allocation5]  }
   0x5   :  { %s34_s25 = sshll.u32 %s6664_s24, 4  ;;  %s35_s25 = int_to_ptr.vmem [resolvable:$true] %s34_s25 }
   0x6   :  { %s6502_s26 = scalar_lea.vmem %s35_s25, 49152  ;;  %p6507_p1 = scmp.lt.s32.totalorder %s35_s25, %s35_s25 }
   0x7   :  { %p6503_p0 = scmp.ne.s32.totalorder %s35_s25, %s6502_s26  ;;  %p6508_p2 = scmp.lt.s32.totalorder %s6502_s26, %s6502_s26 }
   0x9   :  { %p6509_p3 = por %p6508_p2, %p6507_p1 }
   0xb   :  { %p6510_p4 = pnand %p6509_p3, %p6503_p0 }
   0xd   :  { %6513 = shalt.err (!%p6510_p4)
}
   0xe   :  { %s6665_s27 = smov 512   ;;  %s6666_s28 = smov 32  }
   0xf   :  { %40 = dma.hbm_to_vmem [thread:$0]  %s6897_s1, 49152, %s35_s25, [#allocation6], %s6665_s27, %s6665_s27, %s6666_s28  }
  0x10   :  { %s6667_s8 = smov [#allocation8]  }
  0x11   :  { %s56_s9 = sshll.u32 %s6667_s8, 4  ;;  %s57_s9 = int_to_ptr.vmem [resolvable:$true] %s56_s9 }
  0x12   :  { %s6522_s10 = scalar_lea.vmem %s57_s9, 32768  ;;  %p6527_p6 = scmp.lt.s32.totalorder %s57_s9, %s57_s9 }
  0x13   :  { %p6523_p5 = scmp.ne.s32.totalorder %s57_s9, %s6522_s10  ;;  %p6528_p7 = scmp.lt.s32.totalorder %s6522_s10, %s6522_s10 }
  0x15   :  { %p6529_p8 = por %p6528_p7, %p6527_p6 }
  0x17   :  { %p6530_p9 = pnand %p6529_p8, %p6523_p5 }
  0x19   :  { %6533 = shalt.err (!%p6530_p9)
}
  0x1a   :  { %s6668_s11 = smov 256   ;;  %s6669_s12 = smov 16  }
  0x1b   :  { %62 = dma.hbm_to_vmem [thread:$0]  %s6899_s3, 32768, %s57_s9, [#allocation9], %s6668_s11, %s6668_s11, %s6669_s12  }
  0x1c   :  { %s6670_s15 = smov [#allocation11]  }
  0x1d   :  { %s78_s16 = sshll.u32 %s6670_s15, 4  ;;  %s79_s16 = int_to_ptr.vmem [resolvable:$true] %s78_s16 }
  0x1e   :  { %s6542_s1 = scalar_lea.vmem %s79_s16, 4096  ;;  %p6547_p11 = scmp.lt.s32.totalorder %s79_s16, %s79_s16 }
  0x1f   :  { %p6543_p10 = scmp.ne.s32.totalorder %s79_s16, %s6542_s1  ;;  %p6548_p12 = scmp.lt.s32.totalorder %s6542_s1, %s6542_s1 }
  0x21   :  { %p6549_p13 = por %p6548_p12, %p6547_p11 }
  0x23   :  { %p6550_p0 = pnand %p6549_p13, %p6543_p10 }
  0x25   :  { %6553 = shalt.err (!%p6550_p0)
}
  0x26   :  { %s6671_s17 = smov 64   ;;  %s6672_s18 = smov 4  }
  0x27   :  { %84 = dma.hbm_to_vmem [thread:$0]  %s6901_s5, 4096, %s79_s16, [#allocation12], %s6671_s17, %s6671_s17, %s6672_s18  }
  0x28   :  { %s6673_s21 = smov [#allocation2]  }
  0x29   :  { %s22_s22 = sshll.u32 %s6673_s21, 4  ;;  %s23_s22 = int_to_ptr.vmem [resolvable:$true] %s22_s22 }
  0x2a   :  { %s6562_s3 = scalar_lea.vmem %s23_s22, 768  ;;  %p6567_p2 = scmp.lt.s32.totalorder %s23_s22, %s23_s22 }
  0x2b   :  { %p6563_p1 = scmp.ne.s32.totalorder %s23_s22, %s6562_s3  ;;  %p6568_p3 = scmp.lt.s32.totalorder %s6562_s3, %s6562_s3 }
  0x2d   :  { %p6569_p4 = por %p6568_p3, %p6567_p2 }
  0x2f   :  { %p6570_p5 = pnand %p6569_p4, %p6563_p1 }
  0x31   :  { %6573 = shalt.err (!%p6570_p5)
}
  0x32   :  { %s6674_s23 = smov 384   ;;  %s6675_s24 = smov 24  }
  0x33   :  { %28 = dma.hbm_to_vmem [thread:$0]  %s6896_s0, 768, %s23_s22, [#allocation3], %s6674_s23, %s6674_s23, %s6675_s24  }
  0x34   :  { %s6676_s27 = smov [#allocation7]   ;;  %s6677_s29 = smov [#allocation10]  }
  0x35   :  { %s47_s28 = sshll.u32 %s6676_s27, 4  ;;  %s69_s5 = sshll.u32 %s6677_s29, 4  ;;  %s48_s28 = int_to_ptr.vmem [resolvable:$true] %s47_s28  ;;  %s70_s5 = int_to_ptr.vmem [resolvable:$true] %s69_s5 }
  0x36   :  { %s6582_s30 = scalar_lea.vmem %s48_s28, 128  ;;  %p6587_p7 = scmp.lt.s32.totalorder %s48_s28, %s48_s28 }
  0x37   :  { %p6583_p6 = scmp.ne.s32.totalorder %s48_s28, %s6582_s30  ;;  %p6588_p8 = scmp.lt.s32.totalorder %s6582_s30, %s6582_s30 }
  0x39   :  { %p6589_p9 = por %p6588_p8, %p6587_p7 }
  0x3b   :  { %p6590_p10 = pnand %p6589_p9, %p6583_p6 }
  0x3d   :  { %6593 = shalt.err (!%p6590_p10)
}
  0x3e   :  { %50 = dma.hbm_to_vmem [thread:$0]  %s6898_s2, 128, %s48_s28, [#allocation6]  }
  0x3f   :  { %s6602_s10 = scalar_lea.vmem %s70_s5, 64  ;;  %p6607_p12 = scmp.lt.s32.totalorder %s70_s5, %s70_s5 }
  0x40   :  { %p6603_p11 = scmp.ne.s32.totalorder %s70_s5, %s6602_s10  ;;  %p6608_p13 = scmp.lt.s32.totalorder %s6602_s10, %s6602_s10 }
  0x42   :  { %p6609_p0 = por %p6608_p13, %p6607_p12 }
  0x44   :  { %p6610_p1 = pnand %p6609_p0, %p6603_p11 }
  0x46   :  { %6613 = shalt.err (!%p6610_p1)
}
  0x47   :  { %72 = dma.hbm_to_vmem [thread:$0]  %s6900_s4, 64, %s70_s5, [#allocation9]  }
  0x48   :  { %s6678_s12 = smov [#allocation13]  }
  0x49   :  { %s91_s13 = sshll.u32 %s6678_s12, 4  ;;  %s92_s13 = int_to_ptr.vmem [resolvable:$true] %s91_s13 }
  0x4a   :  { %s6622_s14 = scalar_lea.vmem %s92_s13, 16  ;;  %s6626_s15 = scalar_lea.vmem %s92_s13, 32 }
  0x4b   :  { %p6623_p2 = scmp.ne.s32.totalorder %s92_s13, %s6622_s14  ;;  %p6627_p3 = scmp.lt.s32.totalorder %s92_s13, %s92_s13 }
  0x4c   :  { %p6628_p4 = scmp.lt.s32.totalorder %s6626_s15, %s6622_s14 }
  0x4e   :  { %p6629_p5 = por %p6628_p4, %p6627_p3 }
  0x50   :  { %p6630_p6 = pnand %p6629_p5, %p6623_p2 }
  0x52   :  { %6633 = shalt.err (!%p6630_p6)
}
  0x53   :  { %94 = dma.hbm_to_vmem [thread:$0]  %s6902_s6, 16, %s92_s13, [#allocation12]  }
  0x54   :  { %6654 = dma.done.wait [#allocation3], 768  }
  0x55   :  { %6655 = vsyncadd [#allocation3], 4294966528 }
  0x56   :  { %6656 = dma.done.wait [#allocation6], 49280  }
  0x57   :  { %6657 = vsyncadd [#allocation6], 4294918016 }
  0x58   :  { %6658 = dma.done.wait [#allocation9], 32832  }
  0x59   :  { %6659 = vsyncadd [#allocation9], 4294934464 }
  0x5a   :  { %6660 = dma.done.wait [#allocation12], 4112  }
  0x5b   :  { %6661 = vsyncadd [#allocation12], 4294963184  ;;  %v179_v0 = vld [vmem:[#allocation5 + $0x1c0] sm:$0xff]  ;;  %v6743_v56 = vld [vmem:[#allocation2 + $0x4] ss:$24 sps:$4 sm:$0xff]   ;;  %s6679_s4 = smov [#allocation14]  }
  0x5c   :  { %v183_v1 = vld [vmem:[#allocation5 + $0x1e0] sm:$0xff]  ;;  %v6745_v59 = vld [vmem:[#allocation2 + $0xc] ss:$24 sps:$4 sm:$0xff]   ;;  %2531 = vmatprep.mubr.bf16.mxu0 %v6743_v56  ;;  %s5305_s6 = sshll.u32 %s6679_s4, 4  ;;  %s5306_s6 = int_to_ptr.vmem [resolvable:$true] %s5305_s6 }
  0x5d   :  { %v307_v2 = vld [vmem:[#allocation5 + $0x5c0] sm:$0xff]  ;;  %v5383_v3 = vcombine.high %v179_v0, %v183_v1  ;;  %v5382_v5 = vcombine.low %v179_v0, %v183_v1  ;;  %2574 = vmatprep.mubr.bf16.mxu1 %v6745_v59  ;;  %s6634_s1 = scalar_lea.vmem %s5306_s6, 256  ;;  %p6639_p8 = scmp.lt.s32.totalorder %s5306_s6, %s5306_s6 }
  0x5e   :  { %v311_v4 = vld [vmem:[#allocation5 + $0x5e0] sm:$0xff]  ;;  %p6635_p7 = scmp.ne.s32.totalorder %s5306_s6, %s6634_s1  ;;  %p6640_p9 = scmp.lt.s32.totalorder %s6634_s1, %s6634_s1 }
  0x5f   :  { %v171_v6 = vld [vmem:[#allocation5 + $0x180] sm:$0xff]  ;;  %v5511_v8 = vcombine.high %v307_v2, %v311_v4  ;;  %v5510_v9 = vcombine.low %v307_v2, %v311_v4  ;;  %2499 = vmatprep.subr.bf16.mxu0 %v5383_v3 }
  0x60   :  { %v175_v7 = vld [vmem:[#allocation5 + $0x1a0] sm:$0xff]  ;;  %2500 = vmatpush1.bf16.msra.mxu0 %v5382_v5  ;;  %p6641_p10 = por %p6640_p9, %p6639_p8 }
  0x61   :  { %v5375_v10 = vcombine.high %v171_v6, %v175_v7  ;;  %v299_v11 = vld [vmem:[#allocation5 + $0x580] sm:$0xff]  ;;  %2542 = vmatprep.subr.bf16.mxu1 %v5511_v8  ;;  %v5374_v18 = vcombine.low %v171_v6, %v175_v7 }
  0x62   :  { %v303_v12 = vld [vmem:[#allocation5 + $0x5a0] sm:$0xff]  ;;  %2543 = vmatpush1.bf16.msra.mxu1 %v5510_v9  ;;  %p6642_p11 = pnand %p6641_p10, %p6635_p7 }
  0x63   :  { %v163_v13 = vld [vmem:[#allocation5 + $0x140] sm:$0xff]  ;;  %v5503_v14 = vcombine.high %v299_v11, %v303_v12  ;;  %2501 = vmatprep.subr.bf16.mxu0 %v5375_v10  ;;  %v5502_v19 = vcombine.low %v299_v11, %v303_v12 }
  0x64   :  { %v167_v15 = vld [vmem:[#allocation5 + $0x160] sm:$0xff]  ;;  %2502 = vmatpush1.bf16.msra.mxu0 %v5374_v18 }
  0x65   :  { %v291_v16 = vld [vmem:[#allocation5 + $0x540] sm:$0xff]  ;;  %v5367_v20 = vcombine.high %v163_v13, %v167_v15  ;;  %2544 = vmatprep.subr.bf16.mxu1 %v5503_v14  ;;  %v5366_v26 = vcombine.low %v163_v13, %v167_v15 }
  0x66   :  { %v295_v17 = vld [vmem:[#allocation5 + $0x560] sm:$0xff]  ;;  %2545 = vmatpush1.bf16.msra.mxu1 %v5502_v19 }
  0x67   :  { %v5495_v21 = vcombine.high %v291_v16, %v295_v17  ;;  %v155_v22 = vld [vmem:[#allocation5 + $0x100] sm:$0xff]  ;;  %2503 = vmatprep.subr.bf16.mxu0 %v5367_v20  ;;  %v5494_v27 = vcombine.low %v291_v16, %v295_v17 }
  0x68   :  { %v159_v23 = vld [vmem:[#allocation5 + $0x120] sm:$0xff]  ;;  %2504 = vmatpush1.bf16.msra.mxu0 %v5366_v26 }
  0x69   :  { %v283_v24 = vld [vmem:[#allocation5 + $0x500] sm:$0xff]  ;;  %v5359_v28 = vcombine.high %v155_v22, %v159_v23  ;;  %2546 = vmatprep.subr.bf16.mxu1 %v5495_v21  ;;  %v5358_v34 = vcombine.low %v155_v22, %v159_v23 }
  0x6a   :  { %v287_v25 = vld [vmem:[#allocation5 + $0x520] sm:$0xff]  ;;  %2547 = vmatpush1.bf16.msra.mxu1 %v5494_v27 }
  0x6b   :  { %v5487_v29 = vcombine.high %v283_v24, %v287_v25  ;;  %v147_v30 = vld [vmem:[#allocation5 + $0xc0] sm:$0xff]  ;;  %2505 = vmatprep.subr.bf16.mxu0 %v5359_v28  ;;  %v5486_v35 = vcombine.low %v283_v24, %v287_v25 }
  0x6c   :  { %v151_v31 = vld [vmem:[#allocation5 + $0xe0] sm:$0xff]  ;;  %2506 = vmatpush1.bf16.msra.mxu0 %v5358_v34 }
  0x6d   :  { %v275_v32 = vld [vmem:[#allocation5 + $0x4c0] sm:$0xff]  ;;  %v5351_v36 = vcombine.high %v147_v30, %v151_v31  ;;  %2548 = vmatprep.subr.bf16.mxu1 %v5487_v29  ;;  %v5350_v42 = vcombine.low %v147_v30, %v151_v31 }
  0x6e   :  { %v279_v33 = vld [vmem:[#allocation5 + $0x4e0] sm:$0xff]  ;;  %2549 = vmatpush1.bf16.msra.mxu1 %v5486_v35 }
  0x6f   :  { %v5479_v37 = vcombine.high %v275_v32, %v279_v33  ;;  %v139_v38 = vld [vmem:[#allocation5 + $0x80] sm:$0xff]  ;;  %2507 = vmatprep.subr.bf16.mxu0 %v5351_v36  ;;  %v5478_v43 = vcombine.low %v275_v32, %v279_v33 }
  0x70   :  { %v143_v39 = vld [vmem:[#allocation5 + $0xa0] sm:$0xff]  ;;  %2508 = vmatpush1.bf16.msra.mxu0 %v5350_v42 }
  0x71   :  { %v267_v40 = vld [vmem:[#allocation5 + $0x480] sm:$0xff]  ;;  %v5343_v44 = vcombine.high %v139_v38, %v143_v39  ;;  %2550 = vmatprep.subr.bf16.mxu1 %v5479_v37  ;;  %v5342_v50 = vcombine.low %v139_v38, %v143_v39 }
  0x72   :  { %v271_v41 = vld [vmem:[#allocation5 + $0x4a0] sm:$0xff]  ;;  %2551 = vmatpush1.bf16.msra.mxu1 %v5478_v43 }
  0x73   :  { %v5471_v45 = vcombine.high %v267_v40, %v271_v41  ;;  %v131_v46 = vld [vmem:[#allocation5 + $0x40] sm:$0xff]  ;;  %2509 = vmatprep.subr.bf16.mxu0 %v5343_v44  ;;  %v5470_v52 = vcombine.low %v267_v40, %v271_v41 }
  0x74   :  { %v135_v47 = vld [vmem:[#allocation5 + $0x60] sm:$0xff]  ;;  %2510 = vmatpush1.bf16.msra.mxu0 %v5342_v50 }
  0x75   :  { %v259_v48 = vld [vmem:[#allocation5 + $0x440] sm:$0xff]  ;;  %v5335_v53 = vcombine.high %v131_v46, %v135_v47  ;;  %2552 = vmatprep.subr.bf16.mxu1 %v5471_v45  ;;  %v5334_v60 = vcombine.low %v131_v46, %v135_v47 }
  0x76   :  { %v263_v49 = vld [vmem:[#allocation5 + $0x460] sm:$0xff]  ;;  %2553 = vmatpush1.bf16.msra.mxu1 %v5470_v52 }
  0x77   :  { %v123_v51 = vld [vmem:[#allocation5] sm:$0xff]  ;;  %v5463_v55 = vcombine.high %v259_v48, %v263_v49  ;;  %2511 = vmatprep.subr.bf16.mxu0 %v5335_v53  ;;  %v5462_v61 = vcombine.low %v259_v48, %v263_v49 }
  0x78   :  { %v127_v54 = vld [vmem:[#allocation5 + $0x20] sm:$0xff]  ;;  %2512 = vmatpush1.bf16.msra.mxu0 %v5334_v60 }
  0x79   :  { %v251_v57 = vld [vmem:[#allocation5 + $0x400] sm:$0xff]  ;;  %v5327_v62 = vcombine.high %v123_v51, %v127_v54  ;;  %2554 = vmatprep.subr.bf16.mxu1 %v5463_v55  ;;  %v5326_v4 = vcombine.low %v123_v51, %v127_v54 }
  0x7a   :  { %v255_v58 = vld [vmem:[#allocation5 + $0x420] sm:$0xff]  ;;  %2555 = vmatpush1.bf16.msra.mxu1 %v5462_v61 }
  0x7b   :  { %v5455_v63 = vcombine.high %v251_v57, %v255_v58  ;;  %v243_v0 = vld [vmem:[#allocation5 + $0x3c0] sm:$0xff]  ;;  %2513 = vmatprep.subr.bf16.mxu0 %v5327_v62  ;;  %v5454_v5 = vcombine.low %v251_v57, %v255_v58 }
  0x7c   :  { %v247_v1 = vld [vmem:[#allocation5 + $0x3e0] sm:$0xff]  ;;  %2514 = vmatpush1.bf16.msra.mxu0 %v5326_v4  ;;  %v180_v4 = vld [vmem:[#allocation5 + $0x1c8] sm:$0xff] }
  0x7d   :  { %v371_v2 = vld [vmem:[#allocation5 + $0x7c0] sm:$0xff]  ;;  %v5447_v6 = vcombine.high %v243_v0, %v247_v1  ;;  %2556 = vmatprep.subr.bf16.mxu1 %v5455_v63  ;;  %v5446_v12 = vcombine.low %v243_v0, %v247_v1 }
  0x7e   :  { %v375_v3 = vld [vmem:[#allocation5 + $0x7e0] sm:$0xff]  ;;  %2557 = vmatpush1.bf16.msra.mxu1 %v5454_v5  ;;  %v184_v5 = vld [vmem:[#allocation5 + $0x1e8] sm:$0xff] }
  0x7f   :  { %v5575_v7 = vcombine.high %v371_v2, %v375_v3  ;;  %v235_v8 = vld [vmem:[#allocation5 + $0x380] sm:$0xff]  ;;  %2515 = vmatprep.subr.bf16.mxu0 %v5447_v6  ;;  %v5574_v13 = vcombine.low %v371_v2, %v375_v3 }
  0x80   :  { %v239_v9 = vld [vmem:[#allocation5 + $0x3a0] sm:$0xff]  ;;  %2516 = vmatpush2.bf16.msra.mxu0 %v5446_v12  ;;  %v6749_v12 = vld [vmem:[#allocation2] ss:$24 sps:$4 sm:$0xff]  }
  0x81   :  { %v363_v10 = vld [vmem:[#allocation5 + $0x780] sm:$0xff]  ;;  %v5439_v14 = vcombine.high %v235_v8, %v239_v9  ;;  %2558 = vmatprep.subr.bf16.mxu1 %v5575_v7  ;;  %v5438_v20 = vcombine.low %v235_v8, %v239_v9  ;;  %v5385_v9 = vcombine.high %v180_v4, %v184_v5 }
  0x82   :  { %v367_v11 = vld [vmem:[#allocation5 + $0x7a0] sm:$0xff]  ;;  %2559 = vmatpush2.bf16.msra.mxu1 %v5574_v13  ;;  %v172_v13 = vld [vmem:[#allocation5 + $0x188] sm:$0xff] }
  0x83   :  { %v5567_v15 = vcombine.high %v363_v10, %v367_v11  ;;  %v227_v16 = vld [vmem:[#allocation5 + $0x340] sm:$0xff]  ;;  %2517 = vmatprep.subr.bf16.mxu0 %v5439_v14  ;;  %v5566_v21 = vcombine.low %v363_v10, %v367_v11  ;;  %v176_v14 = vld [vmem:[#allocation5 + $0x1a8] sm:$0xff] }
  0x84   :  { %v231_v17 = vld [vmem:[#allocation5 + $0x360] sm:$0xff]  ;;  %2518 = vmatpush2.bf16.msra.mxu0 %v5438_v20 }
  0x85   :  { %v355_v18 = vld [vmem:[#allocation5 + $0x740] sm:$0xff]  ;;  %v5431_v22 = vcombine.high %v227_v16, %v231_v17  ;;  %2560 = vmatprep.subr.bf16.mxu1 %v5567_v15  ;;  %v5430_v28 = vcombine.low %v227_v16, %v231_v17  ;;  %v6066_v15 = vld [vmem:[#allocation2 + $0x8] ss:$24 sps:$4 sm:$0xff]   ;;  %v5384_v17 = vcombine.low %v180_v4, %v184_v5 }
  0x86   :  { %v359_v19 = vld [vmem:[#allocation5 + $0x760] sm:$0xff]  ;;  %2561 = vmatpush2.bf16.msra.mxu1 %v5566_v21 }
  0x87   :  { %v5559_v23 = vcombine.high %v355_v18, %v359_v19  ;;  %v219_v24 = vld [vmem:[#allocation5 + $0x300] sm:$0xff]  ;;  %2519 = vmatprep.subr.bf16.mxu0 %v5431_v22  ;;  %v5558_v29 = vcombine.low %v355_v18, %v359_v19  ;;  %v5377_v19 = vcombine.high %v172_v13, %v176_v14 }
  0x88   :  { %v223_v25 = vld [vmem:[#allocation5 + $0x320] sm:$0xff]  ;;  %2520 = vmatpush2.bf16.msra.mxu0 %v5430_v28 }
  0x89   :  { %v347_v26 = vld [vmem:[#allocation5 + $0x700] sm:$0xff]  ;;  %v5423_v30 = vcombine.high %v219_v24, %v223_v25  ;;  %2562 = vmatprep.subr.bf16.mxu1 %v5559_v23  ;;  %v5422_v36 = vcombine.low %v219_v24, %v223_v25  ;;  %v164_v23 = vld [vmem:[#allocation5 + $0x148] sm:$0xff] }
  0x8a   :  { %v351_v27 = vld [vmem:[#allocation5 + $0x720] sm:$0xff]  ;;  %2563 = vmatpush2.bf16.msra.mxu1 %v5558_v29  ;;  %v168_v24 = vld [vmem:[#allocation5 + $0x168] sm:$0xff] }
  0x8b   :  { %v5551_v31 = vcombine.high %v347_v26, %v351_v27  ;;  %v211_v32 = vld [vmem:[#allocation5 + $0x2c0] sm:$0xff]  ;;  %2521 = vmatprep.subr.bf16.mxu0 %v5423_v30  ;;  %v5550_v37 = vcombine.low %v347_v26, %v351_v27  ;;  %v5376_v26 = vcombine.low %v172_v13, %v176_v14  ;;  %v5369_v30 = vcombine.high %v164_v23, %v168_v24 }
  0x8c   :  { %v215_v33 = vld [vmem:[#allocation5 + $0x2e0] sm:$0xff]  ;;  %2522 = vmatpush2.bf16.msra.mxu0 %v5422_v36 }
  0x8d   :  { %v339_v34 = vld [vmem:[#allocation5 + $0x6c0] sm:$0xff]  ;;  %v5415_v38 = vcombine.high %v211_v32, %v215_v33  ;;  %2564 = vmatprep.subr.bf16.mxu1 %v5551_v31  ;;  %v5414_v44 = vcombine.low %v211_v32, %v215_v33  ;;  %v156_v31 = vld [vmem:[#allocation5 + $0x108] sm:$0xff] }
  0x8e   :  { %v343_v35 = vld [vmem:[#allocation5 + $0x6e0] sm:$0xff]  ;;  %2565 = vmatpush2.bf16.msra.mxu1 %v5550_v37  ;;  %v160_v32 = vld [vmem:[#allocation5 + $0x128] sm:$0xff] }
  0x8f   :  { %v5543_v39 = vcombine.high %v339_v34, %v343_v35  ;;  %v203_v40 = vld [vmem:[#allocation5 + $0x280] sm:$0xff]  ;;  %2523 = vmatprep.subr.bf16.mxu0 %v5415_v38  ;;  %v5542_v45 = vcombine.low %v339_v34, %v343_v35  ;;  %v5368_v34 = vcombine.low %v164_v23, %v168_v24  ;;  %v148_v38 = vld [vmem:[#allocation5 + $0xc8] sm:$0xff] }
  0x90   :  { %v207_v41 = vld [vmem:[#allocation5 + $0x2a0] sm:$0xff]  ;;  %2524 = vmatpush2.bf16.msra.mxu0 %v5414_v44 }
  0x91   :  { %v331_v42 = vld [vmem:[#allocation5 + $0x680] sm:$0xff]  ;;  %v5407_v46 = vcombine.high %v203_v40, %v207_v41  ;;  %2566 = vmatprep.subr.bf16.mxu1 %v5543_v39  ;;  %v5406_v52 = vcombine.low %v203_v40, %v207_v41  ;;  %v5361_v39 = vcombine.high %v156_v31, %v160_v32  ;;  %v152_v40 = vld [vmem:[#allocation5 + $0xe8] sm:$0xff] }
  0x92   :  { %v335_v43 = vld [vmem:[#allocation5 + $0x6a0] sm:$0xff]  ;;  %2567 = vmatpush2.bf16.msra.mxu1 %v5542_v45  ;;  %v140_v45 = vld [vmem:[#allocation5 + $0x88] sm:$0xff] }
  0x93   :  { %v5535_v47 = vcombine.high %v331_v42, %v335_v43  ;;  %v195_v48 = vld [vmem:[#allocation5 + $0x240] sm:$0xff]  ;;  %2525 = vmatprep.subr.bf16.mxu0 %v5407_v46  ;;  %v5534_v53 = vcombine.low %v331_v42, %v335_v43  ;;  %v5360_v42 = vcombine.low %v156_v31, %v160_v32  ;;  %v5353_v46 = vcombine.high %v148_v38, %v152_v40 }
  0x94   :  { %v199_v49 = vld [vmem:[#allocation5 + $0x260] sm:$0xff]  ;;  %2526 = vmatpush2.bf16.msra.mxu0 %v5406_v52 }
  0x95   :  { %v323_v50 = vld [vmem:[#allocation5 + $0x640] sm:$0xff]  ;;  %v5399_v54 = vcombine.high %v195_v48, %v199_v49  ;;  %2568 = vmatprep.subr.bf16.mxu1 %v5535_v47  ;;  %v5398_v62 = vcombine.low %v195_v48, %v199_v49  ;;  %v144_v47 = vld [vmem:[#allocation5 + $0xa8] sm:$0xff]  ;;  %v5352_v49 = vcombine.low %v148_v38, %v152_v40 }
  0x96   :  { %v327_v51 = vld [vmem:[#allocation5 + $0x660] sm:$0xff]  ;;  %2569 = vmatpush2.bf16.msra.mxu1 %v5534_v53  ;;  %v132_v53 = vld [vmem:[#allocation5 + $0x48] sm:$0xff] }
  0x97   :  { %v5527_v55 = vcombine.high %v323_v50, %v327_v51  ;;  %v187_v57 = vld [vmem:[#allocation5 + $0x200] sm:$0xff]  ;;  %2527 = vmatprep.subr.bf16.mxu0 %v5399_v54  ;;  %v5526_v63 = vcombine.low %v323_v50, %v327_v51  ;;  %v5345_v54 = vcombine.high %v140_v45, %v144_v47 }
  0x98   :  { %v191_v58 = vld [vmem:[#allocation5 + $0x220] sm:$0xff]  ;;  %2528 = vmatpush2.bf16.msra.mxu0 %v5398_v62 }
  0x99   :  { %v315_v60 = vld [vmem:[#allocation5 + $0x600] sm:$0xff]  ;;  %v5391_v0 = vcombine.high %v187_v57, %v191_v58  ;;  %2570 = vmatprep.subr.bf16.mxu1 %v5527_v55  ;;  %v5390_v6 = vcombine.low %v187_v57, %v191_v58  ;;  %v136_v55 = vld [vmem:[#allocation5 + $0x68] sm:$0xff]  ;;  %v5344_v58 = vcombine.low %v140_v45, %v144_v47 }
  0x9a   :  { %v319_v61 = vld [vmem:[#allocation5 + $0x620] sm:$0xff]  ;;  %2571 = vmatpush2.bf16.msra.mxu1 %v5526_v63  ;;  %v124_v63 = vld [vmem:[#allocation5 + $0x8] sm:$0xff] }
  0x9b   :  { %v5519_v1 = vcombine.high %v315_v60, %v319_v61  ;;  %v435_v2 = vld [vmem:[#allocation5 + $0x9c0] sm:$0xff]  ;;  %2529 = vmatprep.subr.bf16.mxu0 %v5391_v0  ;;  %v5518_v7 = vcombine.low %v315_v60, %v319_v61  ;;  %v5337_v0 = vcombine.high %v132_v53, %v136_v55 }
  0x9c   :  { %v439_v3 = vld [vmem:[#allocation5 + $0x9e0] sm:$0xff]  ;;  %2530 = vmatpush2.bf16.msra.mxu0 %v5390_v6 }
  0x9d   :  { %v5639_v8 = vcombine.high %v435_v2, %v439_v3  ;;  %2572 = vmatprep.subr.bf16.mxu1 %v5519_v1  ;;  %v427_v10 = vld [vmem:[#allocation5 + $0x980] sm:$0xff]  ;;  %v5638_v16 = vcombine.low %v435_v2, %v439_v3  ;;  %v128_v1 = vld [vmem:[#allocation5 + $0x28] sm:$0xff]  ;;  %v5336_v3 = vcombine.low %v132_v53, %v136_v55 }
  0x9e   :  { %v431_v11 = vld [vmem:[#allocation5 + $0x9a0] sm:$0xff]  ;;  %2573 = vmatpush2.bf16.msra.mxu1 %v5518_v7  ;;  %v244_v7 = vld [vmem:[#allocation5 + $0x3c8] sm:$0xff] }
  0x9f   :  { %2585 = vmatprep.subr.bf16.mxu0 %v5639_v8  ;;  %v5631_v18 = vcombine.high %v427_v10, %v431_v11  ;;  %2628 = vmatprep.subr.bf16.mxu1 %v5385_v9  ;;  %v419_v20 = vld [vmem:[#allocation5 + $0x940] sm:$0xff]  ;;  %v5630_v25 = vcombine.low %v427_v10, %v431_v11  ;;  %v5329_v8 = vcombine.high %v124_v63, %v128_v1  ;;  %v248_v9 = vld [vmem:[#allocation5 + $0x3e8] sm:$0xff] }
  0xa0   :  { %v423_v21 = vld [vmem:[#allocation5 + $0x960] sm:$0xff]  ;;  %2532 = vmatmul.mubr.bf16.vlgmr.msra.gmra.mxu0 %v6749_v12  ;;  %v5328_v11 = vcombine.low %v124_v63, %v128_v1 }
  0xa1   :  { %v6751_v22 = vld [vmem:[#allocation2 + $0x14] ss:$24 sps:$4 sm:$0xff]   ;;  %2575 = vmatmul.mubr.bf16.vlgmr.msra.gmra.mxu1 %v6066_v15  ;;  %2586 = vmatpush1.bf16.msra.mxu0 %v5638_v16  ;;  %v5623_v27 = vcombine.high %v419_v20, %v423_v21  ;;  %v5622_v33 = vcombine.low %v419_v20, %v423_v21  ;;  %v236_v16 = vld [vmem:[#allocation5 + $0x388] sm:$0xff]  ;;  %v5448_v20 = vcombine.low %v244_v7, %v248_v9 }
  0xa2   :  { %2629 = vmatpush1.bf16.msra.mxu1 %v5384_v17  ;;  %2587 = vmatprep.subr.bf16.mxu0 %v5631_v18  ;;  %v411_v28 = vld [vmem:[#allocation5 + $0x900] sm:$0xff]  ;;  %v5449_v17 = vcombine.high %v244_v7, %v248_v9  ;;  %v240_v18 = vld [vmem:[#allocation5 + $0x3a8] sm:$0xff] }
  0xa3   :  { %v415_v29 = vld [vmem:[#allocation5 + $0x920] sm:$0xff]  ;;  %2630 = vmatprep.subr.bf16.mxu1 %v5377_v19  ;;  %2617 = vmatprep.mubr.bf16.mxu0 %v6751_v22  ;;  %v312_v9 = vld [vmem:[#allocation5 + $0x5e8] sm:$0xff] }
  0xa4   :  { %2660 = vmatprep.mubr.bf16.mxu1 %v6743_v56  ;;  %v5615_v35 = vcombine.high %v411_v28, %v415_v29  ;;  %v403_v36 = vld [vmem:[#allocation5 + $0x8c0] sm:$0xff]  ;;  %v5614_v41 = vcombine.low %v411_v28, %v415_v29  ;;  %v5440_v29 = vcombine.low %v236_v16, %v240_v18 }
  0xa5   :  { %2588 = vmatpush1.bf16.msra.mxu0 %v5630_v25  ;;  %v407_v37 = vld [vmem:[#allocation5 + $0x8e0] sm:$0xff]  ;;  %v228_v25 = vld [vmem:[#allocation5 + $0x348] sm:$0xff] }
  0xa6   :  { %2631 = vmatpush1.bf16.msra.mxu1 %v5376_v26  ;;  %2589 = vmatprep.subr.bf16.mxu0 %v5623_v27  ;;  %v5607_v43 = vcombine.high %v403_v36, %v407_v37  ;;  %v395_v44 = vld [vmem:[#allocation5 + $0x880] sm:$0xff]  ;;  %v5606_v48 = vcombine.low %v403_v36, %v407_v37  ;;  %v5441_v26 = vcombine.high %v236_v16, %v240_v18  ;;  %v232_v27 = vld [vmem:[#allocation5 + $0x368] sm:$0xff] }
  0xa7   :  { %2632 = vmatprep.subr.bf16.mxu1 %v5369_v30  ;;  %v399_v56 = vld [vmem:[#allocation5 + $0x8a0] sm:$0xff]  ;;  %v5432_v37 = vcombine.low %v228_v25, %v232_v27  ;;  %v300_v18 = vld [vmem:[#allocation5 + $0x588] sm:$0xff] }
  0xa8   :  { %v5599_v50 = vcombine.high %v395_v44, %v399_v56  ;;  %v387_v51 = vld [vmem:[#allocation5 + $0x840] sm:$0xff]  ;;  %v5598_v57 = vcombine.low %v395_v44, %v399_v56 }
  0xa9   :  { %2590 = vmatpush1.bf16.msra.mxu0 %v5622_v33  ;;  %v391_v52 = vld [vmem:[#allocation5 + $0x860] sm:$0xff]  ;;  %v220_v33 = vld [vmem:[#allocation5 + $0x308] sm:$0xff] }
  0xaa   :  { %2633 = vmatpush1.bf16.msra.mxu1 %v5368_v34  ;;  %2591 = vmatprep.subr.bf16.mxu0 %v5615_v35  ;;  %v5591_v60 = vcombine.high %v387_v51, %v391_v52  ;;  %v379_v61 = vld [vmem:[#allocation5 + $0x800] sm:$0xff]  ;;  %v5590_v2 = vcombine.low %v387_v51, %v391_v52  ;;  %v5433_v34 = vcombine.high %v228_v25, %v232_v27  ;;  %v224_v35 = vld [vmem:[#allocation5 + $0x328] sm:$0xff] }
  0xab   :  { %2634 = vmatprep.subr.bf16.mxu1 %v5361_v39  ;;  %v383_v62 = vld [vmem:[#allocation5 + $0x820] sm:$0xff]  ;;  %v5424_v56 = vcombine.low %v220_v33, %v224_v35  ;;  %v292_v27 = vld [vmem:[#allocation5 + $0x548] sm:$0xff] }
  0xac   :  { %v5583_v4 = vcombine.high %v379_v61, %v383_v62  ;;  %v499_v5 = vld [vmem:[#allocation5 + $0xbc0] sm:$0xff]  ;;  %v5582_v10 = vcombine.low %v379_v61, %v383_v62 }
  0xad   :  { %2592 = vmatpush1.bf16.msra.mxu0 %v5614_v41  ;;  %v503_v6 = vld [vmem:[#allocation5 + $0xbe0] sm:$0xff]  ;;  %v212_v41 = vld [vmem:[#allocation5 + $0x2c8] sm:$0xff] }
  0xae   :  { %2635 = vmatpush1.bf16.msra.mxu1 %v5360_v42  ;;  %2593 = vmatprep.subr.bf16.mxu0 %v5607_v43  ;;  %v5703_v13 = vcombine.high %v499_v5, %v503_v6  ;;  %v491_v14 = vld [vmem:[#allocation5 + $0xb80] sm:$0xff]  ;;  %v5702_v19 = vcombine.low %v499_v5, %v503_v6  ;;  %v5425_v42 = vcombine.high %v220_v33, %v224_v35  ;;  %v216_v43 = vld [vmem:[#allocation5 + $0x2e8] sm:$0xff] }
  0xaf   :  { %2636 = vmatprep.subr.bf16.mxu1 %v5353_v46  ;;  %v495_v15 = vld [vmem:[#allocation5 + $0xba0] sm:$0xff]  ;;  %v5416_v52 = vcombine.low %v212_v41, %v216_v43  ;;  %v284_v35 = vld [vmem:[#allocation5 + $0x508] sm:$0xff] }
  0xb0   :  { %v5695_v21 = vcombine.high %v491_v14, %v495_v15  ;;  %v483_v23 = vld [vmem:[#allocation5 + $0xb40] sm:$0xff]  ;;  %v5694_v28 = vcombine.low %v491_v14, %v495_v15 }
  0xb1   :  { %2594 = vmatpush1.bf16.msra.mxu0 %v5606_v48  ;;  %v487_v24 = vld [vmem:[#allocation5 + $0xb60] sm:$0xff]  ;;  %v204_v48 = vld [vmem:[#allocation5 + $0x288] sm:$0xff] }
  0xb2   :  { %2637 = vmatpush1.bf16.msra.mxu1 %v5352_v49  ;;  %2595 = vmatprep.subr.bf16.mxu0 %v5599_v50  ;;  %v5687_v30 = vcombine.high %v483_v23, %v487_v24  ;;  %v475_v31 = vld [vmem:[#allocation5 + $0xb00] sm:$0xff]  ;;  %v5686_v36 = vcombine.low %v483_v23, %v487_v24  ;;  %v5417_v49 = vcombine.high %v212_v41, %v216_v43  ;;  %v208_v50 = vld [vmem:[#allocation5 + $0x2a8] sm:$0xff] }
  0xb3   :  { %2638 = vmatprep.subr.bf16.mxu1 %v5345_v54  ;;  %v479_v32 = vld [vmem:[#allocation5 + $0xb20] sm:$0xff]  ;;  %v5408_v62 = vcombine.low %v204_v48, %v208_v50  ;;  %v432_v23 = vld [vmem:[#allocation5 + $0x9a8] sm:$0xff] }
  0xb4   :  { %v5679_v38 = vcombine.high %v475_v31, %v479_v32  ;;  %v467_v39 = vld [vmem:[#allocation5 + $0xac0] sm:$0xff]  ;;  %v5678_v44 = vcombine.low %v475_v31, %v479_v32  ;;  %v424_v31 = vld [vmem:[#allocation5 + $0x968] sm:$0xff] }
  0xb5   :  { %2596 = vmatpush1.bf16.msra.mxu0 %v5598_v57  ;;  %v471_v40 = vld [vmem:[#allocation5 + $0xae0] sm:$0xff]  ;;  %v196_v57 = vld [vmem:[#allocation5 + $0x248] sm:$0xff] }
  0xb6   :  { %2639 = vmatpush1.bf16.msra.mxu1 %v5344_v58  ;;  %2597 = vmatprep.subr.bf16.mxu0 %v5591_v60  ;;  %v5671_v45 = vcombine.high %v467_v39, %v471_v40  ;;  %v459_v46 = vld [vmem:[#allocation5 + $0xa80] sm:$0xff]  ;;  %v5670_v51 = vcombine.low %v467_v39, %v471_v40  ;;  %v5409_v58 = vcombine.high %v204_v48, %v208_v50  ;;  %v200_v60 = vld [vmem:[#allocation5 + $0x268] sm:$0xff] }
  0xb7   :  { %2640 = vmatprep.subr.bf16.mxu1 %v5337_v0  ;;  %v463_v47 = vld [vmem:[#allocation5 + $0xaa0] sm:$0xff]  ;;  %v5400_v6 = vcombine.low %v196_v57, %v200_v60  ;;  %v416_v39 = vld [vmem:[#allocation5 + $0x928] sm:$0xff] }
  0xb8   :  { %v5663_v53 = vcombine.high %v459_v46, %v463_v47  ;;  %v451_v54 = vld [vmem:[#allocation5 + $0xa40] sm:$0xff]  ;;  %v5662_v61 = vcombine.low %v459_v46, %v463_v47  ;;  %v280_v43 = vld [vmem:[#allocation5 + $0x4e8] sm:$0xff] }
  0xb9   :  { %2598 = vmatpush1.bf16.msra.mxu0 %v5590_v2  ;;  %v455_v55 = vld [vmem:[#allocation5 + $0xa60] sm:$0xff]  ;;  %v188_v2 = vld [vmem:[#allocation5 + $0x208] sm:$0xff] }
  0xba   :  { %2641 = vmatpush1.bf16.msra.mxu1 %v5336_v3  ;;  %2599 = vmatprep.subr.bf16.mxu0 %v5583_v4  ;;  %v5655_v63 = vcombine.high %v451_v54, %v455_v55  ;;  %v443_v0 = vld [vmem:[#allocation5 + $0xa00] sm:$0xff]  ;;  %v5401_v3 = vcombine.high %v196_v57, %v200_v60  ;;  %v192_v4 = vld [vmem:[#allocation5 + $0x228] sm:$0xff]  ;;  %v5654_v5 = vcombine.low %v451_v54, %v455_v55 }
  0xbb   :  { %2642 = vmatprep.subr.bf16.mxu1 %v5329_v8  ;;  %v447_v1 = vld [vmem:[#allocation5 + $0xa20] sm:$0xff]  ;;  %v308_v8 = vld [vmem:[#allocation5 + $0x5c8] sm:$0xff]  ;;  %v5392_v15 = vcombine.low %v188_v2, %v192_v4 }
  0xbc   :  { %v5647_v7 = vcombine.high %v443_v0, %v447_v1  ;;  %v5646_v14 = vcombine.low %v443_v0, %v447_v1  ;;  %v6756_v16 = vld [vmem:[#allocation2 + $0x10] ss:$24 sps:$4 sm:$0xff]   ;;  %v5512_v24 = vcombine.low %v308_v8, %v312_v9  ;;  %v268_v48 = vld [vmem:[#allocation5 + $0x488] sm:$0xff] }
  0xbd   :  { %2600 = vmatpush1.bf16.msra.mxu0 %v5582_v10  ;;  %v436_v10 = vld [vmem:[#allocation5 + $0x9c8] sm:$0xff] }
  0xbe   :  { %2643 = vmatpush1.bf16.msra.mxu1 %v5328_v11  ;;  %2601 = vmatprep.subr.bf16.mxu0 %v5703_v13  ;;  %v5393_v11 = vcombine.high %v188_v2, %v192_v4  ;;  %v440_v13 = vld [vmem:[#allocation5 + $0x9e8] sm:$0xff] }
  0xbf   :  { %2644 = vmatprep.subr.bf16.mxu1 %v5449_v17  ;;  %v5513_v17 = vcombine.high %v308_v8, %v312_v9  ;;  %v5640_v25 = vcombine.low %v436_v10, %v440_v13  ;;  %v260_v55 = vld [vmem:[#allocation5 + $0x448] sm:$0xff] }
  0xc0   :  { %v264_v57 = vld [vmem:[#allocation5 + $0x468] sm:$0xff] }
  0xc1   :  { %2602 = vmatpush2.bf16.msra.mxu0 %v5702_v19  ;;  %v304_v19 = vld [vmem:[#allocation5 + $0x5a8] sm:$0xff]  ;;  %v5465_v0 = vcombine.high %v260_v55, %v264_v57 }
  0xc2   :  { %2645 = vmatpush2.bf16.msra.mxu1 %v5448_v20  ;;  %2603 = vmatprep.subr.bf16.mxu0 %v5695_v21  ;;  %v428_v20 = vld [vmem:[#allocation5 + $0x988] sm:$0xff]  ;;  %v5641_v21 = vcombine.high %v436_v10, %v440_v13  ;;  %v5504_v32 = vcombine.low %v300_v18, %v304_v19 }
  0xc3   :  { %2646 = vmatprep.subr.bf16.mxu1 %v5441_v26  ;;  %v5505_v26 = vcombine.high %v300_v18, %v304_v19  ;;  %v5632_v33 = vcombine.low %v428_v20, %v432_v23  ;;  %v252_v1 = vld [vmem:[#allocation5 + $0x408] sm:$0xff] }
  0xc4   :  { %v256_v2 = vld [vmem:[#allocation5 + $0x428] sm:$0xff] }
  0xc5   :  { %2604 = vmatpush2.bf16.msra.mxu0 %v5694_v28  ;;  %v296_v28 = vld [vmem:[#allocation5 + $0x568] sm:$0xff]  ;;  %v5457_v8 = vcombine.high %v252_v1, %v256_v2 }
  0xc6   :  { %2647 = vmatpush2.bf16.msra.mxu1 %v5440_v29  ;;  %2605 = vmatprep.subr.bf16.mxu0 %v5687_v30  ;;  %v5633_v29 = vcombine.high %v428_v20, %v432_v23  ;;  %v420_v30 = vld [vmem:[#allocation5 + $0x948] sm:$0xff]  ;;  %v5496_v40 = vcombine.low %v292_v27, %v296_v28 }
  0xc7   :  { %2648 = vmatprep.subr.bf16.mxu1 %v5433_v34  ;;  %v5497_v34 = vcombine.high %v292_v27, %v296_v28  ;;  %v372_v9 = vld [vmem:[#allocation5 + $0x7c8] sm:$0xff] }
  0xc8   :  { %v376_v10 = vld [vmem:[#allocation5 + $0x7e8] sm:$0xff] }
  0xc9   :  { %2606 = vmatpush2.bf16.msra.mxu0 %v5686_v36  ;;  %v288_v36 = vld [vmem:[#allocation5 + $0x528] sm:$0xff]  ;;  %v5577_v18 = vcombine.high %v372_v9, %v376_v10 }
  0xca   :  { %2649 = vmatpush2.bf16.msra.mxu1 %v5432_v37  ;;  %2607 = vmatprep.subr.bf16.mxu0 %v5679_v38  ;;  %v412_v37 = vld [vmem:[#allocation5 + $0x908] sm:$0xff]  ;;  %v5625_v38 = vcombine.high %v420_v30, %v424_v31  ;;  %v5489_v41 = vcombine.high %v284_v35, %v288_v36  ;;  %v5488_v46 = vcombine.low %v284_v35, %v288_v36 }
  0xcb   :  { %2650 = vmatprep.subr.bf16.mxu1 %v5425_v42  ;;  %v276_v42 = vld [vmem:[#allocation5 + $0x4c8] sm:$0xff]  ;;  %v5616_v47 = vcombine.low %v412_v37, %v416_v39 }
  0xcc   :  { %v364_v19 = vld [vmem:[#allocation5 + $0x788] sm:$0xff] }
  0xcd   :  { %2608 = vmatpush2.bf16.msra.mxu0 %v5678_v44  ;;  %v404_v44 = vld [vmem:[#allocation5 + $0x8c8] sm:$0xff] }
  0xce   :  { %2651 = vmatpush2.bf16.msra.mxu1 %v5424_v56  ;;  %2609 = vmatprep.subr.bf16.mxu0 %v5671_v45  ;;  %v5617_v56 = vcombine.high %v412_v37, %v416_v39  ;;  %v408_v45 = vld [vmem:[#allocation5 + $0x8e8] sm:$0xff] }
  0xcf   :  { %2652 = vmatprep.subr.bf16.mxu1 %v5417_v49  ;;  %v396_v49 = vld [vmem:[#allocation5 + $0x888] sm:$0xff]  ;;  %v5609_v50 = vcombine.high %v404_v44, %v408_v45 }
  0xd0   :  { %v368_v20 = vld [vmem:[#allocation5 + $0x7a8] sm:$0xff] }
  0xd1   :  { %2610 = vmatpush2.bf16.msra.mxu0 %v5670_v51  ;;  %v400_v51 = vld [vmem:[#allocation5 + $0x8a8] sm:$0xff]  ;;  %v5569_v27 = vcombine.high %v364_v19, %v368_v20 }
  0xd2   :  { %2653 = vmatpush2.bf16.msra.mxu1 %v5416_v52  ;;  %2611 = vmatprep.subr.bf16.mxu0 %v5663_v53  ;;  %v5480_v52 = vcombine.low %v276_v42, %v280_v43  ;;  %v5608_v53 = vcombine.low %v404_v44, %v408_v45  ;;  %v5601_v60 = vcombine.high %v396_v49, %v400_v51  ;;  %v356_v28 = vld [vmem:[#allocation5 + $0x748] sm:$0xff] }
  0xd3   :  { %2654 = vmatprep.subr.bf16.mxu1 %v5409_v58  ;;  %v388_v58 = vld [vmem:[#allocation5 + $0x848] sm:$0xff] }
  0xd4   :  { %v348_v36 = vld [vmem:[#allocation5 + $0x708] sm:$0xff] }
  0xd5   :  { %2612 = vmatpush2.bf16.msra.mxu0 %v5662_v61  ;;  %v392_v61 = vld [vmem:[#allocation5 + $0x868] sm:$0xff] }
  0xd6   :  { %2655 = vmatpush2.bf16.msra.mxu1 %v5408_v62  ;;  %2613 = vmatprep.subr.bf16.mxu0 %v5655_v63  ;;  %v5600_v63 = vcombine.low %v396_v49, %v400_v51  ;;  %v5593_v4 = vcombine.high %v388_v58, %v392_v61  ;;  %v352_v37 = vld [vmem:[#allocation5 + $0x728] sm:$0xff] }
  0xd7   :  { %2656 = vmatprep.subr.bf16.mxu1 %v5401_v3  ;;  %v380_v3 = vld [vmem:[#allocation5 + $0x808] sm:$0xff] }
  0xd8   :  { %v344_v44 = vld [vmem:[#allocation5 + $0x6e8] sm:$0xff] }
  0xd9   :  { %2614 = vmatpush2.bf16.msra.mxu0 %v5654_v5  ;;  %v384_v5 = vld [vmem:[#allocation5 + $0x828] sm:$0xff] }
  0xda   :  { %2657 = vmatpush2.bf16.msra.mxu1 %v5400_v6  ;;  %2615 = vmatprep.subr.bf16.mxu0 %v5647_v7  ;;  %v5464_v6 = vcombine.low %v260_v55, %v264_v57  ;;  %v5592_v7 = vcombine.low %v388_v58, %v392_v61  ;;  %v5585_v13 = vcombine.high %v380_v3, %v384_v5  ;;  %v336_v49 = vld [vmem:[#allocation5 + $0x6a8] sm:$0xff] }
  0xdb   :  { %2658 = vmatprep.subr.bf16.mxu1 %v5393_v11  ;;  %v500_v11 = vld [vmem:[#allocation5 + $0xbc8] sm:$0xff] }
  0xdc   :  { %v324_v57 = vld [vmem:[#allocation5 + $0x648] sm:$0xff] }
  0xdd   :  { %2616 = vmatpush2.bf16.msra.mxu0 %v5646_v14  ;;  %v504_v14 = vld [vmem:[#allocation5 + $0xbe8] sm:$0xff] }
  0xde   :  { %2659 = vmatpush2.bf16.msra.mxu1 %v5392_v15  ;;  %2671 = vmatprep.subr.bf16.mxu0 %v5513_v17  ;;  %v5456_v15 = vcombine.low %v252_v1, %v256_v2  ;;  %v5584_v17 = vcombine.low %v380_v3, %v384_v5  ;;  %v5705_v23 = vcombine.high %v500_v11, %v504_v14  ;;  %v328_v58 = vld [vmem:[#allocation5 + $0x668] sm:$0xff] }
  0xdf   :  { %2714 = vmatprep.subr.bf16.mxu1 %v5641_v21  ;;  %v492_v21 = vld [vmem:[#allocation5 + $0xb88] sm:$0xff]  ;;  %v5529_v1 = vcombine.high %v324_v57, %v328_v58 }
  0xe0   :  { %2618 = vmatmul.mubr.bf16.vlgmr.msra.gmra.mxu0 %v6756_v16  ;;  %v316_v2 = vld [vmem:[#allocation5 + $0x608] sm:$0xff] }
  0xe1   :  { %2661 = vmatmul.mubr.bf16.vlgmr.msra.gmra.mxu1 %v6749_v12  ;;  %2672 = vmatpush1.bf16.msra.mxu0 %v5512_v24  ;;  %v5624_v12 = vcombine.low %v420_v30, %v424_v31  ;;  %v496_v24 = vld [vmem:[#allocation5 + $0xba8] sm:$0xff] }
  0xe2   :  { %2715 = vmatpush1.bf16.msra.mxu1 %v5640_v25  ;;  %2673 = vmatprep.subr.bf16.mxu0 %v5505_v26  ;;  %v5576_v25 = vcombine.low %v372_v9, %v376_v10  ;;  %v5704_v26 = vcombine.low %v500_v11, %v504_v14  ;;  %v484_v30 = vld [vmem:[#allocation5 + $0xb48] sm:$0xff]  ;;  %v5697_v31 = vcombine.high %v492_v21, %v496_v24  ;;  %v181_v10 = vld [vmem:[#allocation5 + $0x1d0] sm:$0xff] }
  0xe3   :  { %2716 = vmatprep.subr.bf16.mxu1 %v5633_v29  ;;  %2703 = vmatprep.mubr.bf16.mxu0 %v6745_v59  ;;  %v5481_v59 = vcombine.high %v276_v42, %v280_v43  ;;  %v360_v29 = vld [vmem:[#allocation5 + $0x768] sm:$0xff]  ;;  %v5553_v42 = vcombine.high %v348_v36, %v352_v37  ;;  %v185_v11 = vld [vmem:[#allocation5 + $0x1f0] sm:$0xff] }
  0xe4   :  { %2746 = vmatprep.mubr.bf16.mxu1 %v6751_v22  ;;  %v272_v22 = vld [vmem:[#allocation5 + $0x4a8] sm:$0xff]  ;;  %v5561_v35 = vcombine.high %v356_v28, %v360_v29 }
  0xe5   :  { %2674 = vmatpush1.bf16.msra.mxu0 %v5504_v32  ;;  %v5473_v54 = vcombine.high %v268_v48, %v272_v22  ;;  %v5472_v62 = vcombine.low %v268_v48, %v272_v22  ;;  %v488_v32 = vld [vmem:[#allocation5 + $0xb68] sm:$0xff] }
  0xe6   :  { %2717 = vmatpush1.bf16.msra.mxu1 %v5632_v33  ;;  %2675 = vmatprep.subr.bf16.mxu0 %v5497_v34  ;;  %v5568_v33 = vcombine.low %v364_v19, %v368_v20  ;;  %v5696_v34 = vcombine.low %v492_v21, %v496_v24  ;;  %v5689_v39 = vcombine.high %v484_v30, %v488_v32  ;;  %v340_v43 = vld [vmem:[#allocation5 + $0x6c8] sm:$0xff]  ;;  %v173_v20 = vld [vmem:[#allocation5 + $0x190] sm:$0xff] }
  0xe7   :  { %2718 = vmatprep.subr.bf16.mxu1 %v5625_v38  ;;  %v476_v38 = vld [vmem:[#allocation5 + $0xb08] sm:$0xff]  ;;  %v5545_v48 = vcombine.high %v340_v43, %v344_v44  ;;  %v5387_v19 = vcombine.high %v181_v10, %v185_v11  ;;  %v177_v21 = vld [vmem:[#allocation5 + $0x1b0] sm:$0xff] }
  0xe8   :  { %v332_v22 = vld [vmem:[#allocation5 + $0x688] sm:$0xff] }
  0xe9   :  { %2676 = vmatpush1.bf16.msra.mxu0 %v5496_v40  ;;  %v480_v40 = vld [vmem:[#allocation5 + $0xb28] sm:$0xff]  ;;  %v5537_v55 = vcombine.high %v332_v22, %v336_v49 }
  0xea   :  { %2719 = vmatpush1.bf16.msra.mxu1 %v5624_v12  ;;  %2677 = vmatprep.subr.bf16.mxu0 %v5489_v41  ;;  %v5560_v12 = vcombine.low %v356_v28, %v360_v29  ;;  %v5688_v41 = vcombine.low %v484_v30, %v488_v32  ;;  %v5681_v45 = vcombine.high %v476_v38, %v480_v40  ;;  %v320_v3 = vld [vmem:[#allocation5 + $0x628] sm:$0xff]  ;;  %v165_v29 = vld [vmem:[#allocation5 + $0x150] sm:$0xff] }
  0xeb   :  { %2720 = vmatprep.subr.bf16.mxu1 %v5617_v56  ;;  %v468_v56 = vld [vmem:[#allocation5 + $0xac8] sm:$0xff]  ;;  %v5521_v9 = vcombine.high %v316_v2, %v320_v3  ;;  %v5379_v28 = vcombine.high %v173_v20, %v177_v21  ;;  %v169_v30 = vld [vmem:[#allocation5 + $0x170] sm:$0xff] }
  0xed   :  { %2678 = vmatpush1.bf16.msra.mxu0 %v5488_v46  ;;  %v472_v46 = vld [vmem:[#allocation5 + $0xae8] sm:$0xff] }
  0xee   :  { %2721 = vmatpush1.bf16.msra.mxu1 %v5616_v47  ;;  %2679 = vmatprep.subr.bf16.mxu0 %v5481_v59  ;;  %v5552_v47 = vcombine.low %v348_v36, %v352_v37  ;;  %v5680_v59 = vcombine.low %v476_v38, %v480_v40  ;;  %v5673_v51 = vcombine.high %v468_v56, %v472_v46  ;;  %v157_v38 = vld [vmem:[#allocation5 + $0x110] sm:$0xff] }
  0xef   :  { %2722 = vmatprep.subr.bf16.mxu1 %v5609_v50  ;;  %v460_v50 = vld [vmem:[#allocation5 + $0xa88] sm:$0xff]  ;;  %v5371_v37 = vcombine.high %v165_v29, %v169_v30  ;;  %v285_v40 = vld [vmem:[#allocation5 + $0x510] sm:$0xff] }
  0xf1   :  { %2680 = vmatpush1.bf16.msra.mxu0 %v5480_v52  ;;  %v464_v52 = vld [vmem:[#allocation5 + $0xaa8] sm:$0xff] }
  0xf2   :  { %2723 = vmatpush1.bf16.msra.mxu1 %v5608_v53  ;;  %2681 = vmatprep.subr.bf16.mxu0 %v5473_v54  ;;  %v5544_v53 = vcombine.low %v340_v43, %v344_v44  ;;  %v5672_v54 = vcombine.low %v468_v56, %v472_v46  ;;  %v5665_v61 = vcombine.high %v460_v50, %v464_v52  ;;  %v6769_v43 = vld [vmem:[#allocation2 + $0xc] ss:$24 sps:$4 sm:$0xff]  }
  0xf3   :  { %2724 = vmatprep.subr.bf16.mxu1 %v5601_v60  ;;  %v452_v60 = vld [vmem:[#allocation5 + $0xa48] sm:$0xff]  ;;  %v153_v46 = vld [vmem:[#allocation5 + $0xf0] sm:$0xff] }
  0xf5   :  { %2682 = vmatpush1.bf16.msra.mxu0 %v5472_v62  ;;  %v456_v62 = vld [vmem:[#allocation5 + $0xa68] sm:$0xff] }
  0xf6   :  { %2725 = vmatpush1.bf16.msra.mxu1 %v5600_v63  ;;  %2683 = vmatprep.subr.bf16.mxu0 %v5465_v0  ;;  %v5536_v63 = vcombine.low %v332_v22, %v336_v49  ;;  %v5664_v0 = vcombine.low %v460_v50, %v464_v52  ;;  %v5657_v5 = vcombine.high %v452_v60, %v456_v62  ;;  %v145_v52 = vld [vmem:[#allocation5 + $0xb0] sm:$0xff] }
  0xf7   :  { %2726 = vmatprep.subr.bf16.mxu1 %v5593_v4  ;;  %v444_v4 = vld [vmem:[#allocation5 + $0xa08] sm:$0xff] }
  0xf9   :  { %2684 = vmatpush1.bf16.msra.mxu0 %v5464_v6  ;;  %v448_v6 = vld [vmem:[#allocation5 + $0xa28] sm:$0xff] }
  0xfa   :  { %2727 = vmatpush1.bf16.msra.mxu1 %v5592_v7  ;;  %2685 = vmatprep.subr.bf16.mxu0 %v5457_v8  ;;  %v5528_v7 = vcombine.low %v324_v57, %v328_v58  ;;  %v5656_v8 = vcombine.low %v452_v60, %v456_v62  ;;  %v5649_v14 = vcombine.high %v444_v4, %v448_v6  ;;  %v137_v62 = vld [vmem:[#allocation5 + $0x70] sm:$0xff] }
  0xfb   :  { %2728 = vmatprep.subr.bf16.mxu1 %v5585_v13  ;;  %v309_v13 = vld [vmem:[#allocation5 + $0x5d0] sm:$0xff] }
  0xfd   :  { %2686 = vmatpush1.bf16.msra.mxu0 %v5456_v15  ;;  %v313_v15 = vld [vmem:[#allocation5 + $0x5f0] sm:$0xff] }
  0xfe   :  { %2729 = vmatpush1.bf16.msra.mxu1 %v5584_v17  ;;  %2687 = vmatprep.subr.bf16.mxu0 %v5577_v18  ;;  %v5520_v17 = vcombine.low %v316_v2, %v320_v3  ;;  %v5648_v18 = vcombine.low %v444_v4, %v448_v6  ;;  %v5515_v24 = vcombine.high %v309_v13, %v313_v15  ;;  %v129_v6 = vld [vmem:[#allocation5 + $0x30] sm:$0xff] }
  0xff   :  { %2730 = vmatprep.subr.bf16.mxu1 %v5705_v23  ;;  %v301_v23 = vld [vmem:[#allocation5 + $0x590] sm:$0xff] }
 0x101   :  { %2688 = vmatpush2.bf16.msra.mxu0 %v5576_v25  ;;  %v305_v25 = vld [vmem:[#allocation5 + $0x5b0] sm:$0xff] }
 0x102   :  { %2731 = vmatpush2.bf16.msra.mxu1 %v5704_v26  ;;  %2689 = vmatprep.subr.bf16.mxu0 %v5569_v27  ;;  %v5386_v26 = vcombine.low %v181_v10, %v185_v11  ;;  %v5514_v27 = vcombine.low %v309_v13, %v313_v15  ;;  %v5507_v32 = vcombine.high %v301_v23, %v305_v25  ;;  %v249_v15 = vld [vmem:[#allocation5 + $0x3f0] sm:$0xff] }
 0x103   :  { %2732 = vmatprep.subr.bf16.mxu1 %v5697_v31  ;;  %v293_v31 = vld [vmem:[#allocation5 + $0x550] sm:$0xff]  ;;  %v5506_v36 = vcombine.low %v301_v23, %v305_v25 }
 0x104   :  { %v241_v25 = vld [vmem:[#allocation5 + $0x3b0] sm:$0xff] }
 0x105   :  { %2690 = vmatpush2.bf16.msra.mxu0 %v5568_v33  ;;  %v297_v33 = vld [vmem:[#allocation5 + $0x570] sm:$0xff] }
 0x106   :  { %2733 = vmatpush2.bf16.msra.mxu1 %v5696_v34  ;;  %2691 = vmatprep.subr.bf16.mxu0 %v5561_v35  ;;  %v6762_v34 = vld [vmem:[#allocation2 + $0x8] ss:$24 sps:$4 sm:$0xff]   ;;  %v5378_v35 = vcombine.low %v173_v20, %v177_v21  ;;  %v5498_v44 = vcombine.low %v293_v31, %v297_v33 }
 0x107   :  { %2734 = vmatprep.subr.bf16.mxu1 %v5689_v39  ;;  %v161_v39 = vld [vmem:[#allocation5 + $0x130] sm:$0xff] }
 0x108   :  { %v5363_v56 = vcombine.high %v157_v38, %v161_v39  ;;  %v5362_v22 = vcombine.low %v157_v38, %v161_v39 }
 0x109   :  { %2692 = vmatpush2.bf16.msra.mxu0 %v5560_v12  ;;  %v5499_v12 = vcombine.high %v293_v31, %v297_v33  ;;  %v233_v33 = vld [vmem:[#allocation5 + $0x370] sm:$0xff] }
 0x10a   :  { %2735 = vmatpush2.bf16.msra.mxu1 %v5688_v41  ;;  %2693 = vmatprep.subr.bf16.mxu0 %v5553_v42  ;;  %v289_v41 = vld [vmem:[#allocation5 + $0x530] sm:$0xff] }
 0x10b   :  { %2736 = vmatprep.subr.bf16.mxu1 %v5681_v45  ;;  %v6766_v42 = vld [vmem:[#allocation2 + $0x4] ss:$24 sps:$4 sm:$0xff]   ;;  %v5490_v49 = vcombine.low %v285_v40, %v289_v41 }
 0x10c   :  { %v149_v45 = vld [vmem:[#allocation5 + $0xd0] sm:$0xff] }
 0x10d   :  { %2694 = vmatpush2.bf16.msra.mxu0 %v5552_v47  ;;  %v277_v47 = vld [vmem:[#allocation5 + $0x4d0] sm:$0xff]  ;;  %v5355_v50 = vcombine.high %v149_v45, %v153_v46  ;;  %v5354_v57 = vcombine.low %v149_v45, %v153_v46 }
 0x10e   :  { %2737 = vmatpush2.bf16.msra.mxu1 %v5680_v59  ;;  %2695 = vmatprep.subr.bf16.mxu0 %v5545_v48  ;;  %v5491_v59 = vcombine.high %v285_v40, %v289_v41  ;;  %v281_v48 = vld [vmem:[#allocation5 + $0x4f0] sm:$0xff] }
 0x10f   :  { %2738 = vmatprep.subr.bf16.mxu1 %v5673_v51  ;;  %v141_v51 = vld [vmem:[#allocation5 + $0x90] sm:$0xff]  ;;  %v5482_v58 = vcombine.low %v277_v47, %v281_v48 }
 0x110   :  { %v5347_v60 = vcombine.high %v141_v51, %v145_v52  ;;  %v5346_v2 = vcombine.low %v141_v51, %v145_v52 }
 0x111   :  { %2696 = vmatpush2.bf16.msra.mxu0 %v5544_v53  ;;  %v269_v53 = vld [vmem:[#allocation5 + $0x490] sm:$0xff] }
 0x112   :  { %2739 = vmatpush2.bf16.msra.mxu1 %v5672_v54  ;;  %2697 = vmatprep.subr.bf16.mxu0 %v5537_v55  ;;  %v5483_v54 = vcombine.high %v277_v47, %v281_v48  ;;  %v273_v55 = vld [vmem:[#allocation5 + $0x4b0] sm:$0xff] }
 0x113   :  { %2740 = vmatprep.subr.bf16.mxu1 %v5665_v61  ;;  %v133_v61 = vld [vmem:[#allocation5 + $0x50] sm:$0xff]  ;;  %v5474_v3 = vcombine.low %v269_v53, %v273_v55 }
 0x114   :  { %v5339_v4 = vcombine.high %v133_v61, %v137_v62  ;;  %v5338_v10 = vcombine.low %v133_v61, %v137_v62  ;;  %v213_v48 = vld [vmem:[#allocation5 + $0x2d0] sm:$0xff] }
 0x115   :  { %2698 = vmatpush2.bf16.msra.mxu0 %v5536_v63  ;;  %v261_v63 = vld [vmem:[#allocation5 + $0x450] sm:$0xff] }
 0x116   :  { %2741 = vmatpush2.bf16.msra.mxu1 %v5664_v0  ;;  %2699 = vmatprep.subr.bf16.mxu0 %v5529_v1  ;;  %v5475_v0 = vcombine.high %v269_v53, %v273_v55  ;;  %v265_v1 = vld [vmem:[#allocation5 + $0x470] sm:$0xff] }
 0x117   :  { %2742 = vmatprep.subr.bf16.mxu1 %v5657_v5  ;;  %v125_v5 = vld [vmem:[#allocation5 + $0x10] sm:$0xff]  ;;  %v5466_v11 = vcombine.low %v261_v63, %v265_v1 }
 0x118   :  { %v5331_v13 = vcombine.high %v125_v5, %v129_v6  ;;  %v5330_v20 = vcombine.low %v125_v5, %v129_v6  ;;  %v205_v55 = vld [vmem:[#allocation5 + $0x290] sm:$0xff]  ;;  %v509_v6 = vlaneseq }
 0x119   :  { %2700 = vmatpush2.bf16.msra.mxu0 %v5528_v7  ;;  %v253_v7 = vld [vmem:[#allocation5 + $0x410] sm:$0xff] }
 0x11a   :  { %2743 = vmatpush2.bf16.msra.mxu1 %v5656_v8  ;;  %2701 = vmatprep.subr.bf16.mxu0 %v5521_v9  ;;  %v5467_v8 = vcombine.high %v261_v63, %v265_v1  ;;  %v257_v9 = vld [vmem:[#allocation5 + $0x430] sm:$0xff] }
 0x11b   :  { %2744 = vmatprep.subr.bf16.mxu1 %v5649_v14  ;;  %v245_v14 = vld [vmem:[#allocation5 + $0x3d0] sm:$0xff]  ;;  %v5458_v21 = vcombine.low %v253_v7, %v257_v9 }
 0x11c   :  { %v5451_v23 = vcombine.high %v245_v14, %v249_v15  ;;  %v197_v1 = vld [vmem:[#allocation5 + $0x250] sm:$0xff] }
 0x11d   :  { %2702 = vmatpush2.bf16.msra.mxu0 %v5520_v17  ;;  %v373_v17 = vld [vmem:[#allocation5 + $0x7d0] sm:$0xff] }
 0x11e   :  { %2745 = vmatpush2.bf16.msra.mxu1 %v5648_v18  ;;  %2757 = vmatprep.subr.bf16.mxu0 %v5387_v19  ;;  %v5459_v18 = vcombine.high %v253_v7, %v257_v9  ;;  %v377_v19 = vld [vmem:[#allocation5 + $0x7f0] sm:$0xff] }
 0x11f   :  { %2800 = vmatprep.subr.bf16.mxu1 %v5515_v24  ;;  %v237_v24 = vld [vmem:[#allocation5 + $0x390] sm:$0xff] }
 0x120   :  { %2704 = vmatmul.mubr.bf16.vlgmr.msra.gmra.mxu0 %v6762_v34  ;;  %v5443_v31 = vcombine.high %v237_v24, %v241_v25  ;;  %v5442_v38 = vcombine.low %v237_v24, %v241_v25  ;;  %v182_v24 = vld [vmem:[#allocation5 + $0x1d8] sm:$0xff] }
 0x121   :  { %2747 = vmatmul.mubr.bf16.vlgmr.msra.gmra.mxu1 %v6756_v16  ;;  %2758 = vmatpush1.bf16.msra.mxu0 %v5386_v26  ;;  %v5370_v16 = vcombine.low %v165_v29, %v169_v30  ;;  %v365_v26 = vld [vmem:[#allocation5 + $0x790] sm:$0xff]  ;;  %v5450_v29 = vcombine.low %v245_v14, %v249_v15  ;;  %v5578_v30 = vcombine.low %v373_v17, %v377_v19  ;;  %v186_v25 = vld [vmem:[#allocation5 + $0x1f8] sm:$0xff] }
 0x122   :  { %2801 = vmatpush1.bf16.msra.mxu1 %v5514_v27  ;;  %2759 = vmatprep.subr.bf16.mxu0 %v5379_v28  ;;  %v5579_v27 = vcombine.high %v373_v17, %v377_v19  ;;  %v369_v28 = vld [vmem:[#allocation5 + $0x7b0] sm:$0xff]  ;;  %v6772_v17 = vshrl.u32 %v509_v6, 7  ;;  %v150_v6 = vld [vmem:[#allocation5 + $0xd8] sm:$0xff] }
 0x123   :  { %2802 = vmatprep.subr.bf16.mxu1 %v5507_v32  ;;  %2789 = vmatprep.mubr.bf16.mxu0 %v6766_v42  ;;  %v229_v32 = vld [vmem:[#allocation5 + $0x350] sm:$0xff]  ;;  %v5570_v39 = vcombine.low %v365_v26, %v369_v28 }
 0x124   :  { %2832 = vmatprep.mubr.bf16.mxu1 %v6769_v43  ;;  %v5435_v40 = vcombine.high %v229_v32, %v233_v33  ;;  %v5434_v45 = vcombine.low %v229_v32, %v233_v33  ;;  %v321_v14 = vld [vmem:[#allocation5 + $0x630] sm:$0xff] }
 0x125   :  { %2760 = vmatpush1.bf16.msra.mxu0 %v5378_v35  ;;  %v357_v35 = vld [vmem:[#allocation5 + $0x750] sm:$0xff] }
 0x126   :  { %2803 = vmatpush1.bf16.msra.mxu1 %v5506_v36  ;;  %2761 = vmatprep.subr.bf16.mxu0 %v5371_v37  ;;  %v5571_v36 = vcombine.high %v365_v26, %v369_v28  ;;  %v361_v37 = vld [vmem:[#allocation5 + $0x770] sm:$0xff] }
 0x127   :  { %2804 = vmatprep.subr.bf16.mxu1 %v5499_v12  ;;  %v221_v12 = vld [vmem:[#allocation5 + $0x310] sm:$0xff]  ;;  %v5563_v41 = vcombine.high %v357_v35, %v361_v37  ;;  %v5562_v46 = vcombine.low %v357_v35, %v361_v37  ;;  %v174_v35 = vld [vmem:[#allocation5 + $0x198] sm:$0xff] }
 0x128   :  { %v429_v32 = vld [vmem:[#allocation5 + $0x990] sm:$0xff] }
 0x129   :  { %2762 = vmatpush1.bf16.msra.mxu0 %v5370_v16  ;;  %v225_v16 = vld [vmem:[#allocation5 + $0x330] sm:$0xff] }
 0x12a   :  { %2805 = vmatpush1.bf16.msra.mxu1 %v5498_v44  ;;  %2763 = vmatprep.subr.bf16.mxu0 %v5363_v56  ;;  %v349_v44 = vld [vmem:[#allocation5 + $0x710] sm:$0xff]  ;;  %v5427_v47 = vcombine.high %v221_v12, %v225_v16  ;;  %v5426_v51 = vcombine.low %v221_v12, %v225_v16 }
 0x12b   :  { %2806 = vmatprep.subr.bf16.mxu1 %v5491_v59  ;;  %v353_v56 = vld [vmem:[#allocation5 + $0x730] sm:$0xff] }
 0x12c   :  { %v5555_v59 = vcombine.high %v349_v44, %v353_v56  ;;  %v5554_v52 = vcombine.low %v349_v44, %v353_v56  ;;  %v433_v33 = vld [vmem:[#allocation5 + $0x9b0] sm:$0xff] }
 0x12d   :  { %2764 = vmatpush1.bf16.msra.mxu0 %v5362_v22  ;;  %v217_v22 = vld [vmem:[#allocation5 + $0x2f0] sm:$0xff] }
 0x12e   :  { %2807 = vmatpush1.bf16.msra.mxu1 %v5490_v49  ;;  %2765 = vmatprep.subr.bf16.mxu0 %v5355_v50  ;;  %v341_v49 = vld [vmem:[#allocation5 + $0x6d0] sm:$0xff]  ;;  %v5419_v53 = vcombine.high %v213_v48, %v217_v22  ;;  %v5418_v61 = vcombine.low %v213_v48, %v217_v22  ;;  %v5634_v48 = vcombine.low %v429_v32, %v433_v33 }
 0x12f   :  { %2808 = vmatprep.subr.bf16.mxu1 %v5483_v54  ;;  %v345_v50 = vld [vmem:[#allocation5 + $0x6f0] sm:$0xff] }
 0x130   :  { %v5547_v54 = vcombine.high %v341_v49, %v345_v50  ;;  %v5546_v62 = vcombine.low %v341_v49, %v345_v50  ;;  %v425_v16 = vld [vmem:[#allocation5 + $0x970] sm:$0xff] }
 0x131   :  { %2766 = vmatpush1.bf16.msra.mxu0 %v5354_v57  ;;  %v209_v57 = vld [vmem:[#allocation5 + $0x2b0] sm:$0xff] }
 0x132   :  { %2809 = vmatpush1.bf16.msra.mxu1 %v5482_v58  ;;  %2767 = vmatprep.subr.bf16.mxu0 %v5347_v60  ;;  %v333_v58 = vld [vmem:[#allocation5 + $0x690] sm:$0xff]  ;;  %v5411_v63 = vcombine.high %v205_v55, %v209_v57  ;;  %v5410_v5 = vcombine.low %v205_v55, %v209_v57  ;;  %v6790_v57 = vld [vmem:[#allocation2 + $0x14] ss:$24 sps:$4 sm:$0xff]  }
 0x133   :  { %2810 = vmatprep.subr.bf16.mxu1 %v5475_v0  ;;  %v337_v60 = vld [vmem:[#allocation5 + $0x6b0] sm:$0xff] }
 0x134   :  { %v5539_v0 = vcombine.high %v333_v58, %v337_v60  ;;  %v5538_v7 = vcombine.low %v333_v58, %v337_v60  ;;  %v6780_v56 = vld [vmem:[#allocation2] ss:$24 sps:$4 sm:$0xff]   ;;  %v158_v58 = vld [vmem:[#allocation5 + $0x118] sm:$0xff] }
 0x135   :  { %2768 = vmatpush1.bf16.msra.mxu0 %v5346_v2  ;;  %v201_v2 = vld [vmem:[#allocation5 + $0x270] sm:$0xff]  ;;  %v162_v60 = vld [vmem:[#allocation5 + $0x138] sm:$0xff] }
 0x136   :  { %2811 = vmatpush1.bf16.msra.mxu1 %v5474_v3  ;;  %2769 = vmatprep.subr.bf16.mxu0 %v5339_v4  ;;  %v325_v3 = vld [vmem:[#allocation5 + $0x650] sm:$0xff]  ;;  %v5402_v15 = vcombine.low %v197_v1, %v201_v2 }
 0x137   :  { %2812 = vmatprep.subr.bf16.mxu1 %v5467_v8  ;;  %v329_v4 = vld [vmem:[#allocation5 + $0x670] sm:$0xff]  ;;  %v5403_v8 = vcombine.high %v197_v1, %v201_v2 }
 0x138   :  { %v5531_v9 = vcombine.high %v325_v3, %v329_v4  ;;  %v417_v55 = vld [vmem:[#allocation5 + $0x930] sm:$0xff] }
 0x139   :  { %2770 = vmatpush1.bf16.msra.mxu0 %v5338_v10  ;;  %v189_v10 = vld [vmem:[#allocation5 + $0x210] sm:$0xff] }
 0x13a   :  { %2813 = vmatpush1.bf16.msra.mxu1 %v5466_v11  ;;  %2771 = vmatprep.subr.bf16.mxu0 %v5331_v13  ;;  %v193_v11 = vld [vmem:[#allocation5 + $0x230] sm:$0xff] }
 0x13b   :  { %2814 = vmatprep.subr.bf16.mxu1 %v5459_v18  ;;  %v317_v13 = vld [vmem:[#allocation5 + $0x610] sm:$0xff]  ;;  %v5530_v18 = vcombine.low %v325_v3, %v329_v4  ;;  %v5395_v19 = vcombine.high %v189_v10, %v193_v11  ;;  %v5394_v26 = vcombine.low %v189_v10, %v193_v11  ;;  %v5365_v3 = vcombine.high %v158_v58, %v162_v60 }
 0x13c   :  { %v5522_v28 = vcombine.low %v317_v13, %v321_v14  ;;  %v405_v4 = vld [vmem:[#allocation5 + $0x8d0] sm:$0xff] }
 0x13d   :  { %2772 = vmatpush1.bf16.msra.mxu0 %v5330_v20  ;;  %v5523_v20 = vcombine.high %v317_v13, %v321_v14  ;;  %v397_v11 = vld [vmem:[#allocation5 + $0x890] sm:$0xff]  ;;  %v142_v14 = vld [vmem:[#allocation5 + $0x98] sm:$0xff] }
 0x13e   :  { %2815 = vmatpush1.bf16.msra.mxu1 %v5458_v21  ;;  %2773 = vmatprep.subr.bf16.mxu0 %v5451_v23  ;;  %v437_v21 = vld [vmem:[#allocation5 + $0x9d0] sm:$0xff] }
 0x13f   :  { %2816 = vmatprep.subr.bf16.mxu1 %v5579_v27  ;;  %v441_v23 = vld [vmem:[#allocation5 + $0x9f0] sm:$0xff]  ;;  %v511_v27 = vsub.s32 0, %v6772_v17 }
 0x140   :  { %v401_v13 = vld [vmem:[#allocation5 + $0x8b0] sm:$0xff] }
 0x141   :  { %2774 = vmatpush2.bf16.msra.mxu0 %v5450_v29  ;;  %v6775_v29 = vld [vmem:[#allocation7] sm:$0xff] }
 0x142   :  { %2817 = vmatpush2.bf16.msra.mxu1 %v5578_v30  ;;  %2775 = vmatprep.subr.bf16.mxu0 %v5443_v31  ;;  %v5643_v30 = vcombine.high %v437_v21, %v441_v23  ;;  %v5389_v31 = vcombine.high %v182_v24, %v186_v25  ;;  %v512_v37 = vrot.slane %v6775_v29, %v511_v27 }
 0x143   :  { %2818 = vmatprep.subr.bf16.mxu1 %v5571_v36  ;;  %v178_v36 = vld [vmem:[#allocation5 + $0x1b8] sm:$0xff] }
 0x144   :  { %v5381_v12 = vcombine.high %v174_v35, %v178_v36  ;;  %v5380_v49 = vcombine.low %v174_v35, %v178_v36  ;;  %v385_v35 = vld [vmem:[#allocation5 + $0x830] sm:$0xff]  ;;  %v126_v36 = vld [vmem:[#allocation5 + $0x18] sm:$0xff] }
 0x145   :  { %2776 = vmatpush2.bf16.msra.mxu0 %v5442_v38  ;;  %v5642_v38 = vcombine.low %v437_v21, %v441_v23  ;;  %v389_v23 = vld [vmem:[#allocation5 + $0x850] sm:$0xff] }
 0x146   :  { %2819 = vmatpush2.bf16.msra.mxu1 %v5570_v39  ;;  %2777 = vmatprep.subr.bf16.mxu0 %v5435_v40  ;;  %v5388_v39 = vcombine.low %v182_v24, %v186_v25  ;;  %v5635_v40 = vcombine.high %v429_v32, %v433_v33  ;;  %v393_v24 = vld [vmem:[#allocation5 + $0x870] sm:$0xff]  ;;  %v134_v25 = vld [vmem:[#allocation5 + $0x58] sm:$0xff] }
 0x147   :  { %2820 = vmatprep.subr.bf16.mxu1 %v5563_v41  ;;  %v421_v41 = vld [vmem:[#allocation5 + $0x950] sm:$0xff] }
 0x148   :  { %v5627_v50 = vcombine.high %v421_v41, %v425_v16  ;;  %v381_v33 = vld [vmem:[#allocation5 + $0x810] sm:$0xff] }
 0x149   :  { %2778 = vmatpush2.bf16.msra.mxu0 %v5434_v45  ;;  %v166_v45 = vld [vmem:[#allocation5 + $0x158] sm:$0xff] }
 0x14a   :  { %2821 = vmatpush2.bf16.msra.mxu1 %v5562_v46  ;;  %2779 = vmatprep.subr.bf16.mxu0 %v5427_v47  ;;  %v170_v46 = vld [vmem:[#allocation5 + $0x178] sm:$0xff] }
 0x14b   :  { %2822 = vmatprep.subr.bf16.mxu1 %v5555_v59 }
 0x14d   :  { %2780 = vmatpush2.bf16.msra.mxu0 %v5426_v51 }
 0x14e   :  { %2823 = vmatpush2.bf16.msra.mxu1 %v5554_v52  ;;  %2781 = vmatprep.subr.bf16.mxu0 %v5419_v53  ;;  %v5373_v53 = vcombine.high %v166_v45, %v170_v46 }
 0x14f   :  { %2824 = vmatprep.subr.bf16.mxu1 %v5547_v54  ;;  %v413_v54 = vld [vmem:[#allocation5 + $0x910] sm:$0xff] }
 0x150   :  { %v5619_v1 = vcombine.high %v413_v54, %v417_v55 }
 0x151   :  { %2782 = vmatpush2.bf16.msra.mxu0 %v5418_v61 }
 0x152   :  { %2825 = vmatpush2.bf16.msra.mxu1 %v5546_v62  ;;  %2783 = vmatprep.subr.bf16.mxu0 %v5411_v63  ;;  %v5626_v62 = vcombine.low %v421_v41, %v425_v16  ;;  %v501_v41 = vld [vmem:[#allocation5 + $0xbd0] sm:$0xff] }
 0x153   :  { %2826 = vmatprep.subr.bf16.mxu1 %v5539_v0  ;;  %v5372_v0 = vcombine.low %v166_v45, %v170_v46  ;;  %v505_v16 = vld [vmem:[#allocation5 + $0xbf0] sm:$0xff]  ;;  %v250_v45 = vld [vmem:[#allocation5 + $0x3f8] sm:$0xff]  ;;  %v5586_v46 = vcombine.low %v381_v33, %v385_v35 }
 0x155   :  { %2784 = vmatpush2.bf16.msra.mxu0 %v5410_v5  ;;  %v409_v5 = vld [vmem:[#allocation5 + $0x8f0] sm:$0xff] }
 0x156   :  { %2827 = vmatpush2.bf16.msra.mxu1 %v5538_v7  ;;  %2785 = vmatprep.subr.bf16.mxu0 %v5403_v8  ;;  %v154_v7 = vld [vmem:[#allocation5 + $0xf8] sm:$0xff]  ;;  %v5618_v8 = vcombine.low %v413_v54, %v417_v55  ;;  %v5706_v55 = vcombine.low %v501_v41, %v505_v16 }
 0x157   :  { %2828 = vmatprep.subr.bf16.mxu1 %v5531_v9  ;;  %v5611_v9 = vcombine.high %v405_v4, %v409_v5  ;;  %v5357_v10 = vcombine.high %v150_v6, %v154_v7  ;;  %v242_v54 = vld [vmem:[#allocation5 + $0x3b8] sm:$0xff] }
 0x159   :  { %2786 = vmatpush2.bf16.msra.mxu0 %v5402_v15  ;;  %v146_v15 = vld [vmem:[#allocation5 + $0xb8] sm:$0xff] }
 0x15a   :  { %2829 = vmatpush2.bf16.msra.mxu1 %v5530_v18  ;;  %2787 = vmatprep.subr.bf16.mxu0 %v5395_v19  ;;  %v5610_v18 = vcombine.low %v405_v4, %v409_v5  ;;  %v5356_v19 = vcombine.low %v150_v6, %v154_v7  ;;  %v5349_v21 = vcombine.high %v142_v14, %v146_v15  ;;  %v477_v6 = vld [vmem:[#allocation5 + $0xb10] sm:$0xff] }
 0x15b   :  { %2830 = vmatprep.subr.bf16.mxu1 %v5523_v20  ;;  %v5603_v20 = vcombine.high %v397_v11, %v401_v13  ;;  %v481_v7 = vld [vmem:[#allocation5 + $0xb30] sm:$0xff] }
 0x15d   :  { %2788 = vmatpush2.bf16.msra.mxu0 %v5394_v26  ;;  %v138_v26 = vld [vmem:[#allocation5 + $0x78] sm:$0xff] }
 0x15e   :  { %2831 = vmatpush2.bf16.msra.mxu1 %v5522_v28  ;;  %2843 = vmatprep.subr.bf16.mxu0 %v5643_v30  ;;  %v5602_v28 = vcombine.low %v397_v11, %v401_v13  ;;  %v5348_v30 = vcombine.low %v142_v14, %v146_v15  ;;  %v5341_v32 = vcombine.high %v134_v25, %v138_v26  ;;  %v469_v14 = vld [vmem:[#allocation5 + $0xad0] sm:$0xff] }
 0x15f   :  { %2886 = vmatprep.subr.bf16.mxu1 %v5389_v31  ;;  %v5595_v31 = vcombine.high %v389_v23, %v393_v24  ;;  %v5683_v11 = vcombine.high %v477_v6, %v481_v7  ;;  %v473_v15 = vld [vmem:[#allocation5 + $0xaf0] sm:$0xff] }
 0x160   :  { %v2533_v44 = vpop.f32.mrf.mxu0  ;;  %2790 = vmatmul.mubr.bf16.vlgmr.msra.gmra.mxu0 %v6780_v56 }
 0x161   :  { %v2534_v47 = vadd.f32 %v2533_v44, %v512_v37  ;;  %v2576_v59 = vpop.f32.mrf.mxu1  ;;  %2833 = vmatmul.mubr.bf16.vlgmr.msra.gmra.mxu1 %v6762_v34  ;;  %2844 = vmatpush1.bf16.msra.mxu0 %v5642_v38  ;;  %v5594_v38 = vcombine.low %v389_v23, %v393_v24  ;;  %v246_v44 = vld [vmem:[#allocation5 + $0x3d8] sm:$0xff]  ;;  %v5675_v23 = vcombine.high %v469_v14, %v473_v15 }
 0x162   :  { %2887 = vmatpush1.bf16.msra.mxu1 %v5388_v39  ;;  %v6784_v22 = vpop.f32.mrf.mxu0  ;;  %2845 = vmatprep.subr.bf16.mxu0 %v5635_v40  ;;  %v5340_v39 = vcombine.low %v134_v25, %v138_v26  ;;  %v5587_v40 = vcombine.high %v381_v33, %v385_v35  ;;  %v461_v25 = vld [vmem:[#allocation5 + $0xa90] sm:$0xff] }
 0x163   :  { %v6786_v51 = vadd.f32 %v2576_v59, %v2534_v47  ;;  %v6788_v52 = vpop.f32.mrf.mxu1  ;;  %2888 = vmatprep.subr.bf16.mxu1 %v5381_v12  ;;  %2875 = vmatprep.mubr.bf16.mxu0 %v6790_v57  ;;  %v5707_v59 = vcombine.high %v501_v41, %v505_v16  ;;  %v465_v26 = vld [vmem:[#allocation5 + $0xab0] sm:$0xff] }
 0x164   :  { %v2537_v34 = vpop.f32.mrf.mxu0  ;;  %2918 = vmatprep.mubr.bf16.mxu1 %v6766_v42  ;;  %v5364_v42 = vcombine.low %v158_v58, %v162_v60  ;;  %v5667_v33 = vcombine.high %v461_v25, %v465_v26 }
 0x165   :  { %v2538_v61 = vadd.f32 %v2537_v34, %v512_v37  ;;  %2846 = vmatpush1.bf16.msra.mxu0 %v5634_v48  ;;  %v2580_v63 = vpop.f32.mrf.mxu1  ;;  %v130_v37 = vld [vmem:[#allocation5 + $0x38] sm:$0xff]  ;;  %v5453_v48 = vcombine.high %v246_v44, %v250_v45  ;;  %v5452_v34 = vcombine.low %v246_v44, %v250_v45  ;;  %v445_v44 = vld [vmem:[#allocation5 + $0xa10] sm:$0xff] }
 0x166   :  { %2889 = vmatpush1.bf16.msra.mxu1 %v5380_v49  ;;  %2847 = vmatprep.subr.bf16.mxu0 %v5627_v50  ;;  %v5333_v12 = vcombine.high %v126_v36, %v130_v37  ;;  %v5332_v47 = vcombine.low %v126_v36, %v130_v37  ;;  %v493_v49 = vld [vmem:[#allocation5 + $0xb90] sm:$0xff] }
 0x167   :  { %v6794_v2 = vadd.f32 %v2580_v63, %v2538_v61  ;;  %2890 = vmatprep.subr.bf16.mxu1 %v5373_v53  ;;  %v497_v50 = vld [vmem:[#allocation5 + $0xbb0] sm:$0xff]  ;;  %v238_v53 = vld [vmem:[#allocation5 + $0x398] sm:$0xff] }
 0x168   :  { %v5699_v58 = vcombine.high %v493_v49, %v497_v50  ;;  %v5445_v60 = vcombine.high %v238_v53, %v242_v54  ;;  %v485_v61 = vld [vmem:[#allocation5 + $0xb50] sm:$0xff]  ;;  %v230_v63 = vld [vmem:[#allocation5 + $0x358] sm:$0xff] }
 0x169   :  { %2848 = vmatpush1.bf16.msra.mxu0 %v5626_v62  ;;  %v489_v62 = vld [vmem:[#allocation5 + $0xb70] sm:$0xff] }
 0x16a   :  { %2891 = vmatpush1.bf16.msra.mxu1 %v5372_v0  ;;  %2849 = vmatprep.subr.bf16.mxu0 %v5619_v1  ;;  %v234_v0 = vld [vmem:[#allocation5 + $0x378] sm:$0xff]  ;;  %v5698_v1 = vcombine.low %v493_v49, %v497_v50  ;;  %v5691_v4 = vcombine.high %v485_v61, %v489_v62  ;;  %v453_v36 = vld [vmem:[#allocation5 + $0xa50] sm:$0xff] }
 0x16b   :  { %2892 = vmatprep.subr.bf16.mxu1 %v5365_v3  ;;  %v5444_v3 = vcombine.low %v238_v53, %v242_v54  ;;  %v5437_v5 = vcombine.high %v230_v63, %v234_v0  ;;  %v457_v37 = vld [vmem:[#allocation5 + $0xa70] sm:$0xff]  ;;  %v310_v53 = vld [vmem:[#allocation5 + $0x5d8] sm:$0xff] }
 0x16c   :  { %v5659_v41 = vcombine.high %v453_v36, %v457_v37  ;;  %v449_v45 = vld [vmem:[#allocation5 + $0xa30] sm:$0xff]  ;;  %v314_v54 = vld [vmem:[#allocation5 + $0x5f8] sm:$0xff] }
 0x16d   :  { %2850 = vmatpush1.bf16.msra.mxu0 %v5618_v8  ;;  %v222_v8 = vld [vmem:[#allocation5 + $0x318] sm:$0xff]  ;;  %v5651_v49 = vcombine.high %v445_v44, %v449_v45 }
 0x16e   :  { %2893 = vmatpush1.bf16.msra.mxu1 %v5364_v42  ;;  %2851 = vmatprep.subr.bf16.mxu0 %v5611_v9  ;;  %v226_v42 = vld [vmem:[#allocation5 + $0x338] sm:$0xff]  ;;  %v5690_v9 = vcombine.low %v485_v61, %v489_v62  ;;  %v5517_v61 = vcombine.high %v310_v53, %v314_v54 }
 0x16f   :  { %2894 = vmatprep.subr.bf16.mxu1 %v5357_v10  ;;  %v5436_v10 = vcombine.low %v230_v63, %v234_v0  ;;  %v5429_v13 = vcombine.high %v222_v8, %v226_v42  ;;  %v302_v63 = vld [vmem:[#allocation5 + $0x598] sm:$0xff] }
 0x170   :  { %v306_v0 = vld [vmem:[#allocation5 + $0x5b8] sm:$0xff] }
 0x171   :  { %2852 = vmatpush1.bf16.msra.mxu0 %v5610_v18  ;;  %v214_v18 = vld [vmem:[#allocation5 + $0x2d8] sm:$0xff] }
 0x172   :  { %2895 = vmatpush1.bf16.msra.mxu1 %v5356_v19  ;;  %2853 = vmatprep.subr.bf16.mxu0 %v5603_v20  ;;  %v218_v19 = vld [vmem:[#allocation5 + $0x2f8] sm:$0xff]  ;;  %v5682_v20 = vcombine.low %v477_v6, %v481_v7  ;;  %v5509_v7 = vcombine.high %v302_v63, %v306_v0 }
 0x173   :  { %2896 = vmatprep.subr.bf16.mxu1 %v5349_v21  ;;  %v5428_v21 = vcombine.low %v222_v8, %v226_v42  ;;  %v5421_v24 = vcombine.high %v214_v18, %v218_v19  ;;  %v294_v42 = vld [vmem:[#allocation5 + $0x558] sm:$0xff] }
 0x175   :  { %2854 = vmatpush1.bf16.msra.mxu0 %v5602_v28  ;;  %v206_v28 = vld [vmem:[#allocation5 + $0x298] sm:$0xff] }
 0x176   :  { %2897 = vmatpush1.bf16.msra.mxu1 %v5348_v30  ;;  %2855 = vmatprep.subr.bf16.mxu0 %v5595_v31  ;;  %v210_v30 = vld [vmem:[#allocation5 + $0x2b8] sm:$0xff]  ;;  %v5674_v31 = vcombine.low %v469_v14, %v473_v15 }
 0x177   :  { %2898 = vmatprep.subr.bf16.mxu1 %v5341_v32  ;;  %v5420_v32 = vcombine.low %v214_v18, %v218_v19  ;;  %v5413_v35 = vcombine.high %v206_v28, %v210_v30  ;;  %v426_v14 = vld [vmem:[#allocation5 + $0x978] sm:$0xff]  ;;  %v5508_v18 = vcombine.low %v302_v63, %v306_v0 }
 0x178   :  { %v258_v63 = vld [vmem:[#allocation5 + $0x438] sm:$0xff] }
 0x179   :  { %2856 = vmatpush1.bf16.msra.mxu0 %v5594_v38  ;;  %v198_v38 = vld [vmem:[#allocation5 + $0x258] sm:$0xff] }
 0x17a   :  { %2899 = vmatpush1.bf16.msra.mxu1 %v5340_v39  ;;  %2857 = vmatprep.subr.bf16.mxu0 %v5587_v40  ;;  %v202_v39 = vld [vmem:[#allocation5 + $0x278] sm:$0xff]  ;;  %v5666_v40 = vcombine.low %v461_v25, %v465_v26 }
 0x17b   :  { %2900 = vmatprep.subr.bf16.mxu1 %v5333_v12  ;;  %v5412_v12 = vcombine.low %v206_v28, %v210_v30  ;;  %v5405_v16 = vcombine.high %v198_v38, %v202_v39  ;;  %v290_v25 = vld [vmem:[#allocation5 + $0x538] sm:$0xff] }
 0x17c   :  { %v414_v28 = vld [vmem:[#allocation5 + $0x918] sm:$0xff] }
 0x17d   :  { %2858 = vmatpush1.bf16.msra.mxu0 %v5586_v46  ;;  %v190_v46 = vld [vmem:[#allocation5 + $0x218] sm:$0xff] }
 0x17e   :  { %2901 = vmatpush1.bf16.msra.mxu1 %v5332_v47  ;;  %2859 = vmatprep.subr.bf16.mxu0 %v5707_v59  ;;  %v194_v47 = vld [vmem:[#allocation5 + $0x238] sm:$0xff]  ;;  %v5658_v59 = vcombine.low %v453_v36, %v457_v37 }
 0x17f   :  { %2902 = vmatprep.subr.bf16.mxu1 %v5453_v48  ;;  %v5404_v48 = vcombine.low %v198_v38, %v202_v39  ;;  %v5397_v50 = vcombine.high %v190_v46, %v194_v47  ;;  %v418_v30 = vld [vmem:[#allocation5 + $0x938] sm:$0xff] }
 0x180   :  { %v5621_v36 = vcombine.high %v414_v28, %v418_v30  ;;  %v278_v37 = vld [vmem:[#allocation5 + $0x4d8] sm:$0xff] }
 0x181   :  { %2860 = vmatpush2.bf16.msra.mxu0 %v5706_v55  ;;  %v438_v55 = vld [vmem:[#allocation5 + $0x9d8] sm:$0xff] }
 0x182   :  { %2903 = vmatpush2.bf16.msra.mxu1 %v5452_v34  ;;  %2861 = vmatprep.subr.bf16.mxu0 %v5699_v58  ;;  %v442_v34 = vld [vmem:[#allocation5 + $0x9f8] sm:$0xff]  ;;  %v5650_v58 = vcombine.low %v445_v44, %v449_v45 }
 0x183   :  { %2904 = vmatprep.subr.bf16.mxu1 %v5445_v60  ;;  %v5396_v60 = vcombine.low %v190_v46, %v194_v47  ;;  %v5645_v62 = vcombine.high %v438_v55, %v442_v34  ;;  %v5644_v6 = vcombine.low %v438_v55, %v442_v34  ;;  %v282_v38 = vld [vmem:[#allocation5 + $0x4f8] sm:$0xff] }
 0x184   :  { %v410_v39 = vld [vmem:[#allocation5 + $0x8f8] sm:$0xff]  ;;  %v5484_v47 = vcombine.low %v278_v37, %v282_v38 }
 0x185   :  { %2862 = vmatpush2.bf16.msra.mxu0 %v5698_v1  ;;  %v430_v1 = vld [vmem:[#allocation5 + $0x998] sm:$0xff] }
 0x186   :  { %2905 = vmatpush2.bf16.msra.mxu1 %v5444_v3  ;;  %2863 = vmatprep.subr.bf16.mxu0 %v5691_v4  ;;  %v434_v3 = vld [vmem:[#allocation5 + $0x9b8] sm:$0xff]  ;;  %v5516_v4 = vcombine.low %v310_v53, %v314_v54 }
 0x187   :  { %2906 = vmatprep.subr.bf16.mxu1 %v5437_v5  ;;  %v6796_v5 = vpop.f32.mrf.mxu0  ;;  %v5637_v8 = vcombine.high %v430_v1, %v434_v3  ;;  %v274_v44 = vld [vmem:[#allocation5 + $0x4b8] sm:$0xff] }
 0x188   :  { %v398_v45 = vld [vmem:[#allocation5 + $0x898] sm:$0xff] }
 0x189   :  { %2864 = vmatpush2.bf16.msra.mxu0 %v5690_v9  ;;  %v298_v9 = vld [vmem:[#allocation5 + $0x578] sm:$0xff] }
 0x18a   :  { %2907 = vmatpush2.bf16.msra.mxu1 %v5436_v10  ;;  %2865 = vmatprep.subr.bf16.mxu0 %v5683_v11  ;;  %v6798_v11 = vld [vmem:[#allocation2 + $0x10] ss:$24 sps:$4 sm:$0xff]  }
 0x18b   :  { %2908 = vmatprep.subr.bf16.mxu1 %v5429_v13  ;;  %v422_v13 = vld [vmem:[#allocation5 + $0x958] sm:$0xff] }
 0x18c   :  { %v402_v46 = vld [vmem:[#allocation5 + $0x8b8] sm:$0xff] }
 0x18d   :  { %2866 = vmatpush2.bf16.msra.mxu0 %v5682_v20  ;;  %v5636_v20 = vcombine.low %v430_v1, %v434_v3  ;;  %v266_v53 = vld [vmem:[#allocation5 + $0x478] sm:$0xff] }
 0x18e   :  { %2909 = vmatpush2.bf16.msra.mxu1 %v5428_v21  ;;  %2867 = vmatprep.subr.bf16.mxu0 %v5675_v23  ;;  %v5501_v21 = vcombine.high %v294_v42, %v298_v9  ;;  %v5629_v23 = vcombine.high %v422_v13, %v426_v14  ;;  %v390_v54 = vld [vmem:[#allocation5 + $0x858] sm:$0xff] }
 0x18f   :  { %2910 = vmatprep.subr.bf16.mxu1 %v5421_v24  ;;  %v286_v24 = vld [vmem:[#allocation5 + $0x518] sm:$0xff] }
 0x190   :  { %v394_v55 = vld [vmem:[#allocation5 + $0x878] sm:$0xff] }
 0x191   :  { %2868 = vmatpush2.bf16.msra.mxu0 %v5674_v31  ;;  %v5628_v31 = vcombine.low %v422_v13, %v426_v14  ;;  %v382_v0 = vld [vmem:[#allocation5 + $0x818] sm:$0xff] }
 0x192   :  { %2911 = vmatpush2.bf16.msra.mxu1 %v5420_v32  ;;  %2869 = vmatprep.subr.bf16.mxu0 %v5667_v33  ;;  %v5493_v32 = vcombine.high %v286_v24, %v290_v25  ;;  %v386_v1 = vld [vmem:[#allocation5 + $0x838] sm:$0xff] }
 0x193   :  { %2912 = vmatprep.subr.bf16.mxu1 %v5413_v35  ;;  %v5588_v14 = vcombine.low %v382_v0, %v386_v1 }
 0x195   :  { %2870 = vmatpush2.bf16.msra.mxu0 %v5666_v40 }
 0x196   :  { %2913 = vmatpush2.bf16.msra.mxu1 %v5412_v12  ;;  %2871 = vmatprep.subr.bf16.mxu0 %v5659_v41  ;;  %v5485_v12 = vcombine.high %v278_v37, %v282_v38  ;;  %v350_v38 = vld [vmem:[#allocation5 + $0x718] sm:$0xff] }
 0x197   :  { %2914 = vmatprep.subr.bf16.mxu1 %v5405_v16  ;;  %v270_v16 = vld [vmem:[#allocation5 + $0x498] sm:$0xff] }
 0x198   :  { %v5476_v34 = vcombine.low %v270_v16, %v274_v44 }
 0x199   :  { %2872 = vmatpush2.bf16.msra.mxu0 %v5658_v59 }
 0x19a   :  { %2915 = vmatpush2.bf16.msra.mxu1 %v5404_v48  ;;  %2873 = vmatprep.subr.bf16.mxu0 %v5651_v49  ;;  %v5477_v48 = vcombine.high %v270_v16, %v274_v44  ;;  %v5605_v49 = vcombine.high %v398_v45, %v402_v46  ;;  %v342_v44 = vld [vmem:[#allocation5 + $0x6d8] sm:$0xff] }
 0x19b   :  { %2916 = vmatprep.subr.bf16.mxu1 %v5397_v50  ;;  %v262_v50 = vld [vmem:[#allocation5 + $0x458] sm:$0xff] }
 0x19c   :  { %v5468_v3 = vcombine.low %v262_v50, %v266_v53 }
 0x19d   :  { %2874 = vmatpush2.bf16.msra.mxu0 %v5650_v58  ;;  %v5604_v58 = vcombine.low %v398_v45, %v402_v46  ;;  %v346_v45 = vld [vmem:[#allocation5 + $0x6f8] sm:$0xff] }
 0x19e   :  { %2917 = vmatpush2.bf16.msra.mxu1 %v5396_v60  ;;  %2929 = vmatprep.subr.bf16.mxu0 %v5517_v61  ;;  %v5469_v60 = vcombine.high %v262_v50, %v266_v53  ;;  %v5597_v61 = vcombine.high %v390_v54, %v394_v55  ;;  %v470_v46 = vld [vmem:[#allocation5 + $0xad8] sm:$0xff] }
 0x19f   :  { %2972 = vmatprep.subr.bf16.mxu1 %v5645_v62  ;;  %v254_v62 = vld [vmem:[#allocation5 + $0x418] sm:$0xff] }
 0x1a0   :  { %v2619_v10 = vpop.f32.mrf.mxu0  ;;  %2876 = vmatmul.mubr.bf16.vlgmr.msra.gmra.mxu0 %v6798_v11  ;;  %v5460_v13 = vcombine.low %v254_v62, %v258_v63  ;;  %v334_v53 = vld [vmem:[#allocation5 + $0x698] sm:$0xff] }
 0x1a1   :  { %v2620_v15 = vadd.f32 %v2619_v10, %v6786_v51  ;;  %2919 = vmatmul.mubr.bf16.vlgmr.msra.gmra.mxu1 %v6780_v56  ;;  %2930 = vmatpush1.bf16.msra.mxu0 %v5516_v4  ;;  %v5500_v51 = vcombine.low %v294_v42, %v298_v9  ;;  %v5596_v4 = vcombine.low %v390_v54, %v394_v55  ;;  %v378_v42 = vld [vmem:[#allocation5 + $0x7f8] sm:$0xff]  ;;  %v515_v55 = vsub.s32 1, %v6772_v17 }
 0x1a2   :  { %2973 = vmatpush1.bf16.msra.mxu1 %v5644_v6  ;;  %v6803_v19 = vpop.f32.mrf.mxu0  ;;  %2931 = vmatprep.subr.bf16.mxu0 %v5509_v7  ;;  %v5461_v6 = vcombine.high %v254_v62, %v258_v63  ;;  %v5589_v7 = vcombine.high %v382_v0, %v386_v1  ;;  %v502_v9 = vld [vmem:[#allocation5 + $0xbd8] sm:$0xff] }
 0x1a3   :  { %2974 = vmatprep.subr.bf16.mxu1 %v5637_v8  ;;  %2961 = vmatprep.mubr.bf16.mxu0 %v6769_v43  ;;  %v3015_v33 = vmax.f32 %v2620_v15, 0.0  ;;  %v406_v43 = vld [vmem:[#allocation5 + $0x8d8] sm:$0xff] }
 0x1a4   :  { %v2623_v26 = vpop.f32.mrf.mxu0  ;;  %3004 = vmatprep.mubr.bf16.mxu1 %v6790_v57  ;;  %v5492_v57 = vcombine.low %v286_v24, %v290_v25  ;;  %v5613_v41 = vcombine.high %v406_v43, %v410_v39  ;;  %v5612_v59 = vcombine.low %v406_v43, %v410_v39  ;;  %v374_v8 = vld [vmem:[#allocation5 + $0x7d8] sm:$0xff] }
 0x1a5   :  { %v2624_v56 = vadd.f32 %v2623_v26, %v6794_v2  ;;  %2932 = vmatpush1.bf16.msra.mxu0 %v5508_v18  ;;  %v5620_v2 = vcombine.low %v414_v28, %v418_v30  ;;  %v506_v10 = vld [vmem:[#allocation5 + $0xbf8] sm:$0xff]  ;;  %v5581_v15 = vcombine.high %v374_v8, %v378_v42  ;;  %v5580_v25 = vcombine.low %v374_v8, %v378_v42 }
 0x1a6   :  { %2975 = vmatpush1.bf16.msra.mxu1 %v5636_v20  ;;  %2933 = vmatprep.subr.bf16.mxu0 %v5501_v21  ;;  %v5709_v18 = vcombine.high %v502_v9, %v506_v10  ;;  %v366_v20 = vld [vmem:[#allocation5 + $0x798] sm:$0xff]  ;;  %v5708_v26 = vcombine.low %v502_v9, %v506_v10 }
 0x1a7   :  { %v3023_v35 = vmax.f32 %v2624_v56, 0.0  ;;  %2976 = vmatprep.subr.bf16.mxu1 %v5629_v23  ;;  %v370_v21 = vld [vmem:[#allocation5 + $0x7b8] sm:$0xff] }
 0x1a8   :  { %v494_v23 = vld [vmem:[#allocation5 + $0xb98] sm:$0xff]  ;;  %v5573_v28 = vcombine.high %v366_v20, %v370_v21 }
 0x1a9   :  { %v6808_v40 = vpack.c.bf16 %v3023_v35, %v3015_v33  ;;  %2934 = vmatpush1.bf16.msra.mxu0 %v5500_v51  ;;  %v498_v24 = vld [vmem:[#allocation5 + $0xbb8] sm:$0xff]  ;;  %v5572_v33 = vcombine.low %v366_v20, %v370_v21 }
 0x1aa   :  { %2977 = vmatpush1.bf16.msra.mxu1 %v5628_v31  ;;  %2935 = vmatprep.subr.bf16.mxu0 %v5493_v32  ;;  %v5701_v30 = vcombine.high %v494_v23, %v498_v24  ;;  %v358_v56 = vld [vmem:[#allocation5 + $0x758] sm:$0xff]  ;;  %v5700_v35 = vcombine.low %v494_v23, %v498_v24  ;;  %v2625_v24 = vpop.f32.mrf.mxu0 }
 0x1ab   :  { %2978 = vmatprep.subr.bf16.mxu1 %v5621_v36  ;;  %v362_v51 = vld [vmem:[#allocation5 + $0x778] sm:$0xff] }
 0x1ac   :  { %v486_v31 = vld [vmem:[#allocation5 + $0xb58] sm:$0xff]  ;;  %v5565_v36 = vcombine.high %v358_v56, %v362_v51 }
 0x1ad   :  { %2936 = vmatpush1.bf16.msra.mxu0 %v5492_v57  ;;  %v490_v32 = vld [vmem:[#allocation5 + $0xb78] sm:$0xff] }
 0x1ae   :  { %2979 = vmatpush1.bf16.msra.mxu1 %v5620_v2  ;;  %2937 = vmatprep.subr.bf16.mxu0 %v5485_v12  ;;  %v5693_v37 = vcombine.high %v486_v31, %v490_v32  ;;  %v354_v43 = vld [vmem:[#allocation5 + $0x738] sm:$0xff]  ;;  %v5564_v2 = vcombine.low %v358_v56, %v362_v51  ;;  %v5692_v12 = vcombine.low %v486_v31, %v490_v32  ;;  %v523_v32 = vsub.s32 3, %v6772_v17 }
 0x1af   :  { %2980 = vmatprep.subr.bf16.mxu1 %v5613_v41  ;;  %v478_v39 = vld [vmem:[#allocation5 + $0xb18] sm:$0xff]  ;;  %v5557_v41 = vcombine.high %v350_v38, %v354_v43 }
 0x1b0   :  { %v482_v57 = vld [vmem:[#allocation5 + $0xb38] sm:$0xff] }
 0x1b1   :  { %2938 = vmatpush1.bf16.msra.mxu0 %v5484_v47  ;;  %v5685_v16 = vcombine.high %v478_v39, %v482_v57  ;;  %v474_v47 = vld [vmem:[#allocation5 + $0xaf8] sm:$0xff] }
 0x1b2   :  { %2981 = vmatpush1.bf16.msra.mxu1 %v5612_v59  ;;  %2939 = vmatprep.subr.bf16.mxu0 %v5477_v48  ;;  %v5556_v59 = vcombine.low %v350_v38, %v354_v43  ;;  %v5684_v48 = vcombine.low %v478_v39, %v482_v57  ;;  %v5677_v50 = vcombine.high %v470_v46, %v474_v47  ;;  %v338_v54 = vld [vmem:[#allocation5 + $0x6b8] sm:$0xff] }
 0x1b3   :  { %2982 = vmatprep.subr.bf16.mxu1 %v5605_v49  ;;  %v5549_v49 = vcombine.high %v342_v44, %v346_v45  ;;  %v5541_v62 = vcombine.high %v334_v53, %v338_v54  ;;  %v326_v0 = vld [vmem:[#allocation5 + $0x658] sm:$0xff]  ;;  %v5540_v8 = vcombine.low %v334_v53, %v338_v54 }
 0x1b4   :  { %v330_v1 = vld [vmem:[#allocation5 + $0x678] sm:$0xff] }
 0x1b5   :  { %2940 = vmatpush1.bf16.msra.mxu0 %v5476_v34  ;;  %v462_v34 = vld [vmem:[#allocation5 + $0xa98] sm:$0xff]  ;;  %v5533_v10 = vcombine.high %v326_v0, %v330_v1 }
 0x1b6   :  { %2983 = vmatpush1.bf16.msra.mxu1 %v5604_v58  ;;  %2941 = vmatprep.subr.bf16.mxu0 %v5469_v60  ;;  %v466_v58 = vld [vmem:[#allocation5 + $0xab8] sm:$0xff]  ;;  %v5548_v60 = vcombine.low %v342_v44, %v346_v45 }
 0x1b7   :  { %2984 = vmatprep.subr.bf16.mxu1 %v5597_v61  ;;  %v5676_v61 = vcombine.low %v470_v46, %v474_v47  ;;  %v5669_v63 = vcombine.high %v462_v34, %v466_v58  ;;  %v5668_v9 = vcombine.low %v462_v34, %v466_v58  ;;  %v446_v21 = vld [vmem:[#allocation5 + $0xa18] sm:$0xff] }
 0x1b8   :  { %v450_v23 = vld [vmem:[#allocation5 + $0xa38] sm:$0xff] }
 0x1b9   :  { %2942 = vmatpush1.bf16.msra.mxu0 %v5468_v3  ;;  %v516_v3 = vrot.slane %v6775_v29, %v515_v55  ;;  %v5653_v56 = vcombine.high %v446_v21, %v450_v23  ;;  %v6075_v38 = vld [vmem:[#allocation8 + $0x2e4] ss:$16 sps:$4 sm:$0xff]   ;;  %v6070_v39 = vld [vmem:[#allocation8 + $0xe0] ss:$16 sps:$4 sm:$0xff]  }
 0x1ba   :  { %2985 = vmatpush1.bf16.msra.mxu1 %v5596_v4  ;;  %2943 = vmatprep.subr.bf16.mxu0 %v5461_v6  ;;  %v454_v4 = vld [vmem:[#allocation5 + $0xa58] sm:$0xff] }
 0x1bb   :  { %2986 = vmatprep.subr.bf16.mxu1 %v5589_v7  ;;  %v458_v6 = vld [vmem:[#allocation5 + $0xa78] sm:$0xff]  ;;  %v2582_v7 = vpop.f32.mrf.mxu1  ;;  %v2540_v42 = vadd.f32 %v6796_v5, %v516_v3  ;;  %v2536_v20 = vadd.f32 %v6784_v22, %v516_v3 }
 0x1bc   :  { %v5660_v5 = vcombine.low %v454_v4, %v458_v6  ;;  %v6492_v45 = vld [vmem:[#allocation2 + $0x8] ss:$24 sps:$4 sm:$0xff]   ;;  %v6087_v54 = vld [vmem:[#allocation8 + $0x2a4] ss:$16 sps:$4 sm:$0xff]  }
 0x1bd   :  { %2944 = vmatpush1.bf16.msra.mxu0 %v5460_v13  ;;  %v6815_v13 = vpop.f32.mrf.mxu1  ;;  %v2579_v51 = vadd.f32 %v6788_v52, %v2536_v20  ;;  %v524_v52 = vrot.slane %v6775_v29, %v523_v32  ;;  %v6076_v29 = vld [vmem:[#allocation8 + $0xc0] ss:$16 sps:$4 sm:$0xff]   ;;  %v6093_v3 = vld [vmem:[#allocation8 + $0x284] ss:$16 sps:$4 sm:$0xff]  }
 0x1be   :  { %2987 = vmatpush1.bf16.msra.mxu1 %v5588_v14  ;;  %2945 = vmatprep.subr.bf16.mxu0 %v5581_v15  ;;  %v5661_v14 = vcombine.high %v454_v4, %v458_v6  ;;  %v318_v15 = vld [vmem:[#allocation5 + $0x618] sm:$0xff] }
 0x1bf   :  { %2988 = vmatprep.subr.bf16.mxu1 %v5709_v18  ;;  %v322_v18 = vld [vmem:[#allocation5 + $0x638] sm:$0xff] }
 0x1c0   :  { %v5524_v22 = vcombine.low %v318_v15, %v322_v18  ;;  %v6097_v20 = vld [vmem:[#allocation8 + $0x260] ss:$16 sps:$4 sm:$0xff]  }
 0x1c1   :  { %2946 = vmatpush2.bf16.msra.mxu0 %v5580_v25  ;;  %v5532_v25 = vcombine.low %v326_v0, %v330_v1 }
 0x1c2   :  { %2989 = vmatpush2.bf16.msra.mxu1 %v5708_v26  ;;  %2947 = vmatprep.subr.bf16.mxu0 %v5573_v28  ;;  %v2583_v26 = vadd.f32 %v2582_v7, %v2540_v42  ;;  %v5525_v28 = vcombine.high %v318_v15, %v322_v18  ;;  %v6088_v7 = vld [vmem:[#allocation8 + $0x80] ss:$16 sps:$4 sm:$0xff]   ;;  %v6096_v42 = vld [vmem:[#allocation8 + $0x64] ss:$16 sps:$4 sm:$0xff]  }
 0x1c3   :  { %2990 = vmatprep.subr.bf16.mxu1 %v5701_v30  ;;  %v2664_v30 = vpop.f32.mrf.mxu1  ;;  %v6094_v18 = vld [vmem:[#allocation8 + $0x60] ss:$16 sps:$4 sm:$0xff]  }
 0x1c4   :  { %v2626_v31 = vadd.f32 %v2625_v24, %v2583_v26  ;;  %v2665_v46 = vadd.f32 %v2664_v30, %v524_v52  ;;  %v6100_v24 = vld [vmem:[#allocation8 + $0x40] ss:$16 sps:$4 sm:$0xff]   ;;  %v6108_v26 = vld [vmem:[#allocation8 + $0x24] ss:$16 sps:$4 sm:$0xff]  }
 0x1c5   :  { %2948 = vmatpush2.bf16.msra.mxu0 %v5572_v33  ;;  %v2622_v33 = vadd.f32 %v6803_v19, %v2579_v51  ;;  %v6109_v30 = vld [vmem:[#allocation8 + $0x220] ss:$16 sps:$4 sm:$0xff]   ;;  %v6117_v51 = vld [vmem:[#allocation8 + $0x204] ss:$16 sps:$4 sm:$0xff]  }
 0x1c6   :  { %2991 = vmatpush2.bf16.msra.mxu1 %v5700_v35  ;;  %2949 = vmatprep.subr.bf16.mxu0 %v5565_v36  ;;  %v5652_v35 = vcombine.low %v446_v21, %v450_v23  ;;  %v6072_v36 = vld [vmem:[#allocation8 + $0xe4] ss:$16 sps:$4 sm:$0xff]   ;;  %v3024_v43 = vmax.f32 %v2626_v31, 0.0  ;;  %v6112_v31 = vld [vmem:[#allocation8] ss:$16 sps:$4 sm:$0xff]  }
 0x1c7   :  { %2992 = vmatprep.subr.bf16.mxu1 %v5693_v37  ;;  %v6821_v37 = vpop.f32.mrf.mxu1  ;;  %v3016_v57 = vmax.f32 %v2622_v33, 0.0  ;;  %v6102_v21 = vld [vmem:[#allocation8 + $0x44] ss:$16 sps:$4 sm:$0xff]  }
 0x1c8   :  { %v6105_v23 = vld [vmem:[#allocation8 + $0x244] ss:$16 sps:$4 sm:$0xff]  }
 0x1c9   :  { %2950 = vmatpush2.bf16.msra.mxu0 %v5564_v2  ;;  %v6073_v2 = vld [vmem:[#allocation8 + $0x2e0] ss:$16 sps:$4 sm:$0xff]   ;;  %v2668_v19 = vpop.f32.mrf.mxu1  ;;  %v6120_v33 = vld [vmem:[#allocation8 + $0x1e4] ss:$16 sps:$4 sm:$0xff]  }
 0x1ca   :  { %2993 = vmatpush2.bf16.msra.mxu1 %v5692_v12  ;;  %2951 = vmatprep.subr.bf16.mxu0 %v5557_v41  ;;  %v6078_v12 = vld [vmem:[#allocation8 + $0xc4] ss:$16 sps:$4 sm:$0xff]   ;;  %v2669_v58 = vadd.f32 %v2668_v19, %v524_v52 }
 0x1cb   :  { %2994 = vmatprep.subr.bf16.mxu1 %v5685_v16  ;;  %v6081_v41 = vld [vmem:[#allocation8 + $0x2c4] ss:$16 sps:$4 sm:$0xff]   ;;  %v6826_v16 = vpack.c.bf16 %v3024_v43, %v3016_v57  ;;  %v6127_v57 = vld [vmem:[#allocation8 + $0x3c0] ss:$16 sps:$4 sm:$0xff]  }
 0x1cc   :  { %v6126_v43 = vld [vmem:[#allocation8 + $0x1c4] ss:$16 sps:$4 sm:$0xff]  }
 0x1cd   :  { %2952 = vmatpush2.bf16.msra.mxu0 %v5556_v59  ;;  %v6129_v52 = vld [vmem:[#allocation8 + $0x3c4] ss:$16 sps:$4 sm:$0xff]  }
 0x1ce   :  { %2995 = vmatpush2.bf16.msra.mxu1 %v5684_v48  ;;  %2953 = vmatprep.subr.bf16.mxu0 %v5549_v49  ;;  %v6079_v48 = vld [vmem:[#allocation8 + $0x2c0] ss:$16 sps:$4 sm:$0xff]   ;;  %v6084_v49 = vld [vmem:[#allocation8 + $0xa4] ss:$16 sps:$4 sm:$0xff]  }
 0x1cf   :  { %2996 = vmatprep.subr.bf16.mxu1 %v5677_v50  ;;  %v6135_v19 = vld [vmem:[#allocation8 + $0x3a4] ss:$16 sps:$4 sm:$0xff]  }
 0x1d1   :  { %2954 = vmatpush2.bf16.msra.mxu0 %v5548_v60 }
 0x1d2   :  { %2997 = vmatpush2.bf16.msra.mxu1 %v5676_v61  ;;  %2955 = vmatprep.subr.bf16.mxu0 %v5541_v62  ;;  %v6085_v62 = vld [vmem:[#allocation8 + $0x2a0] ss:$16 sps:$4 sm:$0xff]  }
 0x1d3   :  { %2998 = vmatprep.subr.bf16.mxu1 %v5669_v63  ;;  %v6090_v63 = vld [vmem:[#allocation8 + $0x84] ss:$16 sps:$4 sm:$0xff]  }
 0x1d5   :  { %2956 = vmatpush2.bf16.msra.mxu0 %v5540_v8  ;;  %v6091_v8 = vld [vmem:[#allocation8 + $0x280] ss:$16 sps:$4 sm:$0xff]  }
 0x1d6   :  { %2999 = vmatpush2.bf16.msra.mxu1 %v5668_v9  ;;  %2957 = vmatprep.subr.bf16.mxu0 %v5533_v10 }
 0x1d7   :  { %3000 = vmatprep.subr.bf16.mxu1 %v5661_v14  ;;  %v6099_v14 = vld [vmem:[#allocation8 + $0x264] ss:$16 sps:$4 sm:$0xff]  }
 0x1d9   :  { %2958 = vmatpush2.bf16.msra.mxu0 %v5532_v25  ;;  %v6103_v25 = vld [vmem:[#allocation8 + $0x240] ss:$16 sps:$4 sm:$0xff]  }
 0x1da   :  { %3001 = vmatpush2.bf16.msra.mxu1 %v5660_v5  ;;  %2959 = vmatprep.subr.bf16.mxu0 %v5525_v28  ;;  %v6111_v5 = vld [vmem:[#allocation8 + $0x224] ss:$16 sps:$4 sm:$0xff]   ;;  %v6106_v28 = vld [vmem:[#allocation8 + $0x20] ss:$16 sps:$4 sm:$0xff]  }
 0x1db   :  { %3002 = vmatprep.subr.bf16.mxu1 %v5653_v56  ;;  %v6114_v56 = vld [vmem:[#allocation8 + $0x4] ss:$16 sps:$4 sm:$0xff]  }
 0x1dd   :  { %2960 = vmatpush2.bf16.msra.mxu0 %v5524_v22  ;;  %v6115_v22 = vld [vmem:[#allocation8 + $0x200] ss:$16 sps:$4 sm:$0xff]  }
 0x1de   :  { %3003 = vmatpush2.bf16.msra.mxu1 %v5652_v35  ;;  %4597 = vmatprep.subr.bf16.mxu0 %v6072_v36  ;;  %v6123_v35 = vld [vmem:[#allocation8 + $0x3e4] ss:$16 sps:$4 sm:$0xff]   ;;  %v6118_v36 = vld [vmem:[#allocation8 + $0x1e0] ss:$16 sps:$4 sm:$0xff]  }
 0x1df   :  { %4640 = vmatprep.subr.bf16.mxu1 %v6075_v38  ;;  %v6121_v38 = vld [vmem:[#allocation8 + $0x3e0] ss:$16 sps:$4 sm:$0xff]  }
 0x1e0   :  { %v6828_v44 = vpop.f32.mrf.mxu0  ;;  %2962 = vmatmul.mubr.bf16.vlgmr.msra.gmra.mxu0 %v6492_v45  ;;  %v6138_v45 = vld [vmem:[#allocation8 + $0x184] ss:$16 sps:$4 sm:$0xff]  }
 0x1e1   :  { %v6830_v47 = vpop.f32.mrf.mxu1  ;;  %3005 = vmatmul.mubr.bf16.vlgmr.msra.gmra.mxu1 %v6798_v11  ;;  %4598 = vmatpush1.bf16.msra.mxu0 %v6070_v39  ;;  %v6082_v11 = vld [vmem:[#allocation8 + $0xa0] ss:$16 sps:$4 sm:$0xff]  }
 0x1e2   :  { %4629 = vmatprep.mubr.bf16.mxu0 %v6826_v16  ;;  %4641 = vmatpush1.bf16.msra.mxu1 %v6073_v2  ;;  %v2707_v59 = vpop.f32.mrf.mxu0  ;;  %v6124_v39 = vld [vmem:[#allocation8 + $0x1c0] ss:$16 sps:$4 sm:$0xff]   ;;  %v6132_v2 = vld [vmem:[#allocation8 + $0x1a4] ss:$16 sps:$4 sm:$0xff]  }
 0x1e3   :  { %v2708_v50 = vadd.f32 %v2707_v59, %v2665_v46  ;;  %v2750_v53 = vpop.f32.mrf.mxu1  ;;  %4599 = vmatprep.subr.bf16.mxu0 %v6078_v12  ;;  %4642 = vmatprep.subr.bf16.mxu1 %v6081_v41  ;;  %v6130_v12 = vld [vmem:[#allocation8 + $0x1a0] ss:$16 sps:$4 sm:$0xff]   ;;  %v6141_v46 = vld [vmem:[#allocation8 + $0x384] ss:$16 sps:$4 sm:$0xff]  }
 0x1e4   :  { %v6834_v34 = vpop.f32.mrf.mxu0  ;;  %v6133_v41 = vld [vmem:[#allocation8 + $0x3a0] ss:$16 sps:$4 sm:$0xff]  }
 0x1e5   :  { %v6836_v60 = vpop.f32.mrf.mxu1  ;;  %4600 = vmatpush1.bf16.msra.mxu0 %v6076_v29  ;;  %v2751_v0 = vadd.f32 %v2750_v53, %v2708_v50  ;;  %v519_v29 = vsub.s32 2, %v6772_v17  ;;  %v6136_v59 = vld [vmem:[#allocation8 + $0x180] ss:$16 sps:$4 sm:$0xff]   ;;  %v6147_v50 = vld [vmem:[#allocation8 + $0x364] ss:$16 sps:$4 sm:$0xff]   ;;  %v6842_v53 = vld [vmem:[#allocation7] sm:$0xff] }
 0x1e6   :  { %4643 = vmatpush1.bf16.msra.mxu1 %v6079_v48  ;;  %v2711_v61 = vpop.f32.mrf.mxu0  ;;  %4601 = vmatprep.subr.bf16.mxu0 %v6084_v49  ;;  %v6139_v48 = vld [vmem:[#allocation8 + $0x380] ss:$16 sps:$4 sm:$0xff]   ;;  %v6144_v49 = vld [vmem:[#allocation8 + $0x164] ss:$16 sps:$4 sm:$0xff]  }
 0x1e7   :  { %v2712_v1 = vadd.f32 %v2711_v61, %v2669_v58  ;;  %4644 = vmatprep.subr.bf16.mxu1 %v6087_v54  ;;  %v2754_v4 = vpop.f32.mrf.mxu1  ;;  %v3018_v9 = vmax.f32 %v2751_v0, 0.0  ;;  %v520_v54 = vrot.slane %v6842_v53, %v519_v29  ;;  %v6142_v58 = vld [vmem:[#allocation8 + $0x160] ss:$16 sps:$4 sm:$0xff]   ;;  %v6150_v61 = vld [vmem:[#allocation8 + $0x144] ss:$16 sps:$4 sm:$0xff]  }
 0x1e8   :  { %v6148_v0 = vld [vmem:[#allocation8 + $0x140] ss:$16 sps:$4 sm:$0xff]  }
 0x1e9   :  { %v2755_v6 = vadd.f32 %v2754_v4, %v2712_v1  ;;  %4602 = vmatpush1.bf16.msra.mxu0 %v6082_v11  ;;  %v6145_v11 = vld [vmem:[#allocation8 + $0x360] ss:$16 sps:$4 sm:$0xff]   ;;  %v2663_v4 = vadd.f32 %v6815_v13, %v520_v54 }
 0x1ea   :  { %4645 = vmatpush1.bf16.msra.mxu1 %v6085_v62  ;;  %4603 = vmatprep.subr.bf16.mxu0 %v6090_v63  ;;  %v6153_v62 = vld [vmem:[#allocation8 + $0x344] ss:$16 sps:$4 sm:$0xff]   ;;  %v2667_v63 = vadd.f32 %v6821_v37, %v520_v54  ;;  %v6151_v1 = vld [vmem:[#allocation8 + $0x340] ss:$16 sps:$4 sm:$0xff]  }
 0x1eb   :  { %v3026_v10 = vmax.f32 %v2755_v6, 0.0  ;;  %4646 = vmatprep.subr.bf16.mxu1 %v6093_v3  ;;  %v6156_v3 = vld [vmem:[#allocation8 + $0x124] ss:$16 sps:$4 sm:$0xff]   ;;  %v6160_v13 = vld [vmem:[#allocation8 + $0x100] ss:$16 sps:$4 sm:$0xff]  }
 0x1ec   :  { %v2710_v6 = vadd.f32 %v6834_v34, %v2667_v63  ;;  %v6162_v37 = vld [vmem:[#allocation8 + $0x104] ss:$16 sps:$4 sm:$0xff]   ;;  %v6163_v34 = vld [vmem:[#allocation8 + $0x300] ss:$16 sps:$4 sm:$0xff]  }
 0x1ed   :  { %v6838_v15 = vpack.c.bf16 %v3026_v10, %v3018_v9  ;;  %4604 = vmatpush1.bf16.msra.mxu0 %v6088_v7  ;;  %v6159_v7 = vld [vmem:[#allocation8 + $0x324] ss:$16 sps:$4 sm:$0xff]   ;;  %v6157_v9 = vld [vmem:[#allocation8 + $0x320] ss:$16 sps:$4 sm:$0xff]  }
 0x1ee   :  { %4647 = vmatpush1.bf16.msra.mxu1 %v6091_v8  ;;  %4605 = vmatprep.subr.bf16.mxu0 %v6096_v42  ;;  %v2706_v8 = vadd.f32 %v6828_v44, %v2663_v4  ;;  %v6154_v42 = vld [vmem:[#allocation8 + $0x120] ss:$16 sps:$4 sm:$0xff]   ;;  %v2753_v10 = vadd.f32 %v6836_v60, %v2710_v6  ;;  %v6219_v44 = vld [vmem:[#allocation8 + $0x6e4] ss:$16 sps:$4 sm:$0xff]  }
 0x1ef   :  { %4672 = vmatprep.mubr.bf16.mxu1 %v6838_v15  ;;  %4648 = vmatprep.subr.bf16.mxu1 %v6099_v14  ;;  %v6165_v14 = vld [vmem:[#allocation8 + $0x304] ss:$16 sps:$4 sm:$0xff]   ;;  %v6217_v60 = vld [vmem:[#allocation8 + $0x6e0] ss:$16 sps:$4 sm:$0xff]  }
 0x1f0   :  { %v6192_v54 = vld [vmem:[#allocation8 + $0x5e4] ss:$16 sps:$4 sm:$0xff]   ;;  %v6265_v63 = vld [vmem:[#allocation8 + $0x7e0] ss:$16 sps:$4 sm:$0xff]  }
 0x1f1   :  { %4606 = vmatpush1.bf16.msra.mxu0 %v6094_v18  ;;  %v2749_v18 = vadd.f32 %v6830_v47, %v2706_v8  ;;  %v6225_v47 = vld [vmem:[#allocation8 + $0x6c4] ss:$16 sps:$4 sm:$0xff]   ;;  %v6271_v4 = vld [vmem:[#allocation8 + $0x7c0] ss:$16 sps:$4 sm:$0xff]  }
 0x1f2   :  { %4649 = vmatpush1.bf16.msra.mxu1 %v6097_v20  ;;  %4607 = vmatprep.subr.bf16.mxu0 %v6102_v21  ;;  %v6168_v20 = vld [vmem:[#allocation8 + $0x4e4] ss:$16 sps:$4 sm:$0xff]   ;;  %v3025_v21 = vmax.f32 %v2753_v10, 0.0 }
 0x1f3   :  { %4650 = vmatprep.subr.bf16.mxu1 %v6105_v23  ;;  %v3017_v23 = vmax.f32 %v2749_v18, 0.0  ;;  %v6279_v6 = vld [vmem:[#allocation8 + $0x7a4] ss:$16 sps:$4 sm:$0xff]  }
 0x1f4   :  { %v6201_v8 = vld [vmem:[#allocation8 + $0x584] ss:$16 sps:$4 sm:$0xff]  }
 0x1f5   :  { %4608 = vmatpush1.bf16.msra.mxu0 %v6100_v24  ;;  %v6166_v24 = vld [vmem:[#allocation8 + $0x4e0] ss:$16 sps:$4 sm:$0xff]   ;;  %v6204_v10 = vld [vmem:[#allocation8 + $0x564] ss:$16 sps:$4 sm:$0xff]  }
 0x1f6   :  { %4651 = vmatpush1.bf16.msra.mxu1 %v6103_v25  ;;  %4609 = vmatprep.subr.bf16.mxu0 %v6108_v26  ;;  %v6171_v25 = vld [vmem:[#allocation8 + $0x4c4] ss:$16 sps:$4 sm:$0xff]   ;;  %v6853_v26 = vpack.c.bf16 %v3025_v21, %v3017_v23 }
 0x1f7   :  { %4652 = vmatprep.subr.bf16.mxu1 %v6111_v5  ;;  %v6169_v5 = vld [vmem:[#allocation8 + $0x4c0] ss:$16 sps:$4 sm:$0xff]   ;;  %v6291_v18 = vld [vmem:[#allocation8 + $0x764] ss:$16 sps:$4 sm:$0xff]  }
 0x1f8   :  { %v6297_v21 = vld [vmem:[#allocation8 + $0x744] ss:$16 sps:$4 sm:$0xff]  }
 0x1f9   :  { %4610 = vmatpush1.bf16.msra.mxu0 %v6106_v28  ;;  %v6174_v28 = vld [vmem:[#allocation8 + $0x4a4] ss:$16 sps:$4 sm:$0xff]  }
 0x1fa   :  { %4653 = vmatpush1.bf16.msra.mxu1 %v6109_v30  ;;  %4611 = vmatprep.subr.bf16.mxu0 %v6114_v56  ;;  %v6223_v30 = vld [vmem:[#allocation8 + $0x6c0] ss:$16 sps:$4 sm:$0xff]   ;;  %v6231_v56 = vld [vmem:[#allocation8 + $0x6a4] ss:$16 sps:$4 sm:$0xff]  }
 0x1fb   :  { %4654 = vmatprep.subr.bf16.mxu1 %v6117_v51  ;;  %v6172_v51 = vld [vmem:[#allocation8 + $0x4a0] ss:$16 sps:$4 sm:$0xff]  }
 0x1fd   :  { %4612 = vmatpush1.bf16.msra.mxu0 %v6112_v31  ;;  %v6177_v31 = vld [vmem:[#allocation8 + $0x484] ss:$16 sps:$4 sm:$0xff]  }
 0x1fe   :  { %4655 = vmatpush1.bf16.msra.mxu1 %v6115_v22  ;;  %4613 = vmatprep.subr.bf16.mxu0 %v6120_v33  ;;  %v6229_v22 = vld [vmem:[#allocation8 + $0x6a0] ss:$16 sps:$4 sm:$0xff]   ;;  %v6237_v33 = vld [vmem:[#allocation8 + $0x684] ss:$16 sps:$4 sm:$0xff]  }
 0x1ff   :  { %4656 = vmatprep.subr.bf16.mxu1 %v6123_v35  ;;  %v6175_v35 = vld [vmem:[#allocation8 + $0x480] ss:$16 sps:$4 sm:$0xff]  }
 0x201   :  { %4614 = vmatpush2.bf16.msra.mxu0 %v6118_v36  ;;  %v6180_v36 = vld [vmem:[#allocation8 + $0x464] ss:$16 sps:$4 sm:$0xff]  }
 0x202   :  { %4657 = vmatpush2.bf16.msra.mxu1 %v6121_v38  ;;  %4615 = vmatprep.subr.bf16.mxu0 %v6126_v43  ;;  %v6235_v38 = vld [vmem:[#allocation8 + $0x680] ss:$16 sps:$4 sm:$0xff]   ;;  %v6243_v43 = vld [vmem:[#allocation8 + $0x664] ss:$16 sps:$4 sm:$0xff]  }
 0x203   :  { %4658 = vmatprep.subr.bf16.mxu1 %v6129_v52  ;;  %v6178_v52 = vld [vmem:[#allocation8 + $0x460] ss:$16 sps:$4 sm:$0xff]  }
 0x205   :  { %4616 = vmatpush2.bf16.msra.mxu0 %v6124_v39  ;;  %v6183_v39 = vld [vmem:[#allocation8 + $0x444] ss:$16 sps:$4 sm:$0xff]  }
 0x206   :  { %4659 = vmatpush2.bf16.msra.mxu1 %v6127_v57  ;;  %4617 = vmatprep.subr.bf16.mxu0 %v6132_v2  ;;  %v6241_v57 = vld [vmem:[#allocation8 + $0x660] ss:$16 sps:$4 sm:$0xff]   ;;  %v6249_v2 = vld [vmem:[#allocation8 + $0x644] ss:$16 sps:$4 sm:$0xff]  }
 0x207   :  { %4660 = vmatprep.subr.bf16.mxu1 %v6135_v19  ;;  %v6181_v19 = vld [vmem:[#allocation8 + $0x440] ss:$16 sps:$4 sm:$0xff]  }
 0x209   :  { %4618 = vmatpush2.bf16.msra.mxu0 %v6130_v12  ;;  %v6186_v12 = vld [vmem:[#allocation8 + $0x424] ss:$16 sps:$4 sm:$0xff]  }
 0x20a   :  { %4661 = vmatpush2.bf16.msra.mxu1 %v6133_v41  ;;  %4619 = vmatprep.subr.bf16.mxu0 %v6138_v45  ;;  %v6247_v41 = vld [vmem:[#allocation8 + $0x640] ss:$16 sps:$4 sm:$0xff]   ;;  %v6255_v45 = vld [vmem:[#allocation8 + $0x624] ss:$16 sps:$4 sm:$0xff]  }
 0x20b   :  { %4662 = vmatprep.subr.bf16.mxu1 %v6141_v46  ;;  %v6184_v46 = vld [vmem:[#allocation8 + $0x420] ss:$16 sps:$4 sm:$0xff]  }
 0x20d   :  { %4620 = vmatpush2.bf16.msra.mxu0 %v6136_v59  ;;  %v6189_v59 = vld [vmem:[#allocation8 + $0x404] ss:$16 sps:$4 sm:$0xff]  }
 0x20e   :  { %4663 = vmatpush2.bf16.msra.mxu1 %v6139_v48  ;;  %4621 = vmatprep.subr.bf16.mxu0 %v6144_v49  ;;  %v6253_v48 = vld [vmem:[#allocation8 + $0x620] ss:$16 sps:$4 sm:$0xff]   ;;  %v6261_v49 = vld [vmem:[#allocation8 + $0x604] ss:$16 sps:$4 sm:$0xff]  }
 0x20f   :  { %4664 = vmatprep.subr.bf16.mxu1 %v6147_v50  ;;  %v6187_v50 = vld [vmem:[#allocation8 + $0x400] ss:$16 sps:$4 sm:$0xff]  }
 0x211   :  { %4622 = vmatpush2.bf16.msra.mxu0 %v6142_v58  ;;  %v6259_v58 = vld [vmem:[#allocation8 + $0x600] ss:$16 sps:$4 sm:$0xff]  }
 0x212   :  { %4665 = vmatpush2.bf16.msra.mxu1 %v6145_v11  ;;  %4623 = vmatprep.subr.bf16.mxu0 %v6150_v61  ;;  %v6267_v11 = vld [vmem:[#allocation8 + $0x7e4] ss:$16 sps:$4 sm:$0xff]   ;;  %v6190_v61 = vld [vmem:[#allocation8 + $0x5e0] ss:$16 sps:$4 sm:$0xff]  }
 0x213   :  { %4666 = vmatprep.subr.bf16.mxu1 %v6153_v62  ;;  %v6195_v62 = vld [vmem:[#allocation8 + $0x5c4] ss:$16 sps:$4 sm:$0xff]  }
 0x215   :  { %4624 = vmatpush2.bf16.msra.mxu0 %v6148_v0  ;;  %v6273_v0 = vld [vmem:[#allocation8 + $0x7c4] ss:$16 sps:$4 sm:$0xff]  }
 0x216   :  { %4667 = vmatpush2.bf16.msra.mxu1 %v6151_v1  ;;  %4625 = vmatprep.subr.bf16.mxu0 %v6156_v3  ;;  %v6193_v1 = vld [vmem:[#allocation8 + $0x5c0] ss:$16 sps:$4 sm:$0xff]   ;;  %v6198_v3 = vld [vmem:[#allocation8 + $0x5a4] ss:$16 sps:$4 sm:$0xff]  }
 0x217   :  { %4668 = vmatprep.subr.bf16.mxu1 %v6159_v7  ;;  %v6196_v7 = vld [vmem:[#allocation8 + $0x5a0] ss:$16 sps:$4 sm:$0xff]  }
 0x219   :  { %4626 = vmatpush2.bf16.msra.mxu0 %v6154_v42  ;;  %v6277_v42 = vld [vmem:[#allocation8 + $0x7a0] ss:$16 sps:$4 sm:$0xff]  }
 0x21a   :  { %4669 = vmatpush2.bf16.msra.mxu1 %v6157_v9  ;;  %4627 = vmatprep.subr.bf16.mxu0 %v6162_v37  ;;  %v6285_v9 = vld [vmem:[#allocation8 + $0x784] ss:$16 sps:$4 sm:$0xff]   ;;  %v6199_v37 = vld [vmem:[#allocation8 + $0x580] ss:$16 sps:$4 sm:$0xff]  }
 0x21b   :  { %4670 = vmatprep.subr.bf16.mxu1 %v6165_v14  ;;  %v6283_v14 = vld [vmem:[#allocation8 + $0x780] ss:$16 sps:$4 sm:$0xff]  }
 0x21d   :  { %4628 = vmatpush2.bf16.msra.mxu0 %v6160_v13  ;;  %v6202_v13 = vld [vmem:[#allocation8 + $0x560] ss:$16 sps:$4 sm:$0xff]  }
 0x21e   :  { %4671 = vmatpush2.bf16.msra.mxu1 %v6163_v34  ;;  %4683 = vmatprep.subr.bf16.mxu0 %v6168_v20  ;;  %v6207_v34 = vld [vmem:[#allocation8 + $0x544] ss:$16 sps:$4 sm:$0xff]   ;;  %v6289_v20 = vld [vmem:[#allocation8 + $0x760] ss:$16 sps:$4 sm:$0xff]  }
 0x21f   :  { %4726 = vmatprep.subr.bf16.mxu1 %v6219_v44  ;;  %v6205_v44 = vld [vmem:[#allocation8 + $0x540] ss:$16 sps:$4 sm:$0xff]  }
 0x220   :  { %4630 = vmatmul.mubr.bf16.vlgmr.msra.gmra.mxu0 %v6808_v40  ;;  %v2791_v23 = vpop.f32.mrf.mxu0 }
 0x221   :  { %4673 = vmatmul.mubr.bf16.vlgmr.msra.gmra.mxu1 %v6853_v26  ;;  %4684 = vmatpush1.bf16.msra.mxu0 %v6166_v24  ;;  %v6210_v24 = vld [vmem:[#allocation8 + $0x524] ss:$16 sps:$4 sm:$0xff]  }
 0x222   :  { %4685 = vmatprep.subr.bf16.mxu0 %v6171_v25  ;;  %4727 = vmatpush1.bf16.msra.mxu1 %v6217_v60  ;;  %v6295_v25 = vld [vmem:[#allocation8 + $0x740] ss:$16 sps:$4 sm:$0xff]   ;;  %v6303_v60 = vld [vmem:[#allocation8 + $0x724] ss:$16 sps:$4 sm:$0xff]  }
 0x223   :  { %4728 = vmatprep.subr.bf16.mxu1 %v6225_v47  ;;  %v6208_v47 = vld [vmem:[#allocation8 + $0x520] ss:$16 sps:$4 sm:$0xff]  }
 0x225   :  { %4686 = vmatpush1.bf16.msra.mxu0 %v6169_v5  ;;  %v2793_v5 = vpop.f32.mrf.mxu0 }
 0x226   :  { %4687 = vmatprep.subr.bf16.mxu0 %v6174_v28  ;;  %4729 = vmatpush1.bf16.msra.mxu1 %v6223_v30  ;;  %v6213_v28 = vld [vmem:[#allocation8 + $0x504] ss:$16 sps:$4 sm:$0xff]   ;;  %v6301_v30 = vld [vmem:[#allocation8 + $0x720] ss:$16 sps:$4 sm:$0xff]  }
 0x227   :  { %4730 = vmatprep.subr.bf16.mxu1 %v6231_v56  ;;  %v531_v56 = vsub.s32 5, %v6772_v17 }
 0x229   :  { %4688 = vmatpush1.bf16.msra.mxu0 %v6172_v51  ;;  %v6309_v51 = vld [vmem:[#allocation8 + $0x704] ss:$16 sps:$4 sm:$0xff]  }
 0x22a   :  { %4689 = vmatprep.subr.bf16.mxu0 %v6177_v31  ;;  %4731 = vmatpush1.bf16.msra.mxu1 %v6229_v22  ;;  %v527_v31 = vsub.s32 4, %v6772_v17  ;;  %v2834_v22 = vpop.f32.mrf.mxu1 }
 0x22b   :  { %4732 = vmatprep.subr.bf16.mxu1 %v6237_v33  ;;  %v6211_v33 = vld [vmem:[#allocation8 + $0x500] ss:$16 sps:$4 sm:$0xff]  }
 0x22d   :  { %4690 = vmatpush1.bf16.msra.mxu0 %v6175_v35  ;;  %v2795_v35 = vpop.f32.mrf.mxu0 }
 0x22e   :  { %4691 = vmatprep.subr.bf16.mxu0 %v6180_v36  ;;  %4733 = vmatpush1.bf16.msra.mxu1 %v6235_v38  ;;  %v6216_v36 = vld [vmem:[#allocation8 + $0xec] ss:$16 sps:$4 sm:$0xff]   ;;  %v6307_v38 = vld [vmem:[#allocation8 + $0x700] ss:$16 sps:$4 sm:$0xff]  }
 0x22f   :  { %4734 = vmatprep.subr.bf16.mxu1 %v6243_v43  ;;  %v532_v43 = vrot.slane %v6842_v53, %v531_v56  ;;  %v6268_v56 = vld [vmem:[#allocation8 + $0x1c8] ss:$16 sps:$4 sm:$0xff]  }
 0x231   :  { %4692 = vmatpush1.bf16.msra.mxu0 %v6178_v52  ;;  %v6315_v52 = vld [vmem:[#allocation8 + $0x2ec] ss:$16 sps:$4 sm:$0xff]  }
 0x232   :  { %4693 = vmatprep.subr.bf16.mxu0 %v6183_v39  ;;  %4735 = vmatpush1.bf16.msra.mxu1 %v6241_v57  ;;  %v528_v39 = vrot.slane %v6842_v53, %v527_v31  ;;  %v2836_v57 = vpop.f32.mrf.mxu1 }
 0x233   :  { %4736 = vmatprep.subr.bf16.mxu1 %v6249_v2  ;;  %v2797_v2 = vpop.f32.mrf.mxu0 }
 0x235   :  { %4694 = vmatpush1.bf16.msra.mxu0 %v6181_v19  ;;  %v2794_v19 = vadd.f32 %v2793_v5, %v532_v43  ;;  %v6264_v5 = vld [vmem:[#allocation8 + $0x1ec] ss:$16 sps:$4 sm:$0xff]  }
 0x236   :  { %4695 = vmatprep.subr.bf16.mxu0 %v6186_v12  ;;  %4737 = vmatpush1.bf16.msra.mxu1 %v6247_v41  ;;  %v2796_v12 = vadd.f32 %v2795_v35, %v528_v39  ;;  %v2792_v41 = vadd.f32 %v2791_v23, %v528_v39  ;;  %v6246_v23 = vld [vmem:[#allocation8 + $0x4c] ss:$16 sps:$4 sm:$0xff]  }
 0x237   :  { %4738 = vmatprep.subr.bf16.mxu1 %v6255_v45  ;;  %v2838_v45 = vpop.f32.mrf.mxu1 }
 0x239   :  { %4696 = vmatpush1.bf16.msra.mxu0 %v6184_v46 }
 0x23a   :  { %4697 = vmatprep.subr.bf16.mxu0 %v6189_v59  ;;  %4739 = vmatpush1.bf16.msra.mxu1 %v6253_v48  ;;  %v2798_v59 = vadd.f32 %v2797_v2, %v532_v43  ;;  %v539_v43 = vsub.s32 7, %v6772_v17  ;;  %v6294_v2 = vld [vmem:[#allocation8 + $0x14c] ss:$16 sps:$4 sm:$0xff]  }
 0x23b   :  { %4740 = vmatprep.subr.bf16.mxu1 %v6261_v49  ;;  %v2837_v49 = vadd.f32 %v2836_v57, %v2794_v19  ;;  %v6286_v57 = vld [vmem:[#allocation8 + $0x168] ss:$16 sps:$4 sm:$0xff]  }
 0x23c   :  { %v540_v19 = vrot.slane %v6842_v53, %v539_v43  ;;  %v6342_v43 = vld [vmem:[#allocation8 + $0x44c] ss:$16 sps:$4 sm:$0xff]  }
 0x23d   :  { %4698 = vmatpush1.bf16.msra.mxu0 %v6187_v50  ;;  %v2839_v50 = vadd.f32 %v2838_v45, %v2796_v12  ;;  %v6292_v45 = vld [vmem:[#allocation8 + $0x148] ss:$16 sps:$4 sm:$0xff]  }
 0x23e   :  { %4699 = vmatprep.subr.bf16.mxu0 %v6192_v54  ;;  %4741 = vmatpush1.bf16.msra.mxu1 %v6259_v58  ;;  %v2835_v54 = vadd.f32 %v2834_v22, %v2792_v41  ;;  %v2840_v58 = vpop.f32.mrf.mxu1  ;;  %v6274_v22 = vld [vmem:[#allocation8 + $0x1a8] ss:$16 sps:$4 sm:$0xff]  }
 0x23f   :  { %4742 = vmatprep.subr.bf16.mxu1 %v6267_v11 }
 0x241   :  { %4700 = vmatpush2.bf16.msra.mxu0 %v6190_v61  ;;  %v2841_v61 = vadd.f32 %v2840_v58, %v2798_v59  ;;  %v6300_v59 = vld [vmem:[#allocation8 + $0x12c] ss:$16 sps:$4 sm:$0xff]  }
 0x242   :  { %4701 = vmatprep.subr.bf16.mxu0 %v6195_v62  ;;  %4743 = vmatpush2.bf16.msra.mxu1 %v6265_v63 }
 0x243   :  { %4744 = vmatprep.subr.bf16.mxu1 %v6273_v0 }
 0x245   :  { %4702 = vmatpush2.bf16.msra.mxu0 %v6193_v1 }
 0x246   :  { %4703 = vmatprep.subr.bf16.mxu0 %v6198_v3  ;;  %4745 = vmatpush2.bf16.msra.mxu1 %v6271_v4 }
 0x247   :  { %4746 = vmatprep.subr.bf16.mxu1 %v6279_v6 }
 0x249   :  { %4704 = vmatpush2.bf16.msra.mxu0 %v6196_v7 }
 0x24a   :  { %4705 = vmatprep.subr.bf16.mxu0 %v6201_v8  ;;  %4747 = vmatpush2.bf16.msra.mxu1 %v6277_v42 }
 0x24b   :  { %4748 = vmatprep.subr.bf16.mxu1 %v6285_v9  ;;  %v6214_v9 = vld [vmem:[#allocation8 + $0xe8] ss:$16 sps:$4 sm:$0xff]  }
 0x24d   :  { %4706 = vmatpush2.bf16.msra.mxu0 %v6199_v37 }
 0x24e   :  { %4707 = vmatprep.subr.bf16.mxu0 %v6204_v10  ;;  %4749 = vmatpush2.bf16.msra.mxu1 %v6283_v14  ;;  %v6222_v10 = vld [vmem:[#allocation8 + $0xcc] ss:$16 sps:$4 sm:$0xff]   ;;  %v6220_v14 = vld [vmem:[#allocation8 + $0xc8] ss:$16 sps:$4 sm:$0xff]  }
 0x24f   :  { %4750 = vmatprep.subr.bf16.mxu1 %v6291_v18  ;;  %v6228_v18 = vld [vmem:[#allocation8 + $0xac] ss:$16 sps:$4 sm:$0xff]  }
 0x251   :  { %4708 = vmatpush2.bf16.msra.mxu0 %v6202_v13  ;;  %v6226_v13 = vld [vmem:[#allocation8 + $0xa8] ss:$16 sps:$4 sm:$0xff]  }
 0x252   :  { %4709 = vmatprep.subr.bf16.mxu0 %v6207_v34  ;;  %4751 = vmatpush2.bf16.msra.mxu1 %v6289_v20  ;;  %v6234_v34 = vld [vmem:[#allocation8 + $0x8c] ss:$16 sps:$4 sm:$0xff]   ;;  %v6232_v20 = vld [vmem:[#allocation8 + $0x88] ss:$16 sps:$4 sm:$0xff]  }
 0x253   :  { %4752 = vmatprep.subr.bf16.mxu1 %v6297_v21  ;;  %v6240_v21 = vld [vmem:[#allocation8 + $0x6c] ss:$16 sps:$4 sm:$0xff]  }
 0x255   :  { %4710 = vmatpush2.bf16.msra.mxu0 %v6205_v44  ;;  %v6238_v44 = vld [vmem:[#allocation8 + $0x68] ss:$16 sps:$4 sm:$0xff]  }
 0x256   :  { %4711 = vmatprep.subr.bf16.mxu0 %v6210_v24  ;;  %4753 = vmatpush2.bf16.msra.mxu1 %v6295_v25  ;;  %v6244_v24 = vld [vmem:[#allocation8 + $0x48] ss:$16 sps:$4 sm:$0xff]   ;;  %v6252_v25 = vld [vmem:[#allocation8 + $0x2c] ss:$16 sps:$4 sm:$0xff]  }
 0x257   :  { %4754 = vmatprep.subr.bf16.mxu1 %v6303_v60  ;;  %v6258_v60 = vld [vmem:[#allocation8 + $0xc] ss:$16 sps:$4 sm:$0xff]  }
 0x259   :  { %4712 = vmatpush2.bf16.msra.mxu0 %v6208_v47  ;;  %v6256_v47 = vld [vmem:[#allocation8 + $0x8] ss:$16 sps:$4 sm:$0xff]  }
 0x25a   :  { %4713 = vmatprep.subr.bf16.mxu0 %v6213_v28  ;;  %4755 = vmatpush2.bf16.msra.mxu1 %v6301_v30  ;;  %v6262_v28 = vld [vmem:[#allocation8 + $0x1e8] ss:$16 sps:$4 sm:$0xff]   ;;  %v6270_v30 = vld [vmem:[#allocation8 + $0x1cc] ss:$16 sps:$4 sm:$0xff]  }
 0x25b   :  { %4756 = vmatprep.subr.bf16.mxu1 %v6309_v51  ;;  %v6276_v51 = vld [vmem:[#allocation8 + $0x1ac] ss:$16 sps:$4 sm:$0xff]  }
 0x25d   :  { %4714 = vmatpush2.bf16.msra.mxu0 %v6211_v33  ;;  %v6282_v33 = vld [vmem:[#allocation8 + $0x18c] ss:$16 sps:$4 sm:$0xff]  }
 0x25e   :  { %4769 = vmatprep.subr.bf16.mxu0 %v6216_v36  ;;  %4757 = vmatpush2.bf16.msra.mxu1 %v6307_v38  ;;  %v6280_v36 = vld [vmem:[#allocation8 + $0x188] ss:$16 sps:$4 sm:$0xff]   ;;  %v6288_v38 = vld [vmem:[#allocation8 + $0x16c] ss:$16 sps:$4 sm:$0xff]  }
 0x25f   :  { %4812 = vmatprep.subr.bf16.mxu1 %v6315_v52  ;;  %v535_v52 = vsub.s32 6, %v6772_v17 }
 0x260   :  { %v2877_v46 = vpop.f32.mrf.mxu0 }
 0x261   :  { %v2878_v0 = vadd.f32 %v2877_v46, %v2835_v54  ;;  %v2920_v31 = vpop.f32.mrf.mxu1  ;;  %v536_v12 = vrot.slane %v6842_v53, %v535_v52  ;;  %v6337_v52 = vld [vmem:[#allocation8 + $0x268] ss:$16 sps:$4 sm:$0xff]  }
 0x262   :  { %v2879_v48 = vpop.f32.mrf.mxu0 }
 0x263   :  { %v2880_v62 = vadd.f32 %v2879_v48, %v2837_v49  ;;  %v3019_v8 = vmax.f32 %v2878_v0, 0.0  ;;  %v2922_v35 = vpop.f32.mrf.mxu1  ;;  %v2921_v54 = vadd.f32 %v2920_v31, %v536_v12  ;;  %v6306_v0 = vld [vmem:[#allocation8 + $0x10c] ss:$16 sps:$4 sm:$0xff]  }
 0x264   :  { %v2881_v11 = vpop.f32.mrf.mxu0  ;;  %v2923_v48 = vadd.f32 %v2922_v35, %v540_v19  ;;  %v6330_v31 = vld [vmem:[#allocation8 + $0x48c] ss:$16 sps:$4 sm:$0xff]  }
 0x265   :  { %v2882_v63 = vadd.f32 %v2881_v11, %v2839_v50  ;;  %v3020_v6 = vmax.f32 %v2880_v62, 0.0  ;;  %v2924_v39 = vpop.f32.mrf.mxu1  ;;  %v6298_v62 = vld [vmem:[#allocation8 + $0x128] ss:$16 sps:$4 sm:$0xff]   ;;  %v6336_v35 = vld [vmem:[#allocation8 + $0x46c] ss:$16 sps:$4 sm:$0xff]  }
 0x266   :  { %v2883_v1 = vpop.f32.mrf.mxu0  ;;  %v2925_v58 = vadd.f32 %v2924_v39, %v536_v12  ;;  %v6340_v39 = vld [vmem:[#allocation8 + $0x448] ss:$16 sps:$4 sm:$0xff]  }
 0x267   :  { %v2884_v3 = vadd.f32 %v2883_v1, %v2841_v61  ;;  %v3027_v4 = vmax.f32 %v2882_v63, 0.0  ;;  %v2926_v41 = vpop.f32.mrf.mxu1  ;;  %v6346_v12 = vld [vmem:[#allocation8 + $0x428] ss:$16 sps:$4 sm:$0xff]  }
 0x268   :  { %v2927_v1 = vadd.f32 %v2926_v41, %v540_v19  ;;  %v6343_v19 = vld [vmem:[#allocation8 + $0x248] ss:$16 sps:$4 sm:$0xff]   ;;  %v6351_v41 = vld [vmem:[#allocation8 + $0x22c] ss:$16 sps:$4 sm:$0xff]  }
 0x269   :  { %v3028_v7 = vmax.f32 %v2884_v3, 0.0  ;;  %v6863_v37 = vpack.c.bf16 %v3027_v4, %v3019_v8 }
 0x26b   :  { %v6861_v42 = vpack.c.bf16 %v3028_v7, %v3020_v6 }
 0x26d   :  { %4715 = vmatprep.mubr.bf16.mxu0 %v6861_v42 }
 0x26e   :  { %4716 = vmatmul.mubr.bf16.vlgmr.msra.gmra.mxu0 %v6863_v37 }
 0x26f   :  { %4770 = vmatpush1.bf16.msra.mxu0 %v6214_v9  ;;  %4801 = vmatprep.mubr.bf16.mxu0 %v6826_v16  ;;  %v6250_v16 = vld [vmem:[#allocation8 + $0x28] ss:$16 sps:$4 sm:$0xff]  }
 0x270   :  { %4771 = vmatprep.subr.bf16.mxu0 %v6222_v10  ;;  %v6304_v10 = vld [vmem:[#allocation8 + $0x108] ss:$16 sps:$4 sm:$0xff]  }
 0x273   :  { %4772 = vmatpush1.bf16.msra.mxu0 %v6220_v14 }
 0x274   :  { %4773 = vmatprep.subr.bf16.mxu0 %v6228_v18  ;;  %v6312_v18 = vld [vmem:[#allocation8 + $0x4ec] ss:$16 sps:$4 sm:$0xff]  }
 0x277   :  { %4774 = vmatpush1.bf16.msra.mxu0 %v6226_v13 }
 0x278   :  { %4775 = vmatprep.subr.bf16.mxu0 %v6234_v34 }
 0x27b   :  { %4776 = vmatpush1.bf16.msra.mxu0 %v6232_v20 }
 0x27c   :  { %4777 = vmatprep.subr.bf16.mxu0 %v6240_v21 }
 0x27f   :  { %4778 = vmatpush1.bf16.msra.mxu0 %v6238_v44 }
 0x280   :  { %4779 = vmatprep.subr.bf16.mxu0 %v6246_v23  ;;  %v6310_v23 = vld [vmem:[#allocation8 + $0x4e8] ss:$16 sps:$4 sm:$0xff]  }
 0x283   :  { %4780 = vmatpush1.bf16.msra.mxu0 %v6244_v24  ;;  %v6318_v24 = vld [vmem:[#allocation8 + $0x4cc] ss:$16 sps:$4 sm:$0xff]  }
 0x284   :  { %4781 = vmatprep.subr.bf16.mxu0 %v6252_v25 }
 0x287   :  { %4782 = vmatpush1.bf16.msra.mxu0 %v6250_v16 }
 0x288   :  { %4783 = vmatprep.subr.bf16.mxu0 %v6258_v60  ;;  %v6313_v60 = vld [vmem:[#allocation8 + $0x2e8] ss:$16 sps:$4 sm:$0xff]  }
 0x28b   :  { %4784 = vmatpush1.bf16.msra.mxu0 %v6256_v47 }
 0x28c   :  { %4785 = vmatprep.subr.bf16.mxu0 %v6264_v5  ;;  %v6316_v5 = vld [vmem:[#allocation8 + $0x4c8] ss:$16 sps:$4 sm:$0xff]  }
 0x28f   :  { %4786 = vmatpush2.bf16.msra.mxu0 %v6262_v28  ;;  %v6321_v28 = vld [vmem:[#allocation8 + $0x2cc] ss:$16 sps:$4 sm:$0xff]  }
 0x290   :  { %4787 = vmatprep.subr.bf16.mxu0 %v6270_v30  ;;  %v6324_v30 = vld [vmem:[#allocation8 + $0x4ac] ss:$16 sps:$4 sm:$0xff]  }
 0x293   :  { %4788 = vmatpush2.bf16.msra.mxu0 %v6268_v56  ;;  %v6319_v56 = vld [vmem:[#allocation8 + $0x2c8] ss:$16 sps:$4 sm:$0xff]  }
 0x294   :  { %4789 = vmatprep.subr.bf16.mxu0 %v6276_v51  ;;  %v6327_v51 = vld [vmem:[#allocation8 + $0x2ac] ss:$16 sps:$4 sm:$0xff]  }
 0x297   :  { %4790 = vmatpush2.bf16.msra.mxu0 %v6274_v22  ;;  %v6328_v22 = vld [vmem:[#allocation8 + $0x488] ss:$16 sps:$4 sm:$0xff]  }
 0x298   :  { %4791 = vmatprep.subr.bf16.mxu0 %v6282_v33  ;;  %v6333_v33 = vld [vmem:[#allocation8 + $0x28c] ss:$16 sps:$4 sm:$0xff]  }
 0x29b   :  { %4792 = vmatpush2.bf16.msra.mxu0 %v6280_v36  ;;  %v6331_v36 = vld [vmem:[#allocation8 + $0x288] ss:$16 sps:$4 sm:$0xff]  }
 0x29c   :  { %4793 = vmatprep.subr.bf16.mxu0 %v6288_v38  ;;  %v6339_v38 = vld [vmem:[#allocation8 + $0x26c] ss:$16 sps:$4 sm:$0xff]  }
 0x29f   :  { %4794 = vmatpush2.bf16.msra.mxu0 %v6286_v57  ;;  %v6345_v57 = vld [vmem:[#allocation8 + $0x24c] ss:$16 sps:$4 sm:$0xff]  }
 0x2a0   :  { %v2963_v46 = vpop.f32.mrf.mxu0  ;;  %4795 = vmatprep.subr.bf16.mxu0 %v6294_v2  ;;  %v6348_v2 = vld [vmem:[#allocation8 + $0x42c] ss:$16 sps:$4 sm:$0xff]  }
 0x2a1   :  { %v3006_v49 = vpop.f32.mrf.mxu1  ;;  %v2964_v53 = vadd.f32 %v2963_v46, %v2921_v54  ;;  %v6349_v46 = vld [vmem:[#allocation8 + $0x228] ss:$16 sps:$4 sm:$0xff]  }
 0x2a2   :  { %v2965_v50 = vpop.f32.mrf.mxu0  ;;  %v6358_v54 = vld [vmem:[#allocation8 + $0x5e8] ss:$16 sps:$4 sm:$0xff]  }
 0x2a3   :  { %v2966_v11 = vadd.f32 %v2965_v50, %v2923_v48  ;;  %v3008_v61 = vpop.f32.mrf.mxu1  ;;  %4796 = vmatpush2.bf16.msra.mxu0 %v6292_v45  ;;  %v3007_v13 = vadd.f32 %v3006_v49, %v2964_v53  ;;  %v6354_v45 = vld [vmem:[#allocation8 + $0x40c] ss:$16 sps:$4 sm:$0xff]   ;;  %v6355_v50 = vld [vmem:[#allocation8 + $0x208] ss:$16 sps:$4 sm:$0xff]  }
 0x2a4   :  { %v2967_v63 = vpop.f32.mrf.mxu0  ;;  %4797 = vmatprep.subr.bf16.mxu0 %v6300_v59  ;;  %v6352_v59 = vld [vmem:[#allocation8 + $0x408] ss:$16 sps:$4 sm:$0xff]   ;;  %v6357_v48 = vld [vmem:[#allocation8 + $0x20c] ss:$16 sps:$4 sm:$0xff]  }
 0x2a5   :  { %v2968_v3 = vadd.f32 %v2967_v63, %v2925_v58  ;;  %v3010_v4 = vpop.f32.mrf.mxu1  ;;  %v3009_v7 = vadd.f32 %v3008_v61, %v2966_v11  ;;  %v3021_v25 = vmax.f32 %v3007_v13, 0.0  ;;  %v6360_v49 = vld [vmem:[#allocation8 + $0x5ec] ss:$16 sps:$4 sm:$0xff]   ;;  %v6361_v61 = vld [vmem:[#allocation8 + $0x3e8] ss:$16 sps:$4 sm:$0xff]  }
 0x2a6   :  { %v2969_v6 = vpop.f32.mrf.mxu0  ;;  %v6363_v58 = vld [vmem:[#allocation8 + $0x3ec] ss:$16 sps:$4 sm:$0xff]   ;;  %v6370_v53 = vld [vmem:[#allocation8 + $0x5a8] ss:$16 sps:$4 sm:$0xff]  }
 0x2a7   :  { %v3011_v8 = vadd.f32 %v3010_v4, %v2968_v3  ;;  %v2970_v9 = vadd.f32 %v2969_v6, %v2927_v1  ;;  %4798 = vmatpush2.bf16.msra.mxu0 %v6298_v62  ;;  %v3012_v14 = vpop.f32.mrf.mxu1  ;;  %v3022_v20 = vmax.f32 %v3009_v7, 0.0  ;;  %v6366_v11 = vld [vmem:[#allocation8 + $0x5cc] ss:$16 sps:$4 sm:$0xff]   ;;  %v6364_v62 = vld [vmem:[#allocation8 + $0x5c8] ss:$16 sps:$4 sm:$0xff]  }
 0x2a8   :  { %4799 = vmatprep.subr.bf16.mxu0 %v6306_v0  ;;  %v6369_v63 = vld [vmem:[#allocation8 + $0x3cc] ss:$16 sps:$4 sm:$0xff]   ;;  %v6367_v1 = vld [vmem:[#allocation8 + $0x3c8] ss:$16 sps:$4 sm:$0xff]  }
 0x2a9   :  { %v3013_v34 = vadd.f32 %v3012_v14, %v2970_v9  ;;  %v3029_v21 = vmax.f32 %v3011_v8, 0.0  ;;  %v6372_v0 = vld [vmem:[#allocation8 + $0x5ac] ss:$16 sps:$4 sm:$0xff]   ;;  %v6373_v6 = vld [vmem:[#allocation8 + $0x3a8] ss:$16 sps:$4 sm:$0xff]  }
 0x2aa   :  { %v6375_v3 = vld [vmem:[#allocation8 + $0x3ac] ss:$16 sps:$4 sm:$0xff]   ;;  %v6376_v7 = vld [vmem:[#allocation8 + $0x588] ss:$16 sps:$4 sm:$0xff]  }
 0x2ab   :  { %v3030_v44 = vmax.f32 %v3013_v34, 0.0  ;;  %4800 = vmatpush2.bf16.msra.mxu0 %v6304_v10  ;;  %v6875_v47 = vpack.c.bf16 %v3029_v21, %v3021_v25  ;;  %v6378_v4 = vld [vmem:[#allocation8 + $0x58c] ss:$16 sps:$4 sm:$0xff]   ;;  %v6379_v10 = vld [vmem:[#allocation8 + $0x388] ss:$16 sps:$4 sm:$0xff]  }
 0x2ac   :  { %4855 = vmatprep.subr.bf16.mxu0 %v6312_v18  ;;  %v6381_v8 = vld [vmem:[#allocation8 + $0x38c] ss:$16 sps:$4 sm:$0xff]   ;;  %v6382_v14 = vld [vmem:[#allocation8 + $0x568] ss:$16 sps:$4 sm:$0xff]  }
 0x2ad   :  { %v6872_v16 = vpack.c.bf16 %v3030_v44, %v3022_v20  ;;  %v6384_v9 = vld [vmem:[#allocation8 + $0x56c] ss:$16 sps:$4 sm:$0xff]   ;;  %v6385_v34 = vld [vmem:[#allocation8 + $0x368] ss:$16 sps:$4 sm:$0xff]  }
 0x2ae   :  { %4802 = vmatmul.mubr.bf16.vlgmr.msra.gmra.mxu0 %v6808_v40  ;;  %v6322_v40 = vld [vmem:[#allocation8 + $0x4a8] ss:$16 sps:$4 sm:$0xff]   ;;  %v6387_v18 = vld [vmem:[#allocation8 + $0x36c] ss:$16 sps:$4 sm:$0xff]  }
 0x2af   :  { %4856 = vmatpush1.bf16.msra.mxu0 %v6310_v23  ;;  %4887 = vmatprep.mubr.bf16.mxu0 %v6861_v42  ;;  %v6325_v42 = vld [vmem:[#allocation8 + $0x2a8] ss:$16 sps:$4 sm:$0xff]   ;;  %v6390_v13 = vld [vmem:[#allocation8 + $0x54c] ss:$16 sps:$4 sm:$0xff]  }
 0x2b0   :  { %4758 = vmatprep.mubr.bf16.mxu1 %v6872_v16  ;;  %4857 = vmatprep.subr.bf16.mxu0 %v6318_v24  ;;  %v6388_v20 = vld [vmem:[#allocation8 + $0x548] ss:$16 sps:$4 sm:$0xff]   ;;  %v6393_v21 = vld [vmem:[#allocation8 + $0x34c] ss:$16 sps:$4 sm:$0xff]  }
 0x2b1   :  { %4759 = vmatmul.mubr.bf16.vlgmr.msra.gmra.mxu1 %v6875_v47  ;;  %v6396_v44 = vld [vmem:[#allocation8 + $0x52c] ss:$16 sps:$4 sm:$0xff]   ;;  %v6391_v23 = vld [vmem:[#allocation8 + $0x348] ss:$16 sps:$4 sm:$0xff]  }
 0x2b2   :  { %4813 = vmatpush1.bf16.msra.mxu1 %v6313_v60  ;;  %4844 = vmatprep.mubr.bf16.mxu1 %v6838_v15  ;;  %v6334_v15 = vld [vmem:[#allocation8 + $0x468] ss:$16 sps:$4 sm:$0xff]   ;;  %v6399_v25 = vld [vmem:[#allocation8 + $0x32c] ss:$16 sps:$4 sm:$0xff]  }
 0x2b3   :  { %4858 = vmatpush1.bf16.msra.mxu0 %v6316_v5  ;;  %4814 = vmatprep.subr.bf16.mxu1 %v6321_v28  ;;  %v6394_v24 = vld [vmem:[#allocation8 + $0x528] ss:$16 sps:$4 sm:$0xff]   ;;  %v6402_v60 = vld [vmem:[#allocation8 + $0x50c] ss:$16 sps:$4 sm:$0xff]  }
 0x2b4   :  { %4859 = vmatprep.subr.bf16.mxu0 %v6324_v30  ;;  %v6397_v5 = vld [vmem:[#allocation8 + $0x328] ss:$16 sps:$4 sm:$0xff]   ;;  %v6405_v30 = vld [vmem:[#allocation8 + $0x30c] ss:$16 sps:$4 sm:$0xff]  }
 0x2b5   :  { %v6400_v28 = vld [vmem:[#allocation8 + $0x508] ss:$16 sps:$4 sm:$0xff]  }
 0x2b6   :  { %4815 = vmatpush1.bf16.msra.mxu1 %v6319_v56  ;;  %v6454_v56 = vld [vmem:[#allocation11 + $0x78] sm:$0xff]  }
 0x2b7   :  { %4860 = vmatpush1.bf16.msra.mxu0 %v6322_v40  ;;  %4816 = vmatprep.subr.bf16.mxu1 %v6327_v51  ;;  %v6403_v40 = vld [vmem:[#allocation8 + $0x308] ss:$16 sps:$4 sm:$0xff]   ;;  %v6408_v51 = vld [vmem:[#allocation8 + $0x6ec] ss:$16 sps:$4 sm:$0xff]  }
 0x2b8   :  { %4861 = vmatprep.subr.bf16.mxu0 %v6330_v31  ;;  %v6455_v31 = vld [vmem:[#allocation11 + $0x38] sm:$0xff]  }
 0x2ba   :  { %4817 = vmatpush1.bf16.msra.mxu1 %v6325_v42  ;;  %v6456_v42 = vld [vmem:[#allocation11 + $0x70] sm:$0xff]  }
 0x2bb   :  { %4862 = vmatpush1.bf16.msra.mxu0 %v6328_v22  ;;  %4818 = vmatprep.subr.bf16.mxu1 %v6333_v33  ;;  %v6406_v22 = vld [vmem:[#allocation8 + $0x6e8] ss:$16 sps:$4 sm:$0xff]   ;;  %v6411_v33 = vld [vmem:[#allocation8 + $0x6cc] ss:$16 sps:$4 sm:$0xff]  }
 0x2bc   :  { %4863 = vmatprep.subr.bf16.mxu0 %v6336_v35  ;;  %v6457_v35 = vld [vmem:[#allocation11 + $0x30] sm:$0xff]  }
 0x2be   :  { %4819 = vmatpush1.bf16.msra.mxu1 %v6331_v36  ;;  %v6458_v36 = vld [vmem:[#allocation11 + $0x68] sm:$0xff]  }
 0x2bf   :  { %4864 = vmatpush1.bf16.msra.mxu0 %v6334_v15  ;;  %4820 = vmatprep.subr.bf16.mxu1 %v6339_v38  ;;  %v6409_v15 = vld [vmem:[#allocation8 + $0x6c8] ss:$16 sps:$4 sm:$0xff]   ;;  %v6414_v38 = vld [vmem:[#allocation8 + $0x6ac] ss:$16 sps:$4 sm:$0xff]  }
 0x2c0   :  { %4865 = vmatprep.subr.bf16.mxu0 %v6342_v43  ;;  %v6459_v43 = vld [vmem:[#allocation11 + $0x28] sm:$0xff]  }
 0x2c2   :  { %4821 = vmatpush1.bf16.msra.mxu1 %v6337_v52  ;;  %v6460_v52 = vld [vmem:[#allocation11 + $0x60] sm:$0xff]  }
 0x2c3   :  { %4866 = vmatpush1.bf16.msra.mxu0 %v6340_v39  ;;  %4822 = vmatprep.subr.bf16.mxu1 %v6345_v57  ;;  %v6417_v39 = vld [vmem:[#allocation8 + $0x68c] ss:$16 sps:$4 sm:$0xff]   ;;  %v6461_v57 = vld [vmem:[#allocation11 + $0x20] sm:$0xff]  }
 0x2c4   :  { %4867 = vmatprep.subr.bf16.mxu0 %v6348_v2  ;;  %v6462_v2 = vld [vmem:[#allocation11 + $0x58] sm:$0xff]  }
 0x2c6   :  { %4823 = vmatpush1.bf16.msra.mxu1 %v6343_v19  ;;  %v6420_v19 = vld [vmem:[#allocation8 + $0x66c] ss:$16 sps:$4 sm:$0xff]  }
 0x2c7   :  { %4868 = vmatpush1.bf16.msra.mxu0 %v6346_v12  ;;  %4824 = vmatprep.subr.bf16.mxu1 %v6351_v41  ;;  %v6464_v12 = vld [vmem:[#allocation11 + $0x50] sm:$0xff]  }
 0x2c8   :  { %4869 = vmatprep.subr.bf16.mxu0 %v6354_v45  ;;  %v6418_v41 = vld [vmem:[#allocation8 + $0x668] ss:$16 sps:$4 sm:$0xff]   ;;  %v6423_v45 = vld [vmem:[#allocation8 + $0x64c] ss:$16 sps:$4 sm:$0xff]  }
 0x2ca   :  { %4825 = vmatpush1.bf16.msra.mxu1 %v6349_v46  ;;  %v6465_v46 = vld [vmem:[#allocation11 + $0x10] sm:$0xff]  }
 0x2cb   :  { %4870 = vmatpush1.bf16.msra.mxu0 %v6352_v59  ;;  %4826 = vmatprep.subr.bf16.mxu1 %v6357_v48  ;;  %v6466_v59 = vld [vmem:[#allocation11 + $0x48] sm:$0xff]   ;;  %v6421_v48 = vld [vmem:[#allocation8 + $0x648] ss:$16 sps:$4 sm:$0xff]  }
 0x2cc   :  { %4871 = vmatprep.subr.bf16.mxu0 %v6360_v49  ;;  %v6426_v49 = vld [vmem:[#allocation8 + $0x62c] ss:$16 sps:$4 sm:$0xff]  }
 0x2ce   :  { %4827 = vmatpush1.bf16.msra.mxu1 %v6355_v50  ;;  %v6467_v50 = vld [vmem:[#allocation11 + $0x8] sm:$0xff]  }
 0x2cf   :  { %4872 = vmatpush2.bf16.msra.mxu0 %v6358_v54  ;;  %4828 = vmatprep.subr.bf16.mxu1 %v6363_v58  ;;  %v6468_v54 = vld [vmem:[#allocation11 + $0x40] sm:$0xff]  }
 0x2d0   :  { %4873 = vmatprep.subr.bf16.mxu0 %v6366_v11  ;;  %v6424_v58 = vld [vmem:[#allocation8 + $0x628] ss:$16 sps:$4 sm:$0xff]   ;;  %v6429_v11 = vld [vmem:[#allocation8 + $0x60c] ss:$16 sps:$4 sm:$0xff]  }
 0x2d2   :  { %4829 = vmatpush2.bf16.msra.mxu1 %v6361_v61  ;;  %v6469_v61 = vld [vmem:[#allocation11] sm:$0xff]  }
 0x2d3   :  { %4874 = vmatpush2.bf16.msra.mxu0 %v6364_v62  ;;  %4830 = vmatprep.subr.bf16.mxu1 %v6369_v63  ;;  %v6427_v62 = vld [vmem:[#allocation8 + $0x608] ss:$16 sps:$4 sm:$0xff]   ;;  %v6432_v63 = vld [vmem:[#allocation8 + $0x7ec] ss:$16 sps:$4 sm:$0xff]  }
 0x2d4   :  { %4875 = vmatprep.subr.bf16.mxu0 %v6372_v0  ;;  %v6430_v0 = vld [vmem:[#allocation8 + $0x7e8] ss:$16 sps:$4 sm:$0xff]  }
 0x2d6   :  { %4831 = vmatpush2.bf16.msra.mxu1 %v6367_v1  ;;  %v6435_v1 = vld [vmem:[#allocation8 + $0x7cc] ss:$16 sps:$4 sm:$0xff]  }
 0x2d7   :  { %4876 = vmatpush2.bf16.msra.mxu0 %v6370_v53  ;;  %4832 = vmatprep.subr.bf16.mxu1 %v6375_v3  ;;  %v6433_v53 = vld [vmem:[#allocation8 + $0x7c8] ss:$16 sps:$4 sm:$0xff]   ;;  %v6438_v3 = vld [vmem:[#allocation8 + $0x7ac] ss:$16 sps:$4 sm:$0xff]  }
 0x2d8   :  { %4877 = vmatprep.subr.bf16.mxu0 %v6378_v4  ;;  %v6436_v4 = vld [vmem:[#allocation8 + $0x7a8] ss:$16 sps:$4 sm:$0xff]  }
 0x2da   :  { %4833 = vmatpush2.bf16.msra.mxu1 %v6373_v6  ;;  %v6441_v6 = vld [vmem:[#allocation8 + $0x78c] ss:$16 sps:$4 sm:$0xff]  }
 0x2db   :  { %4878 = vmatpush2.bf16.msra.mxu0 %v6376_v7  ;;  %4834 = vmatprep.subr.bf16.mxu1 %v6381_v8  ;;  %v6439_v7 = vld [vmem:[#allocation8 + $0x788] ss:$16 sps:$4 sm:$0xff]   ;;  %v6444_v8 = vld [vmem:[#allocation8 + $0x76c] ss:$16 sps:$4 sm:$0xff]  }
 0x2dc   :  { %4879 = vmatprep.subr.bf16.mxu0 %v6384_v9  ;;  %v6442_v9 = vld [vmem:[#allocation8 + $0x768] ss:$16 sps:$4 sm:$0xff]  }
 0x2de   :  { %4835 = vmatpush2.bf16.msra.mxu1 %v6379_v10  ;;  %v6447_v10 = vld [vmem:[#allocation8 + $0x74c] ss:$16 sps:$4 sm:$0xff]  }
 0x2df   :  { %4880 = vmatpush2.bf16.msra.mxu0 %v6382_v14  ;;  %4836 = vmatprep.subr.bf16.mxu1 %v6387_v18  ;;  %v6445_v14 = vld [vmem:[#allocation8 + $0x748] ss:$16 sps:$4 sm:$0xff]   ;;  %v6450_v18 = vld [vmem:[#allocation8 + $0x72c] ss:$16 sps:$4 sm:$0xff]  }
 0x2e0   :  { %4881 = vmatprep.subr.bf16.mxu0 %v6390_v13  ;;  %v6448_v13 = vld [vmem:[#allocation8 + $0x728] ss:$16 sps:$4 sm:$0xff]  }
 0x2e2   :  { %4837 = vmatpush2.bf16.msra.mxu1 %v6385_v34  ;;  %v6453_v34 = vld [vmem:[#allocation8 + $0x70c] ss:$16 sps:$4 sm:$0xff]  }
 0x2e3   :  { %4882 = vmatpush2.bf16.msra.mxu0 %v6388_v20  ;;  %4838 = vmatprep.subr.bf16.mxu1 %v6393_v21  ;;  %v6451_v20 = vld [vmem:[#allocation8 + $0x708] ss:$16 sps:$4 sm:$0xff]   ;;  %v6470_v21 = vld [vmem:[#allocation11 + $0xf8] sm:$0xff]  }
 0x2e4   :  { %4883 = vmatprep.subr.bf16.mxu0 %v6396_v44  ;;  %v6471_v44 = vld [vmem:[#allocation11 + $0xb8] sm:$0xff]  }
 0x2e6   :  { %4839 = vmatpush2.bf16.msra.mxu1 %v6391_v23  ;;  %v6472_v23 = vld [vmem:[#allocation11 + $0xf0] sm:$0xff]  }
 0x2e7   :  { %4884 = vmatpush2.bf16.msra.mxu0 %v6394_v24  ;;  %4840 = vmatprep.subr.bf16.mxu1 %v6399_v25  ;;  %v6473_v24 = vld [vmem:[#allocation11 + $0xb0] sm:$0xff]   ;;  %v6474_v25 = vld [vmem:[#allocation11 + $0xe8] sm:$0xff]  }
 0x2e8   :  { %4885 = vmatprep.subr.bf16.mxu0 %v6402_v60  ;;  %v6475_v60 = vld [vmem:[#allocation11 + $0xa8] sm:$0xff]  }
 0x2ea   :  { %4841 = vmatpush2.bf16.msra.mxu1 %v6397_v5  ;;  %v6476_v5 = vld [vmem:[#allocation11 + $0xe0] sm:$0xff]  }
 0x2eb   :  { %4886 = vmatpush2.bf16.msra.mxu0 %v6400_v28  ;;  %4842 = vmatprep.subr.bf16.mxu1 %v6405_v30  ;;  %v6477_v28 = vld [vmem:[#allocation11 + $0xa0] sm:$0xff]   ;;  %v6478_v30 = vld [vmem:[#allocation11 + $0xd8] sm:$0xff]  }
 0x2ec   :  { %5999 = vmatprep.subr.bf16.mxu0 %v6454_v56  ;;  %v6479_v56 = vld [vmem:[#allocation11 + $0x98] sm:$0xff]  }
 0x2ee   :  { %4843 = vmatpush2.bf16.msra.mxu1 %v6403_v40  ;;  %4888 = vmatmul.mubr.bf16.vlgmr.msra.gmra.mxu0 %v6863_v37  ;;  %v6412_v37 = vld [vmem:[#allocation8 + $0x6a8] ss:$16 sps:$4 sm:$0xff]  }
 0x2ef   :  { %4898 = vmatprep.subr.bf16.mxu1 %v6408_v51  ;;  %6000 = vmatpush3.bf16.msra.mxu0 %v6455_v31  ;;  %v4674_v31 = vpop.f32.mrf.mxu1 }
 0x2f0   :  { %6001 = vmatprep.subr.bf16.mxu0 %v6456_v42 }
 0x2f1   :  { %4845 = vmatmul.mubr.bf16.vlgmr.msra.gmra.mxu1 %v6853_v26  ;;  %v6415_v26 = vld [vmem:[#allocation8 + $0x688] ss:$16 sps:$4 sm:$0xff]  }
 0x2f2   :  { %4899 = vmatpush1.bf16.msra.mxu1 %v6406_v22  ;;  %4930 = vmatprep.mubr.bf16.mxu1 %v6872_v16  ;;  %v6463_v16 = vld [vmem:[#allocation11 + $0x18] sm:$0xff]   ;;  %v4676_v22 = vpop.f32.mrf.mxu1 }
 0x2f3   :  { %4900 = vmatprep.subr.bf16.mxu1 %v6411_v33  ;;  %6002 = vmatpush3.bf16.msra.mxu0 %v6457_v35  ;;  %v3295_v35 = vld [vmem:[#allocation10] sm:$0xf] }
 0x2f4   :  { %6003 = vmatprep.subr.bf16.mxu0 %v6458_v36  ;;  %v3304_v36 = vrot.slane %v3295_v35, %v515_v55 }
 0x2f6   :  { %4901 = vmatpush1.bf16.msra.mxu1 %v6409_v15  ;;  %v3300_v15 = vrot.slane %v3295_v35, %v511_v27 }
 0x2f7   :  { %4902 = vmatprep.subr.bf16.mxu1 %v6414_v38  ;;  %6004 = vmatpush3.bf16.msra.mxu0 %v6459_v43  ;;  %v4678_v38 = vpop.f32.mrf.mxu1 }
 0x2f8   :  { %6005 = vmatprep.subr.bf16.mxu0 %v6460_v52 }
 0x2fa   :  { %4903 = vmatpush1.bf16.msra.mxu1 %v6412_v37 }
 0x2fb   :  { %4904 = vmatprep.subr.bf16.mxu1 %v6417_v39  ;;  %6006 = vmatpush3.bf16.msra.mxu0 %v6461_v57  ;;  %v4680_v57 = vpop.f32.mrf.mxu1 }
 0x2fc   :  { %6007 = vmatprep.subr.bf16.mxu0 %v6462_v2 }
 0x2fe   :  { %4905 = vmatpush1.bf16.msra.mxu1 %v6415_v26 }
 0x2ff   :  { %4906 = vmatprep.subr.bf16.mxu1 %v6420_v19  ;;  %6008 = vmatpush3.bf16.msra.mxu0 %v6463_v16  ;;  %v6480_v16 = vld [vmem:[#allocation11 + $0xd0] sm:$0xff]  }
 0x300   :  { %6009 = vmatprep.subr.bf16.mxu0 %v6464_v12 }
 0x302   :  { %4907 = vmatpush1.bf16.msra.mxu1 %v6418_v41 }
 0x303   :  { %4908 = vmatprep.subr.bf16.mxu1 %v6423_v45  ;;  %6010 = vmatpush3.bf16.msra.mxu0 %v6465_v46  ;;  %v6481_v45 = vld [vmem:[#allocation11 + $0x90] sm:$0xff]  }
 0x304   :  { %6011 = vmatprep.subr.bf16.mxu0 %v6466_v59 }
 0x306   :  { %4909 = vmatpush1.bf16.msra.mxu1 %v6421_v48 }
 0x307   :  { %4910 = vmatprep.subr.bf16.mxu1 %v6426_v49  ;;  %6012 = vmatpush3.bf16.msra.mxu0 %v6467_v50 }
 0x308   :  { %6013 = vmatprep.subr.bf16.mxu0 %v6468_v54 }
 0x30a   :  { %4911 = vmatpush1.bf16.msra.mxu1 %v6424_v58  ;;  %v6482_v58 = vld [vmem:[#allocation11 + $0xc8] sm:$0xff]  }
 0x30b   :  { %4912 = vmatprep.subr.bf16.mxu1 %v6429_v11  ;;  %6014 = vmatpush3.bf16.msra.mxu0 %v6469_v61 }
 0x30e   :  { %4913 = vmatpush1.bf16.msra.mxu1 %v6427_v62 }
 0x30f   :  { %4914 = vmatprep.subr.bf16.mxu1 %v6432_v63  ;;  %v6483_v63 = vld [vmem:[#allocation11 + $0x88] sm:$0xff]  }
 0x312   :  { %4915 = vmatpush2.bf16.msra.mxu1 %v6430_v0 }
 0x313   :  { %4916 = vmatprep.subr.bf16.mxu1 %v6435_v1 }
 0x316   :  { %4917 = vmatpush2.bf16.msra.mxu1 %v6433_v53 }
 0x317   :  { %4918 = vmatprep.subr.bf16.mxu1 %v6438_v3 }
 0x31a   :  { %4919 = vmatpush2.bf16.msra.mxu1 %v6436_v4  ;;  %v6484_v4 = vld [vmem:[#allocation11 + $0xc0] sm:$0xff]  }
 0x31b   :  { %4920 = vmatprep.subr.bf16.mxu1 %v6441_v6 }
 0x31e   :  { %4921 = vmatpush2.bf16.msra.mxu1 %v6439_v7 }
 0x31f   :  { %4922 = vmatprep.subr.bf16.mxu1 %v6444_v8  ;;  %v6485_v8 = vld [vmem:[#allocation11 + $0x80] sm:$0xff]  }
 0x322   :  { %4923 = vmatpush2.bf16.msra.mxu1 %v6442_v9 }
 0x323   :  { %4924 = vmatprep.subr.bf16.mxu1 %v6447_v10 }
 0x326   :  { %4925 = vmatpush2.bf16.msra.mxu1 %v6445_v14 }
 0x327   :  { %4926 = vmatprep.subr.bf16.mxu1 %v6450_v18 }
 0x32a   :  { %4927 = vmatpush2.bf16.msra.mxu1 %v6448_v13 }
 0x32b   :  { %4928 = vmatprep.subr.bf16.mxu1 %v6453_v34 }
 0x32e   :  { %4929 = vmatpush2.bf16.msra.mxu1 %v6451_v20 }
 0x32f   :  { %6021 = vmatprep.subr.bf16.mxu1 %v6470_v21 }
 0x331   :  { %4931 = vmatmul.mubr.bf16.vlgmr.msra.gmra.mxu1 %v6875_v47  ;;  %v4631_v47 = vpop.f32.mrf.mxu0 }
 0x332   :  { %6022 = vmatpush3.bf16.msra.mxu1 %v6471_v44  ;;  %v4632_v39 = vadd.f32 %v4631_v47, %v3300_v15 }
 0x333   :  { %6023 = vmatprep.subr.bf16.mxu1 %v6472_v23  ;;  %v4633_v40 = vpop.f32.mrf.mxu0 }
 0x334   :  { %v4634_v52 = vadd.f32 %v4633_v40, %v3304_v36  ;;  %v4675_v46 = vadd.f32 %v4674_v31, %v4632_v39 }
 0x335   :  { %v4635_v51 = vpop.f32.mrf.mxu0 }
 0x336   :  { %6024 = vmatpush3.bf16.msra.mxu1 %v6473_v24  ;;  %v4636_v37 = vadd.f32 %v4635_v51, %v3300_v15  ;;  %v4677_v12 = vadd.f32 %v4676_v22, %v4634_v52  ;;  %v3312_v24 = vrot.slane %v3295_v35, %v523_v32 }
 0x337   :  { %6025 = vmatprep.subr.bf16.mxu1 %v6474_v25  ;;  %v4637_v42 = vpop.f32.mrf.mxu0  ;;  %v3308_v25 = vrot.slane %v3295_v35, %v519_v29 }
 0x338   :  { %v4638_v26 = vadd.f32 %v4637_v42, %v3304_v36  ;;  %v4679_v41 = vadd.f32 %v4678_v38, %v4636_v37 }
 0x339   :  { %v4717_v33 = vpop.f32.mrf.mxu0 }
 0x33a   :  { %6026 = vmatpush3.bf16.msra.mxu1 %v6475_v60  ;;  %v4681_v55 = vadd.f32 %v4680_v57, %v4638_v26  ;;  %v4718_v50 = vadd.f32 %v4717_v33, %v4675_v46 }
 0x33b   :  { %6027 = vmatprep.subr.bf16.mxu1 %v6476_v5  ;;  %v4719_v43 = vpop.f32.mrf.mxu0 }
 0x33c   :  { %v4720_v49 = vadd.f32 %v4719_v43, %v4677_v12 }
 0x33d   :  { %v4721_v2 = vpop.f32.mrf.mxu0 }
 0x33e   :  { %6028 = vmatpush3.bf16.msra.mxu1 %v6477_v28  ;;  %v4722_v27 = vadd.f32 %v4721_v2, %v4679_v41 }
 0x33f   :  { %6029 = vmatprep.subr.bf16.mxu1 %v6478_v30  ;;  %v4723_v59 = vpop.f32.mrf.mxu0 }
 0x340   :  { %v4724_v11 = vadd.f32 %v4723_v59, %v4681_v55 }
 0x342   :  { %6030 = vmatpush3.bf16.msra.mxu1 %v6479_v56 }
 0x343   :  { %6031 = vmatprep.subr.bf16.mxu1 %v6480_v16 }
 0x346   :  { %6032 = vmatpush3.bf16.msra.mxu1 %v6481_v45 }
 0x347   :  { %6033 = vmatprep.subr.bf16.mxu1 %v6482_v58 }
 0x34a   :  { %6034 = vmatpush3.bf16.msra.mxu1 %v6483_v63 }
 0x34b   :  { %6035 = vmatprep.subr.bf16.mxu1 %v6484_v4 }
 0x34e   :  { %6036 = vmatpush3.bf16.msra.mxu1 %v6485_v8 }
 0x36e   :  { %v4803_v18 = vpop.f32.mrf.mxu0 }
 0x36f   :  { %v4804_v56 = vadd.f32 %v4803_v18, %v3308_v25 }
 0x370   :  { %v4805_v13 = vpop.f32.mrf.mxu0 }
 0x371   :  { %v4760_v19 = vpop.f32.mrf.mxu1  ;;  %v4806_v28 = vadd.f32 %v4805_v13, %v3312_v24 }
 0x372   :  { %v4761_v0 = vadd.f32 %v4760_v19, %v4718_v50  ;;  %v4807_v34 = vpop.f32.mrf.mxu0 }
 0x373   :  { %v4762_v48 = vpop.f32.mrf.mxu1  ;;  %v4808_v30 = vadd.f32 %v4807_v34, %v3308_v25 }
 0x374   :  { %v4763_v61 = vadd.f32 %v4762_v48, %v4720_v49  ;;  %v4941_v9 = vmax.f32 %v4761_v0, 0.0  ;;  %v4809_v21 = vpop.f32.mrf.mxu0  ;;  %v5966_v49 = vld [vmem:[#allocation13] ss:$0 sm:$0xff] }
 0x375   :  { %v4764_v54 = vpop.f32.mrf.mxu1  ;;  %v4810_v40 = vadd.f32 %v4809_v21, %v3312_v24 }
 0x376   :  { %v4765_v62 = vadd.f32 %v4764_v54, %v4722_v27  ;;  %v4942_v6 = vmax.f32 %v4763_v61, 0.0 }
 0x377   :  { %v4766_v1 = vpop.f32.mrf.mxu1 }
 0x378   :  { %v4767_v53 = vadd.f32 %v4766_v1, %v4724_v11  ;;  %v4945_v3 = vmax.f32 %v4765_v62, 0.0 }
 0x37a   :  { %v4946_v7 = vmax.f32 %v4767_v53, 0.0  ;;  %v4949_v14 = vpack.c.bf16 %v4945_v3, %v4941_v9 }
 0x37c   :  { %v4950_v10 = vpack.c.bf16 %v4946_v7, %v4942_v6 }
 0x37e   :  { %5248 = vmatprep.mubr.bf16.mxu0 %v4950_v10 }
 0x37f   :  { %5249 = vmatmul.mubr.bf16.vlgmr.msra.gmra.mxu0 %v4949_v14 }
 0x3ae   :  { %v4889_v23 = vpop.f32.mrf.mxu0 }
 0x3b0   :  { %v4891_v5 = vpop.f32.mrf.mxu0 }
 0x3b1   :  { %v4846_v20 = vpop.f32.mrf.mxu1 }
 0x3b2   :  { %v4847_v42 = vadd.f32 %v4846_v20, %v4804_v56  ;;  %v4893_v22 = vpop.f32.mrf.mxu0 }
 0x3b3   :  { %v4848_v44 = vpop.f32.mrf.mxu1 }
 0x3b4   :  { %v4849_v51 = vadd.f32 %v4848_v44, %v4806_v28  ;;  %v4895_v32 = vpop.f32.mrf.mxu0  ;;  %v4890_v52 = vadd.f32 %v4889_v23, %v4847_v42 }
 0x3b5   :  { %v4850_v60 = vpop.f32.mrf.mxu1 }
 0x3b6   :  { %v4851_v31 = vadd.f32 %v4850_v60, %v4808_v30  ;;  %v4892_v38 = vadd.f32 %v4891_v5, %v4849_v51 }
 0x3b7   :  { %v4852_v47 = vpop.f32.mrf.mxu1 }
 0x3b8   :  { %v4853_v36 = vadd.f32 %v4852_v47, %v4810_v40  ;;  %v4894_v43 = vadd.f32 %v4893_v22, %v4851_v31 }
 0x3ba   :  { %v4896_v37 = vadd.f32 %v4895_v32, %v4853_v36 }
 0x3f1   :  { %v4932_v33 = vpop.f32.mrf.mxu1 }
 0x3f2   :  { %v4933_v39 = vadd.f32 %v4932_v33, %v4890_v52 }
 0x3f3   :  { %v4934_v15 = vpop.f32.mrf.mxu1 }
 0x3f4   :  { %v4935_v29 = vadd.f32 %v4934_v15, %v4892_v38  ;;  %v4943_v12 = vmax.f32 %v4933_v39, 0.0 }
 0x3f5   :  { %v4936_v17 = vpop.f32.mrf.mxu1 }
 0x3f6   :  { %v4937_v35 = vadd.f32 %v4936_v17, %v4894_v43  ;;  %v4944_v19 = vmax.f32 %v4935_v29, 0.0 }
 0x3f7   :  { %v4938_v57 = vpop.f32.mrf.mxu1 }
 0x3f8   :  { %v4939_v2 = vadd.f32 %v4938_v57, %v4896_v37  ;;  %v4947_v26 = vmax.f32 %v4937_v35, 0.0 }
 0x3fa   :  { %v4948_v16 = vmax.f32 %v4939_v2, 0.0  ;;  %v4951_v45 = vpack.c.bf16 %v4947_v26, %v4943_v12 }
 0x3fc   :  { %v4952_v41 = vpack.c.bf16 %v4948_v16, %v4944_v19 }
 0x3fe   :  { %5289 = vmatprep.mubr.bf16.mxu1 %v4952_v41 }
 0x3ff   :  { %5290 = vmatmul.mubr.bf16.vlgmr.msra.gmra.mxu1 %v4951_v45 }
 0x43f   :  { %v6015_v46 = vpop.f32.mrf.mxu0 }
 0x441   :  { %v6016_v59 = vpop.f32.mrf.mxu0 }
 0x442   :  { %v6017_v55 = vadd.f32 %v6016_v59, %v6015_v46 }
 0x443   :  { %v6018_v48 = vpop.f32.mrf.mxu0 }
 0x444   :  { %v5251_v58 = vadd.f32 %v6017_v55, %v5966_v49 }
 0x445   :  { %v6019_v27 = vpop.f32.mrf.mxu0 }
 0x446   :  { %v6020_v11 = vadd.f32 %v6019_v27, %v6018_v48 }
 0x448   :  { %v5254_v1 = vadd.f32 %v6020_v11, %v5966_v49 }
 0x4bf   :  { %v6037_v50 = vpop.f32.mrf.mxu1 }
 0x4c1   :  { %v6038_v54 = vpop.f32.mrf.mxu1 }
 0x4c2   :  { %v6039_v61 = vadd.f32 %v6038_v54, %v6037_v50 }
 0x4c3   :  { %v6040_v62 = vpop.f32.mrf.mxu1 }
 0x4c4   :  { %v5292_v63 = vadd.f32 %v6039_v61, %v5251_v58 }
 0x4c5   :  { %v6041_v0 = vpop.f32.mrf.mxu1 }
 0x4c6   :  { %5298 = vst [vmem:[#allocation14] sm:$0xff] %v5292_v63  ;;  %v6042_v53 = vadd.f32 %v6041_v0, %v6040_v62 }
 0x4c8   :  { %v5295_v3 = vadd.f32 %v6042_v53, %v5254_v1 }
 0x4ca   :  { %5299 = vst [vmem:[#allocation14 + $0x8] sm:$0xff] %v5295_v3 }
 0x4cb   :  { %6645 = shalt.err (!%p6642_p11)
}
 0x4cc   :  { %s6680_s17 = smov 128   ;;  %s6681_s18 = smov 8  }
 0x4cd   :  { %5311 = dma.vmem_to_hbm [thread:$0]  %s5306_s6, 256, %s6903_s7, [#allocation4], %s6680_s17, %s6680_s17, %s6681_s18  }
 0x4ce   :  { %6662 = dma.done.wait [#allocation4], 256  }
 0x4cf   :  { %6663 = vsyncadd [#allocation4], 4294967040 }
 0x4d0   :  { %5315 = vsyncpa [#allocation3], 1 }
 0x4d1   :  { %5316 = vsyncpa [#allocation6], 1 }
 0x4d2   :  { %5317 = vsyncpa [#allocation9], 1 }
 0x4d3   :  { %5318 = vsyncpa [#allocation12], 1 }
 0x4d4   :  { %5319 = vsyncpa [#allocation4], 1 }

</bundles_post_ra>
